<compile_context>
chip_gen: v7x
topology: tpu7x:2x2x1
jax: 0.10.0
libtpu: 0.0.40
codegen_flags: <defaults>
</compile_context>

<pallas_src>
import jax
import jax.numpy as jnp
from jax.experimental import pallas as pl
from jax.experimental.pallas import tpu as pltpu

NUM_QD = 5             # true input features
NUM_QD_PAD = 8         # padded K for layer 1
H1 = 512
H2 = 512
OUT = 1000             # true logits
OUT_PAD = 1024         # lane-dense padded logits (multiple of 128)
MAX_TILE_B = 1024      # batch tile cap (multiple of 256; safe on v7x 64 MiB VMEM)
VMEM_LIMIT_BYTES = 48 * 1024 * 1024


def _round_up(n, m):
    return ((n + m - 1) // m) * m


def _pick_tile_b(batch):
    """Batch tile: small B -> one sublane-friendly step; big B -> >=2 parallel steps."""
    if batch <= 256:
        return _round_up(batch, 16)
    # >= 2 grid steps so both v7x TensorCores get work; multiple of 256 for MXU M.
    half = -(-batch // 2)
    return min(MAX_TILE_B, _round_up(half, 256))


def mlp_kernel(x_ref, w1_ref, b1_ref, w2_ref, b2_ref, w3_ref, b3_ref, o_ref):
    # Layer 1: (TB, 8) @ (8, 512) + (1, 512), ReLU.  Kept f32 (tiny K, exact inputs).
    h = jnp.dot(x_ref[...], w1_ref[...], preferred_element_type=jnp.float32)
    h = jnp.maximum(h + b1_ref[...], 0.0)
    # Layer 2: (TB, 512) @ (512, 512) + (1, 512), ReLU.  bf16 (or f32) MXU, f32 acc.
    h = jnp.dot(h.astype(w2_ref.dtype), w2_ref[...],
                preferred_element_type=jnp.float32)
    h = jnp.maximum(h + b2_ref[...], 0.0)
    # Layer 3: (TB, 512) @ (512, 1024) + (1, 1024), lane-dense logits.
    o = jnp.dot(h.astype(w3_ref.dtype), w3_ref[...],
                preferred_element_type=jnp.float32)
    o_ref[...] = (o + b3_ref[...]).astype(o_ref.dtype)


def _forward_call(x_pad, w1, b1, w2, b2, w3, b3, *, tile_b, out_dtype,
                  single_buffer_weights):
    b_pad = x_pad.shape[0]
    grid = (b_pad // tile_b,)
    const = lambda i: (0, 0)     # weights/biases stay VMEM-resident across steps
    wkw = dict(pipeline_mode=pl.Buffered(1)) if single_buffer_weights else {}

    return pl.pallas_call(
        mlp_kernel,
        out_shape=jax.ShapeDtypeStruct((b_pad, OUT_PAD), out_dtype),
        grid=grid,
        in_specs=[
            pl.BlockSpec((tile_b, NUM_QD_PAD), lambda i: (i, 0)),       # x
            pl.BlockSpec((NUM_QD_PAD, H1), const, **wkw),               # w1 (f32)
            pl.BlockSpec((1, H1), const, **wkw),                        # b1
            pl.BlockSpec((H1, H2), const, **wkw),                       # w2
            pl.BlockSpec((1, H2), const, **wkw),                        # b2
            pl.BlockSpec((H2, OUT_PAD), const, **wkw),                  # w3
            pl.BlockSpec((1, OUT_PAD), const, **wkw),                   # b3
        ],
        out_specs=pl.BlockSpec((tile_b, OUT_PAD), lambda i: (i, 0)),
        compiler_params=pltpu.CompilerParams(
            dimension_semantics=("parallel",),
            vmem_limit_bytes=VMEM_LIMIT_BYTES,
        ),
    )(x_pad, w1, b1, w2, b2, w3, b3)


def neural_network_forward(x, params, *, use_bf16=True, out_dtype=jnp.float32,
                           return_padded=False):
    """Forward pass.  x: (B, ...) with prod(...) == 5.  params: dict of f32 arrays."""
    # nn.Flatten
    x = x.reshape(x.shape[0], -1).astype(jnp.float32)
    B, F = x.shape
    assert F == NUM_QD, f"expected {NUM_QD} features, got {F}"

    tile_b = _pick_tile_b(B)
    b_pad = _round_up(B, tile_b)
    x_pad = jnp.pad(x, ((0, b_pad - B), (0, NUM_QD_PAD - NUM_QD)))

    # Weights: zero-pad K of w1 and N of w3/b3 -> logits unchanged.
    w1 = jnp.pad(params["w1"], ((0, NUM_QD_PAD - NUM_QD), (0, 0)))
    b1 = params["b1"]
    w2 = params["w2"]
    b2 = params["b2"]
    w3 = jnp.pad(params["w3"], ((0, 0), (0, OUT_PAD - OUT)))
    b3 = jnp.pad(params["b3"], ((0, 0), (0, OUT_PAD - OUT)))

    if use_bf16:
        # Only layers 2/3 (>99% of FLOPs) go bf16; layer 1 / biases / acc stay f32.
        w2 = w2.astype(jnp.bfloat16)
        w3 = w3.astype(jnp.bfloat16)

    args = (x_pad, w1, b1, w2, b2, w3, b3)
    try:
        out = _forward_call(*args, tile_b=tile_b, out_dtype=out_dtype,
                            single_buffer_weights=True)
    except Exception:
        # Graceful degradation if this JAX/Mosaic build rejects pipeline_mode
        # (falls back to default double-buffered resident weights).
        out = _forward_call(*args, tile_b=tile_b, out_dtype=out_dtype,
                            single_buffer_weights=False)

    if return_padded:
        # (b_pad, 1024): lets a bandwidth-bound consumer skip the extra HBM pass
        # of the de-pad slice and strip padding where it is fused.
        return out
    return out[:B, :OUT]


def init_params(key):
    """Deterministic init matching PyTorch Linear's U(-1/sqrt(fan_in), 1/sqrt(fan_in))."""
    ks = jax.random.split(key, 6)

    def linear(kw, kb, fan_in, fan_out):
        bound = 1.0 / jnp.sqrt(jnp.float32(fan_in))
        w = jax.random.uniform(kw, (fan_in, fan_out), jnp.float32, -bound, bound)
        b = jax.random.uniform(kb, (1, fan_out), jnp.float32, -bound, bound)
        return w, b

    w1, b1 = linear(ks[0], ks[1], NUM_QD, H1)
    w2, b2 = linear(ks[2], ks[3], H1, H2)
    w3, b3 = linear(ks[4], ks[5], H2, OUT)
    return {"w1": w1, "b1": b1, "w2": w2, "b2": b2, "w3": w3, "b3": b3}


def reference_forward(x, params):
    """Plain-JAX f32 reference for correctness checking."""
    x = x.reshape(x.shape[0], -1)
    h = jnp.maximum(x @ params["w1"] + params["b1"], 0.0)
    h = jnp.maximum(h @ params["w2"] + params["b2"], 0.0)
    return h @ params["w3"] + params["b3"]


if __name__ == "__main__":
    key = jax.random.PRNGKey(0)
    k_param, k_x1, k_x2 = jax.random.split(key, 3)

    params = init_params(k_param)

    # 1) Small batch, full-precision path: near-exact match vs reference.
    x_small = jax.random.normal(k_x1, (8, NUM_QD), dtype=jnp.float32)
    out_f32 = jax.block_until_ready(
        neural_network_forward(x_small, params, use_bf16=False))
    ref_small = reference_forward(x_small, params)
    assert out_f32.shape == (8, OUT), out_f32.shape
    assert jnp.allclose(out_f32, ref_small, atol=1e-4, rtol=1e-4), \
        "f32 mismatch vs reference"

    # 2) Default path (bf16 MXU, f32 accumulation), multi-step grid with batch
    #    padding: B=384 -> tile_b=256, grid=(2,).
    x_big = jax.random.normal(k_x2, (384, NUM_QD), dtype=jnp.float32)
    out_bf16 = jax.block_until_ready(neural_network_forward(x_big, params))
    ref_big = reference_forward(x_big, params)
    assert out_bf16.shape == (384, OUT), out_bf16.shape
    assert jnp.allclose(out_bf16, ref_big, atol=5e-2, rtol=5e-2), \
        "bf16 mismatch vs reference"

    print("KERNEL_OK")
</pallas_src>

<mosaic_0001>
module attributes {stable_mosaic.version = 11 : i64} {
  func.func @mlp_kernel(%arg0: i32, %arg1: memref<16x8xf32, #tpu.memory_space<vmem>>, %arg2: memref<8x512xf32, #tpu.memory_space<vmem>>, %arg3: memref<1x512xf32, #tpu.memory_space<vmem>>, %arg4: memref<512x512xf32, #tpu.memory_space<vmem>>, %arg5: memref<1x512xf32, #tpu.memory_space<vmem>>, %arg6: memref<512x1024xf32, #tpu.memory_space<vmem>>, %arg7: memref<1x1024xf32, #tpu.memory_space<vmem>>, %arg8: memref<16x1024xf32, #tpu.memory_space<vmem>>) attributes {dimension_semantics = [#tpu.dimension_semantics<parallel>], iteration_bounds = array<i64: 1>, scalar_prefetch = 0 : i64, scratch_operands = 0 : i64, tpu.core_type = #tpu.core_type<tc>, window_params = [{transform_indices = @transform_0, window_bounds = array<i64: 16, 8>}, {pipeline_mode = #tpu.pipeline_mode<synchronous>, transform_indices = @transform_1, window_bounds = array<i64: 8, 512>}, {pipeline_mode = #tpu.pipeline_mode<synchronous>, transform_indices = @transform_2, window_bounds = array<i64: 1, 512>}, {pipeline_mode = #tpu.pipeline_mode<synchronous>, transform_indices = @transform_3, window_bounds = array<i64: 512, 512>}, {pipeline_mode = #tpu.pipeline_mode<synchronous>, transform_indices = @transform_4, window_bounds = array<i64: 1, 512>}, {pipeline_mode = #tpu.pipeline_mode<synchronous>, transform_indices = @transform_5, window_bounds = array<i64: 512, 1024>}, {pipeline_mode = #tpu.pipeline_mode<synchronous>, transform_indices = @transform_6, window_bounds = array<i64: 1, 1024>}, {transform_indices = @transform_7, window_bounds = array<i64: 16, 1024>}]} {
    %c0 = arith.constant 0 : index
    %c0_0 = arith.constant 0 : index
    %0 = vector.load %arg1[%c0, %c0_0] : memref<16x8xf32, #tpu.memory_space<vmem>>, vector<16x8xf32>
    %c0_1 = arith.constant 0 : index
    %c0_2 = arith.constant 0 : index
    %1 = vector.load %arg2[%c0_1, %c0_2] : memref<8x512xf32, #tpu.memory_space<vmem>>, vector<8x512xf32>
    %cst = arith.constant dense<0.000000e+00> : vector<16x512xf32>
    %2 = tpu.matmul %0, %1, %cst {dimension_numbers = #tpu.dot_dimension_numbers<[1], [0], [0], [1], [0, 0, 1, 1], [], []>} : vector<16x8xf32>, vector<8x512xf32>, vector<16x512xf32> -> vector<16x512xf32>
    %c0_3 = arith.constant 0 : index
    %c0_4 = arith.constant 0 : index
    %3 = vector.load %arg3[%c0_3, %c0_4] : memref<1x512xf32, #tpu.memory_space<vmem>>, vector<1x512xf32>
    %4 = vector.broadcast %3 : vector<1x512xf32> to vector<16x512xf32>
    %5 = arith.addf %2, %4 : vector<16x512xf32>
    %cst_5 = arith.constant 0.000000e+00 : f32
    %6 = vector.broadcast %cst_5 : f32 to vector<16x512xf32>
    %7 = arith.maximumf %5, %6 : vector<16x512xf32>
    %c0_6 = arith.constant 0 : index
    %c0_7 = arith.constant 0 : index
    %8 = vector.load %arg4[%c0_6, %c0_7] : memref<512x512xf32, #tpu.memory_space<vmem>>, vector<512x512xf32>
    %cst_8 = arith.constant dense<0.000000e+00> : vector<16x512xf32>
    %9 = tpu.matmul %7, %8, %cst_8 {dimension_numbers = #tpu.dot_dimension_numbers<[1], [0], [0], [1], [0, 0, 1, 1], [], []>} : vector<16x512xf32>, vector<512x512xf32>, vector<16x512xf32> -> vector<16x512xf32>
    %c0_9 = arith.constant 0 : index
    %c0_10 = arith.constant 0 : index
    %10 = vector.load %arg5[%c0_9, %c0_10] : memref<1x512xf32, #tpu.memory_space<vmem>>, vector<1x512xf32>
    %11 = vector.broadcast %10 : vector<1x512xf32> to vector<16x512xf32>
    %12 = arith.addf %9, %11 : vector<16x512xf32>
    %cst_11 = arith.constant 0.000000e+00 : f32
    %13 = vector.broadcast %cst_11 : f32 to vector<16x512xf32>
    %14 = arith.maximumf %12, %13 : vector<16x512xf32>
    %c0_12 = arith.constant 0 : index
    %c0_13 = arith.constant 0 : index
    %15 = vector.load %arg6[%c0_12, %c0_13] : memref<512x1024xf32, #tpu.memory_space<vmem>>, vector<512x1024xf32>
    %cst_14 = arith.constant dense<0.000000e+00> : vector<16x1024xf32>
    %16 = tpu.matmul %14, %15, %cst_14 {dimension_numbers = #tpu.dot_dimension_numbers<[1], [0], [0], [1], [0, 0, 1, 1], [], []>} : vector<16x512xf32>, vector<512x1024xf32>, vector<16x1024xf32> -> vector<16x1024xf32>
    %c0_15 = arith.constant 0 : index
    %c0_16 = arith.constant 0 : index
    %17 = vector.load %arg7[%c0_15, %c0_16] : memref<1x1024xf32, #tpu.memory_space<vmem>>, vector<1x1024xf32>
    %18 = vector.broadcast %17 : vector<1x1024xf32> to vector<16x1024xf32>
    %19 = arith.addf %16, %18 : vector<16x1024xf32>
    %c0_17 = arith.constant 0 : index
    %c0_18 = arith.constant 0 : index
    %20 = vector.load %arg8[%c0_17, %c0_18] : memref<16x1024xf32, #tpu.memory_space<vmem>>, vector<16x1024xf32>
    tpu.vector_store %arg8[%c0_17, %c0_18], %19 {strides = array<i32>} : memref<16x1024xf32, #tpu.memory_space<vmem>>, vector<16x1024xf32>,
    return
  }
  func.func @transform_0(%arg0: i32) -> (i32, i32) {
    %c0_i32 = arith.constant 0 : i32
    %c0_i32_0 = arith.constant 0 : i32
    return %arg0, %c0_i32 : i32, i32
  }
  func.func @transform_1(%arg0: i32) -> (i32, i32) {
    %c0_i32 = arith.constant 0 : i32
    %c0_i32_0 = arith.constant 0 : i32
    %c0_i32_1 = arith.constant 0 : i32
    return %c0_i32, %c0_i32_0 : i32, i32
  }
  func.func @transform_2(%arg0: i32) -> (i32, i32) {
    %c0_i32 = arith.constant 0 : i32
    %c0_i32_0 = arith.constant 0 : i32
    %c0_i32_1 = arith.constant 0 : i32
    return %c0_i32, %c0_i32_0 : i32, i32
  }
  func.func @transform_3(%arg0: i32) -> (i32, i32) {
    %c0_i32 = arith.constant 0 : i32
    %c0_i32_0 = arith.constant 0 : i32
    %c0_i32_1 = arith.constant 0 : i32
    return %c0_i32, %c0_i32_0 : i32, i32
  }
  func.func @transform_4(%arg0: i32) -> (i32, i32) {
    %c0_i32 = arith.constant 0 : i32
    %c0_i32_0 = arith.constant 0 : i32
    %c0_i32_1 = arith.constant 0 : i32
    return %c0_i32, %c0_i32_0 : i32, i32
  }
  func.func @transform_5(%arg0: i32) -> (i32, i32) {
    %c0_i32 = arith.constant 0 : i32
    %c0_i32_0 = arith.constant 0 : i32
    %c0_i32_1 = arith.constant 0 : i32
    return %c0_i32, %c0_i32_0 : i32, i32
  }
  func.func @transform_6(%arg0: i32) -> (i32, i32) {
    %c0_i32 = arith.constant 0 : i32
    %c0_i32_0 = arith.constant 0 : i32
    %c0_i32_1 = arith.constant 0 : i32
    return %c0_i32, %c0_i32_0 : i32, i32
  }
  func.func @transform_7(%arg0: i32) -> (i32, i32) {
    %c0_i32 = arith.constant 0 : i32
    %c0_i32_0 = arith.constant 0 : i32
    return %arg0, %c0_i32 : i32, i32
  }
}

module attributes {stable_mosaic.version = 11 : i64} {
  func.func @mlp_kernel(%arg0: i32, %arg1: memref<16x8xf32, #tpu.memory_space<vmem>>, %arg2: memref<8x512xf32, #tpu.memory_space<vmem>>, %arg3: memref<1x512xf32, #tpu.memory_space<vmem>>, %arg4: memref<512x512xf32, #tpu.memory_space<vmem>>, %arg5: memref<1x512xf32, #tpu.memory_space<vmem>>, %arg6: memref<512x1024xf32, #tpu.memory_space<vmem>>, %arg7: memref<1x1024xf32, #tpu.memory_space<vmem>>, %arg8: memref<16x1024xf32, #tpu.memory_space<vmem>>) attributes {dimension_semantics = [#tpu.dimension_semantics<parallel>], iteration_bounds = array<i64: 1>, scalar_prefetch = 0 : i64, scratch_operands = 0 : i64, tpu.core_type = #tpu.core_type<tc>, window_params = [{transform_indices = @transform_0, window_bounds = array<i64: 16, 8>}, {pipeline_mode = #tpu.pipeline_mode<synchronous>, transform_indices = @transform_1, window_bounds = array<i64: 8, 512>}, {pipeline_mode = #tpu.pipeline_mode<synchronous>, transform_indices = @transform_2, window_bounds = array<i64: 1, 512>}, {pipeline_mode = #tpu.pipeline_mode<synchronous>, transform_indices = @transform_3, window_bounds = array<i64: 512, 512>}, {pipeline_mode = #tpu.pipeline_mode<synchronous>, transform_indices = @transform_4, window_bounds = array<i64: 1, 512>}, {pipeline_mode = #tpu.pipeline_mode<synchronous>, transform_indices = @transform_5, window_bounds = array<i64: 512, 1024>}, {pipeline_mode = #tpu.pipeline_mode<synchronous>, transform_indices = @transform_6, window_bounds = array<i64: 1, 1024>}, {transform_indices = @transform_7, window_bounds = array<i64: 16, 1024>}]} {
    %c0 = arith.constant 0 : index
    %c0_0 = arith.constant 0 : index
    %0 = vector.load %arg1[%c0, %c0_0] : memref<16x8xf32, #tpu.memory_space<vmem>>, vector<16x8xf32>
    %c0_1 = arith.constant 0 : index
    %c0_2 = arith.constant 0 : index
    %1 = vector.load %arg2[%c0_1, %c0_2] : memref<8x512xf32, #tpu.memory_space<vmem>>, vector<8x512xf32>
    %cst = arith.constant dense<0.000000e+00> : vector<16x512xf32>
    %2 = tpu.matmul %0, %1, %cst {dimension_numbers = #tpu.dot_dimension_numbers<[1], [0], [0], [1], [0, 0, 1, 1], [], []>} : vector<16x8xf32>, vector<8x512xf32>, vector<16x512xf32> -> vector<16x512xf32>
    %c0_3 = arith.constant 0 : index
    %c0_4 = arith.constant 0 : index
    %3 = vector.load %arg3[%c0_3, %c0_4] : memref<1x512xf32, #tpu.memory_space<vmem>>, vector<1x512xf32>
    %4 = vector.broadcast %3 : vector<1x512xf32> to vector<16x512xf32>
    %5 = arith.addf %2, %4 : vector<16x512xf32>
    %cst_5 = arith.constant 0.000000e+00 : f32
    %6 = vector.broadcast %cst_5 : f32 to vector<16x512xf32>
    %7 = arith.maximumf %5, %6 : vector<16x512xf32>
    %c0_6 = arith.constant 0 : index
    %c0_7 = arith.constant 0 : index
    %8 = vector.load %arg4[%c0_6, %c0_7] : memref<512x512xf32, #tpu.memory_space<vmem>>, vector<512x512xf32>
    %cst_8 = arith.constant dense<0.000000e+00> : vector<16x512xf32>
    %9 = tpu.matmul %7, %8, %cst_8 {dimension_numbers = #tpu.dot_dimension_numbers<[1], [0], [0], [1], [0, 0, 1, 1], [], []>} : vector<16x512xf32>, vector<512x512xf32>, vector<16x512xf32> -> vector<16x512xf32>
    %c0_9 = arith.constant 0 : index
    %c0_10 = arith.constant 0 : index
    %10 = vector.load %arg5[%c0_9, %c0_10] : memref<1x512xf32, #tpu.memory_space<vmem>>, vector<1x512xf32>
    %11 = vector.broadcast %10 : vector<1x512xf32> to vector<16x512xf32>
    %12 = arith.addf %9, %11 : vector<16x512xf32>
    %cst_11 = arith.constant 0.000000e+00 : f32
    %13 = vector.broadcast %cst_11 : f32 to vector<16x512xf32>
    %14 = arith.maximumf %12, %13 : vector<16x512xf32>
    %c0_12 = arith.constant 0 : index
    %c0_13 = arith.constant 0 : index
    %15 = vector.load %arg6[%c0_12, %c0_13] : memref<512x1024xf32, #tpu.memory_space<vmem>>, vector<512x1024xf32>
    %cst_14 = arith.constant dense<0.000000e+00> : vector<16x1024xf32>
    %16 = tpu.matmul %14, %15, %cst_14 {dimension_numbers = #tpu.dot_dimension_numbers<[1], [0], [0], [1], [0, 0, 1, 1], [], []>} : vector<16x512xf32>, vector<512x1024xf32>, vector<16x1024xf32> -> vector<16x1024xf32>
    %c0_15 = arith.constant 0 : index
    %c0_16 = arith.constant 0 : index
    %17 = vector.load %arg7[%c0_15, %c0_16] : memref<1x1024xf32, #tpu.memory_space<vmem>>, vector<1x1024xf32>
    %18 = vector.broadcast %17 : vector<1x1024xf32> to vector<16x1024xf32>
    %19 = arith.addf %16, %18 : vector<16x1024xf32>
    %c0_17 = arith.constant 0 : index
    %c0_18 = arith.constant 0 : index
    %20 = vector.load %arg8[%c0_17, %c0_18] : memref<16x1024xf32, #tpu.memory_space<vmem>>, vector<16x1024xf32>
    tpu.vector_store %arg8[%c0_17, %c0_18], %19 {strides = array<i32>} : memref<16x1024xf32, #tpu.memory_space<vmem>>, vector<16x1024xf32>,
    return
  }
  func.func @transform_0(%arg0: i32) -> (i32, i32) {
    %c0_i32 = arith.constant 0 : i32
    %c0_i32_0 = arith.constant 0 : i32
    return %arg0, %c0_i32 : i32, i32
  }
  func.func @transform_1(%arg0: i32) -> (i32, i32) {
    %c0_i32 = arith.constant 0 : i32
    %c0_i32_0 = arith.constant 0 : i32
    %c0_i32_1 = arith.constant 0 : i32
    return %c0_i32, %c0_i32_0 : i32, i32
  }
  func.func @transform_2(%arg0: i32) -> (i32, i32) {
    %c0_i32 = arith.constant 0 : i32
    %c0_i32_0 = arith.constant 0 : i32
    %c0_i32_1 = arith.constant 0 : i32
    return %c0_i32, %c0_i32_0 : i32, i32
  }
  func.func @transform_3(%arg0: i32) -> (i32, i32) {
    %c0_i32 = arith.constant 0 : i32
    %c0_i32_0 = arith.constant 0 : i32
    %c0_i32_1 = arith.constant 0 : i32
    return %c0_i32, %c0_i32_0 : i32, i32
  }
  func.func @transform_4(%arg0: i32) -> (i32, i32) {
    %c0_i32 = arith.constant 0 : i32
    %c0_i32_0 = arith.constant 0 : i32
    %c0_i32_1 = arith.constant 0 : i32
    return %c0_i32, %c0_i32_0 : i32, i32
  }
  func.func @transform_5(%arg0: i32) -> (i32, i32) {
    %c0_i32 = arith.constant 0 : i32
    %c0_i32_0 = arith.constant 0 : i32
    %c0_i32_1 = arith.constant 0 : i32
    return %c0_i32, %c0_i32_0 : i32, i32
  }
  func.func @transform_6(%arg0: i32) -> (i32, i32) {
    %c0_i32 = arith.constant 0 : i32
    %c0_i32_0 = arith.constant 0 : i32
    %c0_i32_1 = arith.constant 0 : i32
    return %c0_i32, %c0_i32_0 : i32, i32
  }
  func.func @transform_7(%arg0: i32) -> (i32, i32) {
    %c0_i32 = arith.constant 0 : i32
    %c0_i32_0 = arith.constant 0 : i32
    return %arg0, %c0_i32 : i32, i32
  }
}

</mosaic_0001>

<bundles_post_ra>
// kernel: tpu_custom_call.1
= control target key start
LH: loop header
LB: loop body
LE: loop exit
PB: predicated region body
PF: predicated region fallthrough
CT: control target
= control target key end

     0   :  { %12 = vsyncpa [#allocation3], 0  ;;  %s3369_s0 = inlined_call_operand.vmem [shape: f32[16,8], index: 0, kind: input, shape index: {}]   ;;  %s3370_s1 = inlined_call_operand.hbm [shape: f32[8,512], index: 1, kind: input, shape index: {}]   ;;  %s3371_s2 = inlined_call_operand.hbm [shape: f32[1,512], index: 2, kind: input, shape index: {}]   ;;  %s3372_s3 = inlined_call_operand.hbm [shape: f32[512,512], index: 3, kind: input, shape index: {}]   ;;  %s3373_s4 = inlined_call_operand.hbm [shape: f32[1,512], index: 4, kind: input, shape index: {}]   ;;  %s3374_s5 = inlined_call_operand.hbm [shape: f32[512,1024], index: 5, kind: input, shape index: {}]   ;;  %s3375_s6 = inlined_call_operand.hbm [shape: f32[1,1024], index: 6, kind: input, shape index: {}]   ;;  %s3376_s7 = inlined_call_operand.hbm [shape: f32[16,1024], index: 7, kind: output, shape index: {}]  }
   0x1   :  { %13 = vsyncpa [#allocation6], 0 }
   0x2   :  { %14 = vsyncpa [#allocation9], 0 }
   0x3   :  { %15 = vsyncpa [#allocation12], 0 }
   0x4   :  { %16 = vsyncpa [#allocation4], 0  ;;  %s3094_s24 = smov [#allocation5]   ;;  %s3095_s26 = smov [#allocation8]  }
   0x5   :  { %s35_s25 = sshll.u32 %s3094_s24, 4  ;;  %s57_s27 = sshll.u32 %s3095_s26, 4  ;;  %s36_s25 = int_to_ptr.vmem [resolvable:$true] %s35_s25  ;;  %s58_s27 = int_to_ptr.vmem [resolvable:$true] %s57_s27 }
   0x6   :  { %s2930_s30 = scalar_lea.hbm %s3371_s2, 64 }
   0x7   :  { %p2931_p0 = scmp.ne.s32.totalorder %s3371_s2, %s2930_s30  ;;  %p2934_p1 = scmp.lt.u32.totalorder %s2930_s30, %s3371_s2 }
   0x9   :  { %p2936_p2 = pnand %p2934_p1, %p2931_p0 }
   0xb   :  { %2939 = shalt.err (!%p2936_p2)
}
   0xc   :  { %s2940_s12 = scalar_lea.vmem %s36_s25, 64  ;;  %p2945_p4 = scmp.lt.s32.totalorder %s36_s25, %s36_s25 }
   0xd   :  { %p2941_p3 = scmp.ne.s32.totalorder %s36_s25, %s2940_s12  ;;  %p2946_p5 = scmp.lt.s32.totalorder %s2940_s12, %s2940_s12 }
   0xf   :  { %p2947_p6 = por %p2946_p5, %p2945_p4 }
  0x11   :  { %p2948_p7 = pnand %p2947_p6, %p2941_p3 }
  0x13   :  { %2951 = shalt.err (!%p2948_p7)
}
  0x14   :  { %38 = dma.hbm_to_vmem [thread:$0]  %s3371_s2, 64, %s36_s25, [#allocation6]  }
  0x15   :  { %s2952_s17 = scalar_lea.hbm %s3373_s4, 64 }
  0x16   :  { %p2953_p8 = scmp.ne.s32.totalorder %s3373_s4, %s2952_s17  ;;  %p2956_p9 = scmp.lt.u32.totalorder %s2952_s17, %s3373_s4 }
  0x18   :  { %p2958_p10 = pnand %p2956_p9, %p2953_p8 }
  0x1a   :  { %2961 = shalt.err (!%p2958_p10)
}
  0x1b   :  { %s2962_s22 = scalar_lea.vmem %s58_s27, 64  ;;  %p2967_p12 = scmp.lt.s32.totalorder %s58_s27, %s58_s27 }
  0x1c   :  { %p2963_p11 = scmp.ne.s32.totalorder %s58_s27, %s2962_s22  ;;  %p2968_p13 = scmp.lt.s32.totalorder %s2962_s22, %s2962_s22 }
  0x1e   :  { %p2969_p0 = por %p2968_p13, %p2967_p12 }
  0x20   :  { %p2970_p1 = pnand %p2969_p0, %p2963_p11 }
  0x22   :  { %2973 = shalt.err (!%p2970_p1)
}
  0x23   :  { %60 = dma.hbm_to_vmem [thread:$0]  %s3373_s4, 64, %s58_s27, [#allocation9]  }
  0x24   :  { %s3096_s24 = smov [#allocation2]   ;;  %s3097_s26 = smov [#allocation7]  }
  0x25   :  { %s25_s25 = sshll.u32 %s3096_s24, 4  ;;  %s44_s28 = sshll.u32 %s3097_s26, 4  ;;  %s26_s25 = int_to_ptr.vmem [resolvable:$true] %s25_s25  ;;  %s3170_s28 = int_to_ptr.vmem [resolvable:$true] %s44_s28 }
  0x26   :  { %s2974_s8 = scalar_lea.hbm %s3370_s1, 512 }
  0x27   :  { %p2975_p2 = scmp.ne.s32.totalorder %s3370_s1, %s2974_s8  ;;  %p2978_p3 = scmp.lt.u32.totalorder %s2974_s8, %s3370_s1 }
  0x29   :  { %p2980_p4 = pnand %p2978_p3, %p2975_p2 }
  0x2b   :  { %2983 = shalt.err (!%p2980_p4)
}
  0x2c   :  { %s2984_s4 = scalar_lea.vmem %s26_s25, 512  ;;  %p2989_p6 = scmp.lt.s32.totalorder %s26_s25, %s26_s25 }
  0x2d   :  { %p2985_p5 = scmp.ne.s32.totalorder %s26_s25, %s2984_s4  ;;  %p2990_p7 = scmp.lt.s32.totalorder %s2984_s4, %s2984_s4 }
  0x2f   :  { %p2991_p8 = por %p2990_p7, %p2989_p6 }
  0x31   :  { %p2992_p9 = pnand %p2991_p8, %p2985_p5 }
  0x33   :  { %2995 = shalt.err (!%p2992_p9)
}
  0x34   :  { %28 = dma.hbm_to_vmem [thread:$0]  %s3370_s1, 512, %s26_s25, [#allocation3]  }
  0x35   :  { %s2996_s16 = scalar_lea.hbm %s3372_s3, 32768 }
  0x36   :  { %p2997_p10 = scmp.ne.s32.totalorder %s3372_s3, %s2996_s16  ;;  %p3000_p11 = scmp.lt.u32.totalorder %s2996_s16, %s3372_s3 }
  0x38   :  { %p3002_p12 = pnand %p3000_p11, %p2997_p10 }
  0x3a   :  { %3005 = shalt.err (!%p3002_p12)
}
  0x3b   :  { %s3006_s21 = scalar_lea.vmem %s3170_s28, 32768  ;;  %p3011_p0 = scmp.lt.s32.totalorder %s3170_s28, %s3170_s28 }
  0x3c   :  { %p3007_p13 = scmp.ne.s32.totalorder %s3170_s28, %s3006_s21  ;;  %p3012_p1 = scmp.lt.s32.totalorder %s3006_s21, %s3006_s21 }
  0x3e   :  { %p3013_p2 = por %p3012_p1, %p3011_p0 }
  0x40   :  { %p3014_p3 = pnand %p3013_p2, %p3007_p13 }
  0x42   :  { %3017 = shalt.err (!%p3014_p3)
}
  0x43   :  { %s3098_s1 = smov 512   ;;  %s3099_s22 = smov 32  }
  0x44   :  { %50 = dma.hbm_to_vmem [thread:$0]  %s3372_s3, 32768, %s3170_s28, [#allocation6], %s3098_s1, %s3098_s1, %s3099_s22  }
  0x45   :  { %s3100_s24 = smov [#allocation10]   ;;  %s3018_s30 = scalar_lea.hbm %s3374_s5, 65536 }
  0x46   :  { %s66_s25 = sshll.u32 %s3100_s24, 4  ;;  %p3019_p4 = scmp.ne.s32.totalorder %s3374_s5, %s3018_s30  ;;  %s67_s25 = int_to_ptr.vmem [resolvable:$true] %s66_s25 }
  0x47   :  { %p3022_p5 = scmp.lt.u32.totalorder %s3018_s30, %s3374_s5 }
  0x49   :  { %p3024_p6 = pnand %p3022_p5, %p3019_p4 }
  0x4b   :  { %3027 = shalt.err (!%p3024_p6)
}
  0x4c   :  { %s3028_s12 = scalar_lea.vmem %s67_s25, 65536  ;;  %p3033_p8 = scmp.lt.s32.totalorder %s67_s25, %s67_s25 }
  0x4d   :  { %p3029_p7 = scmp.ne.s32.totalorder %s67_s25, %s3028_s12  ;;  %p3034_p9 = scmp.lt.s32.totalorder %s3028_s12, %s3028_s12 }
  0x4f   :  { %p3035_p10 = por %p3034_p9, %p3033_p8 }
  0x51   :  { %p3036_p11 = pnand %p3035_p10, %p3029_p7 }
  0x53   :  { %3039 = shalt.err (!%p3036_p11)
}
  0x54   :  { %s3101_s3 = smov 1024   ;;  %s3102_s28 = smov 64  }
  0x55   :  { %72 = dma.hbm_to_vmem [thread:$0]  %s3374_s5, 65536, %s67_s25, [#allocation9], %s3101_s3, %s3101_s3, %s3102_s28  }
  0x56   :  { %s3103_s13 = smov [#allocation11]   ;;  %s3040_s17 = scalar_lea.hbm %s3375_s6, 128 }
  0x57   :  { %s79_s14 = sshll.u32 %s3103_s13, 4  ;;  %p3041_p12 = scmp.ne.s32.totalorder %s3375_s6, %s3040_s17  ;;  %s80_s14 = int_to_ptr.vmem [resolvable:$true] %s79_s14 }
  0x58   :  { %p3044_p13 = scmp.lt.u32.totalorder %s3040_s17, %s3375_s6 }
  0x5a   :  { %p3046_p0 = pnand %p3044_p13, %p3041_p12 }
  0x5c   :  { %3049 = shalt.err (!%p3046_p0)
}
  0x5d   :  { %s3050_s1 = scalar_lea.vmem %s80_s14, 128  ;;  %p3055_p2 = scmp.lt.s32.totalorder %s80_s14, %s80_s14 }
  0x5e   :  { %p3051_p1 = scmp.ne.s32.totalorder %s80_s14, %s3050_s1  ;;  %p3056_p3 = scmp.lt.s32.totalorder %s3050_s1, %s3050_s1 }
  0x60   :  { %p3057_p4 = por %p3056_p3, %p3055_p2 }
  0x62   :  { %p3058_p5 = pnand %p3057_p4, %p3051_p1 }
  0x64   :  { %3061 = shalt.err (!%p3058_p5)
}
  0x65   :  { %82 = dma.hbm_to_vmem [thread:$0]  %s3375_s6, 128, %s80_s14, [#allocation12]  }
  0x66   :  { %3084 = dma.done.wait [#allocation3], 512  }
  0x67   :  { %3085 = vsyncadd [#allocation3], 4294966784 }
  0x68   :  { %3086 = dma.done.wait [#allocation6], 32832  }
  0x69   :  { %3087 = vsyncadd [#allocation6], 4294934464 }
  0x6a   :  { %3088 = dma.done.wait [#allocation9], 65600  }
  0x6b   :  { %3089 = vsyncadd [#allocation9], 4294901696 }
  0x6c   :  { %3090 = dma.done.wait [#allocation12], 128  }
  0x6d   :  { %3091 = vsyncadd [#allocation12], 4294967168  ;;  %v3104_v0 = vmov 0.0   ;;  %v104_v1 = vld [vmem:[#allocation2 + $0x8] sm:$0xff]  ;;  %v103_v2 = vld [vmem:[#allocation2] sm:$0xff]  ;;  %vm129_vm0 = vcmask 64512  }
  0x6e   :  { %200 = vmatprep.mubr.f32.mxu0 %v3104_v0  ;;  %277 = vmatprep.mubr.f32.mxu1 %v3104_v0  ;;  %v101_v3 = vld [vmem:[%s3369_s0] sm:$0xff]  ;;  %v106_v4 = vld [vmem:[#allocation2 + $0x18] sm:$0xff]  ;;  %v105_v5 = vld [vmem:[#allocation2 + $0x10] sm:$0xff] }
  0x6f   :  { %136 = vmatprep.subr.mxu0 %v104_v1  ;;  %v102_v6 = vld [vmem:[%s3369_s0 + $0x8] sm:$0xff]  ;;  %213 = vmatprep.subr.mxu1 %v106_v4  ;;  %v301_v9 = vld [vmem:[#allocation7 + $0x18] sm:$0xff]  ;;  %v300_v16 = vld [vmem:[#allocation7 + $0x10] sm:$0xff]  ;;  %s3105_s0 = smov [#allocation13]  }
  0x70   :  { %137 = vmatpush1.msra.mxu0 %v103_v2  ;;  %v299_v7 = vld [vmem:[#allocation7 + $0x8] sm:$0xff]  ;;  %214 = vmatpush1.msra.mxu1 %v105_v5  ;;  %v305_v11 = vld [vmem:[#allocation7 + $0x38] sm:$0xff]  ;;  %v298_v12 = vld [vmem:[#allocation7] sm:$0xff]  ;;  %s2083_s25 = sshll.u32 %s3105_s0, 4  ;;  %s2084_s25 = int_to_ptr.vmem [resolvable:$true] %s2083_s25 }
  0x71   :  { %v303_v8 = vld [vmem:[#allocation7 + $0x28] sm:$0xff]  ;;  %2098 = vmatmul.mubr.msk.f32.vlgmr.msra.gmra.mrb[0].mxu0 %vm129_vm0, %v101_v3  ;;  %v302_v13 = vld [vmem:[#allocation7 + $0x20] sm:$0xff]  ;;  %2100 = vmatmul.mubr.msk.f32.vlgmr.msra.gmra.mrb[0].mxu1 %vm129_vm0, %v101_v3  ;;  %v2230_v14 = vpack.c.bf16 %v305_v11, %v301_v9  ;;  %v304_v17 = vld [vmem:[#allocation7 + $0x30] sm:$0xff]  ;;  %s3062_s26 = scalar_lea.vmem %s2084_s25, 2048  ;;  %p3067_p7 = scmp.lt.s32.totalorder %s2084_s25, %s2084_s25 }
  0x72   :  { %v2102_v10 = vpack.c.bf16 %v303_v8, %v299_v7  ;;  %206 = vmatprep.mubr.f32.mxu0 %v3104_v0  ;;  %v2104_v15 = vpack.c.bf16 %v302_v13, %v298_v12  ;;  %v307_v18 = vld [vmem:[#allocation7 + $0x48] sm:$0xff]  ;;  %283 = vmatprep.mubr.f32.mxu1 %v3104_v0  ;;  %v2232_v19 = vpack.c.bf16 %v304_v17, %v300_v16  ;;  %v309_v21 = vld [vmem:[#allocation7 + $0x58] sm:$0xff]  ;;  %v306_v25 = vld [vmem:[#allocation7 + $0x40] sm:$0xff]  ;;  %p3063_p6 = scmp.ne.s32.totalorder %s2084_s25, %s3062_s26  ;;  %p3068_p8 = scmp.lt.s32.totalorder %s3062_s26, %s3062_s26 }
  0x73   :  { %v311_v20 = vld [vmem:[#allocation7 + $0x68] sm:$0xff]  ;;  %v313_v22 = vld [vmem:[#allocation7 + $0x78] sm:$0xff]  ;;  %2231 = vmatprep.subr.bf16.mxu1 %v2230_v14  ;;  %v310_v26 = vld [vmem:[#allocation7 + $0x60] sm:$0xff] }
  0x74   :  { %2103 = vmatprep.subr.bf16.mxu0 %v2102_v10  ;;  %v2106_v23 = vpack.c.bf16 %v311_v20, %v307_v18  ;;  %v2234_v24 = vpack.c.bf16 %v313_v22, %v309_v21  ;;  %v308_v27 = vld [vmem:[#allocation7 + $0x50] sm:$0xff]  ;;  %2233 = vmatpush1.bf16.msra.mxu1 %v2232_v19  ;;  %v2108_v28 = vpack.c.bf16 %v310_v26, %v306_v25  ;;  %v315_v30 = vld [vmem:[#allocation7 + $0x88] sm:$0xff]  ;;  %v317_v34 = vld [vmem:[#allocation7 + $0x98] sm:$0xff]  ;;  %p3069_p9 = por %p3068_p8, %p3067_p7 }
  0x75   :  { %2105 = vmatpush1.bf16.msra.mxu0 %v2104_v15  ;;  %v312_v29 = vld [vmem:[#allocation7 + $0x70] sm:$0xff]  ;;  %v319_v31 = vld [vmem:[#allocation7 + $0xa8] sm:$0xff]  ;;  %2101 = vmatmul.mubr.msk.f32.gmra.mrb[2].mxu1 %vm129_vm0, %v102_v6  ;;  %v321_v35 = vld [vmem:[#allocation7 + $0xb8] sm:$0xff] }
  0x76   :  { %2099 = vmatmul.mubr.msk.f32.gmra.mrb[2].mxu0 %vm129_vm0, %v102_v6  ;;  %2107 = vmatprep.subr.bf16.mxu0 %v2106_v23  ;;  %v2236_v32 = vpack.c.bf16 %v312_v29, %v308_v27  ;;  %v2110_v33 = vpack.c.bf16 %v319_v31, %v315_v30  ;;  %v314_v36 = vld [vmem:[#allocation7 + $0x80] sm:$0xff]  ;;  %v2238_v37 = vpack.c.bf16 %v321_v35, %v317_v34  ;;  %v316_v39 = vld [vmem:[#allocation7 + $0x90] sm:$0xff]  ;;  %v323_v42 = vld [vmem:[#allocation7 + $0xc8] sm:$0xff]  ;;  %p3070_p10 = pnand %p3069_p9, %p3063_p6 }
  0x77   :  { %2235 = vmatprep.subr.bf16.mxu1 %v2234_v24  ;;  %v318_v38 = vld [vmem:[#allocation7 + $0xa0] sm:$0xff]  ;;  %v320_v40 = vld [vmem:[#allocation7 + $0xb0] sm:$0xff]  ;;  %v327_v43 = vld [vmem:[#allocation7 + $0xe8] sm:$0xff] }
  0x78   :  { %v2112_v41 = vpack.c.bf16 %v318_v38, %v314_v36  ;;  %v325_v44 = vld [vmem:[#allocation7 + $0xd8] sm:$0xff]  ;;  %2237 = vmatpush1.bf16.msra.mxu1 %v2236_v32  ;;  %v2240_v45 = vpack.c.bf16 %v320_v40, %v316_v39  ;;  %v2114_v46 = vpack.c.bf16 %v327_v43, %v323_v42  ;;  %v322_v48 = vld [vmem:[#allocation7 + $0xc0] sm:$0xff]  ;;  %v324_v51 = vld [vmem:[#allocation7 + $0xd0] sm:$0xff] }
  0x79   :  { %2109 = vmatpush1.bf16.msra.mxu0 %v2108_v28  ;;  %v329_v47 = vld [vmem:[#allocation7 + $0xf8] sm:$0xff]  ;;  %v326_v49 = vld [vmem:[#allocation7 + $0xe0] sm:$0xff]  ;;  %2239 = vmatprep.subr.bf16.mxu1 %v2238_v37  ;;  %v328_v52 = vld [vmem:[#allocation7 + $0xf0] sm:$0xff] }
  0x7a   :  { %2111 = vmatprep.subr.bf16.mxu0 %v2110_v33  ;;  %v2242_v50 = vpack.c.bf16 %v329_v47, %v325_v44  ;;  %v331_v53 = vld [vmem:[#allocation7 + $0x108] sm:$0xff]  ;;  %v333_v55 = vld [vmem:[#allocation7 + $0x118] sm:$0xff]  ;;  %v2116_v57 = vpack.c.bf16 %v326_v49, %v322_v48  ;;  %v2244_v58 = vpack.c.bf16 %v328_v52, %v324_v51  ;;  %v330_v60 = vld [vmem:[#allocation7 + $0x100] sm:$0xff] }
  0x7b   :  { %v335_v54 = vld [vmem:[#allocation7 + $0x128] sm:$0xff]  ;;  %v337_v56 = vld [vmem:[#allocation7 + $0x138] sm:$0xff]  ;;  %v334_v61 = vld [vmem:[#allocation7 + $0x120] sm:$0xff] }
  0x7c   :  { %2241 = vmatpush1.bf16.msra.mxu1 %v2240_v45  ;;  %v2118_v59 = vpack.c.bf16 %v335_v54, %v331_v53  ;;  %v332_v62 = vld [vmem:[#allocation7 + $0x110] sm:$0xff]  ;;  %v2246_v63 = vpack.c.bf16 %v337_v56, %v333_v55  ;;  %v339_v1 = vld [vmem:[#allocation7 + $0x148] sm:$0xff]  ;;  %v341_v3 = vld [vmem:[#allocation7 + $0x158] sm:$0xff]  ;;  %v2120_v5 = vpack.c.bf16 %v334_v61, %v330_v60 }
  0x7d   :  { %2113 = vmatpush1.bf16.msra.mxu0 %v2112_v41  ;;  %2243 = vmatprep.subr.bf16.mxu1 %v2242_v50  ;;  %v336_v0 = vld [vmem:[#allocation7 + $0x130] sm:$0xff]  ;;  %v343_v2 = vld [vmem:[#allocation7 + $0x168] sm:$0xff]  ;;  %v345_v4 = vld [vmem:[#allocation7 + $0x178] sm:$0xff] }
  0x7e   :  { %2115 = vmatprep.subr.bf16.mxu0 %v2114_v46  ;;  %v2248_v6 = vpack.c.bf16 %v336_v0, %v332_v62  ;;  %v2122_v7 = vpack.c.bf16 %v343_v2, %v339_v1  ;;  %v338_v8 = vld [vmem:[#allocation7 + $0x140] sm:$0xff]  ;;  %v340_v10 = vld [vmem:[#allocation7 + $0x150] sm:$0xff]  ;;  %v2250_v11 = vpack.c.bf16 %v345_v4, %v341_v3  ;;  %v347_v13 = vld [vmem:[#allocation7 + $0x188] sm:$0xff] }
  0x7f   :  { %v342_v9 = vld [vmem:[#allocation7 + $0x160] sm:$0xff]  ;;  %v344_v12 = vld [vmem:[#allocation7 + $0x170] sm:$0xff]  ;;  %v351_v14 = vld [vmem:[#allocation7 + $0x1a8] sm:$0xff] }
  0x80   :  { %2245 = vmatpush1.bf16.msra.mxu1 %v2244_v58  ;;  %v349_v15 = vld [vmem:[#allocation7 + $0x198] sm:$0xff]  ;;  %v2124_v17 = vpack.c.bf16 %v342_v9, %v338_v8  ;;  %v2252_v18 = vpack.c.bf16 %v344_v12, %v340_v10  ;;  %v2126_v19 = vpack.c.bf16 %v351_v14, %v347_v13  ;;  %v346_v20 = vld [vmem:[#allocation7 + $0x180] sm:$0xff]  ;;  %v348_v22 = vld [vmem:[#allocation7 + $0x190] sm:$0xff] }
  0x81   :  { %2117 = vmatpush1.bf16.msra.mxu0 %v2116_v57  ;;  %2247 = vmatprep.subr.bf16.mxu1 %v2246_v63  ;;  %v353_v16 = vld [vmem:[#allocation7 + $0x1b8] sm:$0xff]  ;;  %v350_v21 = vld [vmem:[#allocation7 + $0x1a0] sm:$0xff]  ;;  %v352_v24 = vld [vmem:[#allocation7 + $0x1b0] sm:$0xff] }
  0x82   :  { %2119 = vmatprep.subr.bf16.mxu0 %v2118_v59  ;;  %v2254_v23 = vpack.c.bf16 %v353_v16, %v349_v15  ;;  %v355_v25 = vld [vmem:[#allocation7 + $0x1c8] sm:$0xff]  ;;  %v357_v27 = vld [vmem:[#allocation7 + $0x1d8] sm:$0xff]  ;;  %v2128_v29 = vpack.c.bf16 %v350_v21, %v346_v20  ;;  %v2256_v30 = vpack.c.bf16 %v352_v24, %v348_v22  ;;  %v354_v32 = vld [vmem:[#allocation7 + $0x1c0] sm:$0xff] }
  0x83   :  { %v359_v26 = vld [vmem:[#allocation7 + $0x1e8] sm:$0xff]  ;;  %v361_v28 = vld [vmem:[#allocation7 + $0x1f8] sm:$0xff]  ;;  %v358_v33 = vld [vmem:[#allocation7 + $0x1e0] sm:$0xff] }
  0x84   :  { %2249 = vmatpush1.bf16.msra.mxu1 %v2248_v6  ;;  %v2130_v31 = vpack.c.bf16 %v359_v26, %v355_v25  ;;  %v356_v34 = vld [vmem:[#allocation7 + $0x1d0] sm:$0xff]  ;;  %v2258_v35 = vpack.c.bf16 %v361_v28, %v357_v27  ;;  %v363_v37 = vld [vmem:[#allocation7 + $0x208] sm:$0xff]  ;;  %v365_v39 = vld [vmem:[#allocation7 + $0x218] sm:$0xff]  ;;  %v2132_v41 = vpack.c.bf16 %v358_v33, %v354_v32 }
  0x85   :  { %2121 = vmatpush1.bf16.msra.mxu0 %v2120_v5  ;;  %2251 = vmatprep.subr.bf16.mxu1 %v2250_v11  ;;  %v360_v36 = vld [vmem:[#allocation7 + $0x1f0] sm:$0xff]  ;;  %v367_v38 = vld [vmem:[#allocation7 + $0x228] sm:$0xff]  ;;  %v369_v40 = vld [vmem:[#allocation7 + $0x238] sm:$0xff] }
  0x86   :  { %2123 = vmatprep.subr.bf16.mxu0 %v2122_v7  ;;  %v2260_v42 = vpack.c.bf16 %v360_v36, %v356_v34  ;;  %v2134_v43 = vpack.c.bf16 %v367_v38, %v363_v37  ;;  %v362_v44 = vld [vmem:[#allocation7 + $0x200] sm:$0xff]  ;;  %v364_v46 = vld [vmem:[#allocation7 + $0x210] sm:$0xff]  ;;  %v2262_v47 = vpack.c.bf16 %v369_v40, %v365_v39  ;;  %v371_v49 = vld [vmem:[#allocation7 + $0x248] sm:$0xff] }
  0x87   :  { %v366_v45 = vld [vmem:[#allocation7 + $0x220] sm:$0xff]  ;;  %v368_v48 = vld [vmem:[#allocation7 + $0x230] sm:$0xff]  ;;  %v375_v50 = vld [vmem:[#allocation7 + $0x268] sm:$0xff] }
  0x88   :  { %2253 = vmatpush1.bf16.msra.mxu1 %v2252_v18  ;;  %v373_v51 = vld [vmem:[#allocation7 + $0x258] sm:$0xff]  ;;  %v2136_v53 = vpack.c.bf16 %v366_v45, %v362_v44  ;;  %v2264_v54 = vpack.c.bf16 %v368_v48, %v364_v46  ;;  %v2138_v55 = vpack.c.bf16 %v375_v50, %v371_v49  ;;  %v370_v56 = vld [vmem:[#allocation7 + $0x240] sm:$0xff]  ;;  %v372_v58 = vld [vmem:[#allocation7 + $0x250] sm:$0xff] }
  0x89   :  { %2125 = vmatpush1.bf16.msra.mxu0 %v2124_v17  ;;  %2255 = vmatprep.subr.bf16.mxu1 %v2254_v23  ;;  %v377_v52 = vld [vmem:[#allocation7 + $0x278] sm:$0xff]  ;;  %v374_v57 = vld [vmem:[#allocation7 + $0x260] sm:$0xff]  ;;  %v376_v60 = vld [vmem:[#allocation7 + $0x270] sm:$0xff] }
  0x8a   :  { %2127 = vmatprep.subr.bf16.mxu0 %v2126_v19  ;;  %v2266_v59 = vpack.c.bf16 %v377_v52, %v373_v51  ;;  %v379_v61 = vld [vmem:[#allocation7 + $0x288] sm:$0xff]  ;;  %v381_v63 = vld [vmem:[#allocation7 + $0x298] sm:$0xff]  ;;  %v2140_v1 = vpack.c.bf16 %v374_v57, %v370_v56  ;;  %v2268_v2 = vpack.c.bf16 %v376_v60, %v372_v58  ;;  %v378_v4 = vld [vmem:[#allocation7 + $0x280] sm:$0xff] }
  0x8b   :  { %v383_v62 = vld [vmem:[#allocation7 + $0x2a8] sm:$0xff]  ;;  %v385_v0 = vld [vmem:[#allocation7 + $0x2b8] sm:$0xff]  ;;  %v382_v5 = vld [vmem:[#allocation7 + $0x2a0] sm:$0xff] }
  0x8c   :  { %2257 = vmatpush1.bf16.msra.mxu1 %v2256_v30  ;;  %v2142_v3 = vpack.c.bf16 %v383_v62, %v379_v61  ;;  %v380_v6 = vld [vmem:[#allocation7 + $0x290] sm:$0xff]  ;;  %v2270_v7 = vpack.c.bf16 %v385_v0, %v381_v63  ;;  %v387_v9 = vld [vmem:[#allocation7 + $0x2c8] sm:$0xff]  ;;  %v389_v11 = vld [vmem:[#allocation7 + $0x2d8] sm:$0xff]  ;;  %v2144_v13 = vpack.c.bf16 %v382_v5, %v378_v4 }
  0x8d   :  { %2129 = vmatpush1.bf16.msra.mxu0 %v2128_v29  ;;  %2259 = vmatprep.subr.bf16.mxu1 %v2258_v35  ;;  %v384_v8 = vld [vmem:[#allocation7 + $0x2b0] sm:$0xff]  ;;  %v391_v10 = vld [vmem:[#allocation7 + $0x2e8] sm:$0xff]  ;;  %v393_v12 = vld [vmem:[#allocation7 + $0x2f8] sm:$0xff] }
  0x8e   :  { %2131 = vmatprep.subr.bf16.mxu0 %v2130_v31  ;;  %v2272_v14 = vpack.c.bf16 %v384_v8, %v380_v6  ;;  %v2146_v15 = vpack.c.bf16 %v391_v10, %v387_v9  ;;  %v386_v16 = vld [vmem:[#allocation7 + $0x2c0] sm:$0xff]  ;;  %v388_v18 = vld [vmem:[#allocation7 + $0x2d0] sm:$0xff]  ;;  %v2274_v19 = vpack.c.bf16 %v393_v12, %v389_v11  ;;  %v395_v21 = vld [vmem:[#allocation7 + $0x308] sm:$0xff] }
  0x8f   :  { %v390_v17 = vld [vmem:[#allocation7 + $0x2e0] sm:$0xff]  ;;  %v392_v20 = vld [vmem:[#allocation7 + $0x2f0] sm:$0xff]  ;;  %v399_v22 = vld [vmem:[#allocation7 + $0x328] sm:$0xff] }
  0x90   :  { %2261 = vmatpush1.bf16.msra.mxu1 %v2260_v42  ;;  %v397_v23 = vld [vmem:[#allocation7 + $0x318] sm:$0xff]  ;;  %v2148_v25 = vpack.c.bf16 %v390_v17, %v386_v16  ;;  %v2276_v26 = vpack.c.bf16 %v392_v20, %v388_v18  ;;  %v2150_v27 = vpack.c.bf16 %v399_v22, %v395_v21  ;;  %v394_v28 = vld [vmem:[#allocation7 + $0x300] sm:$0xff]  ;;  %v396_v30 = vld [vmem:[#allocation7 + $0x310] sm:$0xff] }
  0x91   :  { %2133 = vmatpush1.bf16.msra.mxu0 %v2132_v41  ;;  %2263 = vmatprep.subr.bf16.mxu1 %v2262_v47  ;;  %v401_v24 = vld [vmem:[#allocation7 + $0x338] sm:$0xff]  ;;  %v398_v29 = vld [vmem:[#allocation7 + $0x320] sm:$0xff]  ;;  %v400_v32 = vld [vmem:[#allocation7 + $0x330] sm:$0xff] }
  0x92   :  { %2135 = vmatprep.subr.bf16.mxu0 %v2134_v43  ;;  %v2278_v31 = vpack.c.bf16 %v401_v24, %v397_v23  ;;  %v403_v33 = vld [vmem:[#allocation7 + $0x348] sm:$0xff]  ;;  %v405_v35 = vld [vmem:[#allocation7 + $0x358] sm:$0xff]  ;;  %v2152_v37 = vpack.c.bf16 %v398_v29, %v394_v28  ;;  %v2280_v38 = vpack.c.bf16 %v400_v32, %v396_v30  ;;  %v402_v40 = vld [vmem:[#allocation7 + $0x340] sm:$0xff] }
  0x93   :  { %v407_v34 = vld [vmem:[#allocation7 + $0x368] sm:$0xff]  ;;  %v409_v36 = vld [vmem:[#allocation7 + $0x378] sm:$0xff]  ;;  %v406_v41 = vld [vmem:[#allocation7 + $0x360] sm:$0xff] }
  0x94   :  { %2265 = vmatpush1.bf16.msra.mxu1 %v2264_v54  ;;  %v2154_v39 = vpack.c.bf16 %v407_v34, %v403_v33  ;;  %v404_v42 = vld [vmem:[#allocation7 + $0x350] sm:$0xff]  ;;  %v2282_v43 = vpack.c.bf16 %v409_v36, %v405_v35  ;;  %v411_v45 = vld [vmem:[#allocation7 + $0x388] sm:$0xff]  ;;  %v413_v47 = vld [vmem:[#allocation7 + $0x398] sm:$0xff]  ;;  %v2156_v49 = vpack.c.bf16 %v406_v41, %v402_v40 }
  0x95   :  { %2137 = vmatpush1.bf16.msra.mxu0 %v2136_v53  ;;  %2267 = vmatprep.subr.bf16.mxu1 %v2266_v59  ;;  %v408_v44 = vld [vmem:[#allocation7 + $0x370] sm:$0xff]  ;;  %v415_v46 = vld [vmem:[#allocation7 + $0x3a8] sm:$0xff]  ;;  %v417_v48 = vld [vmem:[#allocation7 + $0x3b8] sm:$0xff] }
  0x96   :  { %2139 = vmatprep.subr.bf16.mxu0 %v2138_v55  ;;  %v2284_v50 = vpack.c.bf16 %v408_v44, %v404_v42  ;;  %v2158_v51 = vpack.c.bf16 %v415_v46, %v411_v45  ;;  %v410_v52 = vld [vmem:[#allocation7 + $0x380] sm:$0xff]  ;;  %v2286_v54 = vpack.c.bf16 %v417_v48, %v413_v47  ;;  %v412_v55 = vld [vmem:[#allocation7 + $0x390] sm:$0xff]  ;;  %v419_v59 = vld [vmem:[#allocation7 + $0x3c8] sm:$0xff] }
  0x97   :  { %v414_v53 = vld [vmem:[#allocation7 + $0x3a0] sm:$0xff]  ;;  %v416_v56 = vld [vmem:[#allocation7 + $0x3b0] sm:$0xff]  ;;  %v423_v60 = vld [vmem:[#allocation7 + $0x3e8] sm:$0xff] }
  0x98   :  { %2269 = vmatpush1.bf16.msra.mxu1 %v2268_v2  ;;  %v2160_v57 = vpack.c.bf16 %v414_v53, %v410_v52  ;;  %v2288_v58 = vpack.c.bf16 %v416_v56, %v412_v55  ;;  %v421_v61 = vld [vmem:[#allocation7 + $0x3d8] sm:$0xff]  ;;  %v2162_v62 = vpack.c.bf16 %v423_v60, %v419_v59  ;;  %v418_v0 = vld [vmem:[#allocation7 + $0x3c0] sm:$0xff]  ;;  %v420_v4 = vld [vmem:[#allocation7 + $0x3d0] sm:$0xff] }
  0x99   :  { %2141 = vmatpush1.bf16.msra.mxu0 %v2140_v1  ;;  %2271 = vmatprep.subr.bf16.mxu1 %v2270_v7  ;;  %v425_v63 = vld [vmem:[#allocation7 + $0x3f8] sm:$0xff]  ;;  %v422_v1 = vld [vmem:[#allocation7 + $0x3e0] sm:$0xff]  ;;  %v424_v5 = vld [vmem:[#allocation7 + $0x3f0] sm:$0xff] }
  0x9a   :  { %2143 = vmatprep.subr.bf16.mxu0 %v2142_v3  ;;  %v2290_v2 = vpack.c.bf16 %v425_v63, %v421_v61  ;;  %v2164_v3 = vpack.c.bf16 %v422_v1, %v418_v0  ;;  %v2292_v6 = vpack.c.bf16 %v424_v5, %v420_v4  ;;  %v427_v7 = vld [vmem:[#allocation7 + $0x408] sm:$0xff]  ;;  %v429_v9 = vld [vmem:[#allocation7 + $0x418] sm:$0xff]  ;;  %v426_v22 = vld [vmem:[#allocation7 + $0x400] sm:$0xff] }
  0x9b   :  { %v431_v8 = vld [vmem:[#allocation7 + $0x428] sm:$0xff]  ;;  %v433_v11 = vld [vmem:[#allocation7 + $0x438] sm:$0xff]  ;;  %v430_v23 = vld [vmem:[#allocation7 + $0x420] sm:$0xff] }
  0x9c   :  { %2273 = vmatpush1.bf16.msra.mxu1 %v2272_v14  ;;  %v2166_v10 = vpack.c.bf16 %v431_v8, %v427_v7  ;;  %v2294_v12 = vpack.c.bf16 %v433_v11, %v429_v9  ;;  %v3243_v16 = vld [vmem:[#allocation5] sm:$0xf]  ;;  %v435_v28 = vld [vmem:[#allocation7 + $0x448] sm:$0xff]  ;;  %v438_v40 = vld [vmem:[#allocation7 + $0x460] sm:$0xff] }
  0x9d   :  { %2145 = vmatpush1.bf16.msra.mxu0 %v2144_v13  ;;  %2275 = vmatprep.subr.bf16.mxu1 %v2274_v19  ;;  %v109_v13 = vlaneseq  ;;  %v437_v32 = vld [vmem:[#allocation7 + $0x458] sm:$0xff]  ;;  %v436_v45 = vld [vmem:[#allocation7 + $0x450] sm:$0xff]  ;;  %v443_v47 = vld [vmem:[#allocation7 + $0x488] sm:$0xff] }
  0x9e   :  { %2147 = vmatprep.subr.bf16.mxu0 %v2146_v15  ;;  %v441_v33 = vld [vmem:[#allocation7 + $0x478] sm:$0xff]  ;;  %v440_v46 = vld [vmem:[#allocation7 + $0x470] sm:$0xff]  ;;  %v442_v60 = vld [vmem:[#allocation7 + $0x480] sm:$0xff] }
  0x9f   :  { %v3238_v14 = vshrl.u32 %v109_v13, 7  ;;  %v2298_v44 = vpack.c.bf16 %v441_v33, %v437_v32  ;;  %v445_v52 = vld [vmem:[#allocation7 + $0x498] sm:$0xff]  ;;  %v2300_v59 = vpack.c.bf16 %v440_v46, %v436_v45  ;;  %v446_v61 = vld [vmem:[#allocation7 + $0x4a0] sm:$0xff]  ;;  %v444_v1 = vld [vmem:[#allocation7 + $0x490] sm:$0xff] }
  0xa0   :  { %2277 = vmatpush1.bf16.msra.mxu1 %v2276_v26  ;;  %v428_v26 = vld [vmem:[#allocation7 + $0x410] sm:$0xff]  ;;  %v449_v53 = vld [vmem:[#allocation7 + $0x4b8] sm:$0xff]  ;;  %v455_v4 = vld [vmem:[#allocation7 + $0x4e8] sm:$0xff]  ;;  %v2176_v8 = vpack.c.bf16 %v446_v61, %v442_v60 }
  0xa1   :  { %2149 = vmatpush1.bf16.msra.mxu0 %v2148_v25  ;;  %2279 = vmatprep.subr.bf16.mxu1 %v2278_v31  ;;  %v3241_v15 = vsub.s32 0, %v3238_v14  ;;  %v3246_v17 = vsub.s32 1, %v3238_v14  ;;  %v3253_v20 = vsub.s32 3, %v3238_v14  ;;  %v439_v31 = vld [vmem:[#allocation7 + $0x468] sm:$0xff]  ;;  %v2302_v0 = vpack.c.bf16 %v449_v53, %v445_v52  ;;  %v453_v5 = vld [vmem:[#allocation7 + $0x4d8] sm:$0xff]  ;;  %v454_v11 = vld [vmem:[#allocation7 + $0x4e0] sm:$0xff] }
  0xa2   :  { %2151 = vmatprep.subr.bf16.mxu0 %v2150_v27  ;;  %v432_v27 = vld [vmem:[#allocation7 + $0x430] sm:$0xff]  ;;  %v483_v61 = vld [vmem:[#allocation7 + $0x5c8] sm:$0xff] }
  0xa3   :  { %v112_v18 = vrot.slane %v3243_v16, %v3241_v15  ;;  %v116_v19 = vrot.slane %v3243_v16, %v3246_v17  ;;  %v3259_v34 = vrot.slane %v3243_v16, %v3253_v20  ;;  %v460_v32 = vld [vmem:[#allocation7 + $0x510] sm:$0xff] }
  0xa4   :  { %2281 = vmatpush1.bf16.msra.mxu1 %v2280_v38  ;;  %v2296_v38 = vpack.c.bf16 %v432_v27, %v428_v26  ;;  %v458_v27 = vld [vmem:[#allocation7 + $0x500] sm:$0xff]  ;;  %v464_v33 = vld [vmem:[#allocation7 + $0x530] sm:$0xff] }
  0xa5   :  { %2153 = vmatpush1.bf16.msra.mxu0 %v2152_v37  ;;  %2283 = vmatprep.subr.bf16.mxu1 %v2282_v43  ;;  %v2168_v37 = vpack.c.bf16 %v430_v23, %v426_v22  ;;  %v2170_v43 = vpack.c.bf16 %v439_v31, %v435_v28  ;;  %v463_v22 = vld [vmem:[#allocation7 + $0x528] sm:$0xff]  ;;  %v461_v23 = vld [vmem:[#allocation7 + $0x518] sm:$0xff]  ;;  %v462_v28 = vld [vmem:[#allocation7 + $0x520] sm:$0xff] }
  0xa6   :  { %2155 = vmatprep.subr.bf16.mxu0 %v2154_v39  ;;  %v434_v39 = vld [vmem:[#allocation7 + $0x440] sm:$0xff]  ;;  %v468_v45 = vld [vmem:[#allocation7 + $0x550] sm:$0xff] }
  0xa7   :  { %v472_v46 = vld [vmem:[#allocation7 + $0x570] sm:$0xff] }
  0xa8   :  { %2285 = vmatpush1.bf16.msra.mxu1 %v2284_v50  ;;  %v2316_v53 = vpack.c.bf16 %v472_v46, %v468_v45  ;;  %v480_v60 = vld [vmem:[#allocation7 + $0x5b0] sm:$0xff]  ;;  %v506_v46 = vld [vmem:[#allocation7 + $0x680] sm:$0xff] }
  0xa9   :  { %2157 = vmatpush1.bf16.msra.mxu0 %v2156_v49  ;;  %2287 = vmatprep.subr.bf16.mxu1 %v2286_v54 }
  0xaa   :  { %2159 = vmatprep.subr.bf16.mxu0 %v2158_v51  ;;  %v447_v51 = vld [vmem:[#allocation7 + $0x4a8] sm:$0xff] }
  0xab   :  { %v2174_v63 = vpack.c.bf16 %v447_v51, %v443_v47  ;;  %v475_v47 = vld [vmem:[#allocation7 + $0x588] sm:$0xff]  ;;  %v481_v51 = vld [vmem:[#allocation7 + $0x5b8] sm:$0xff] }
  0xac   :  { %2289 = vmatpush1.bf16.msra.mxu1 %v2288_v58  ;;  %v2172_v58 = vpack.c.bf16 %v438_v40, %v434_v39  ;;  %v2184_v39 = vpack.c.bf16 %v462_v28, %v458_v27  ;;  %v2312_v40 = vpack.c.bf16 %v464_v33, %v460_v32  ;;  %v503_v27 = vld [vmem:[#allocation7 + $0x668] sm:$0xff]  ;;  %v501_v28 = vld [vmem:[#allocation7 + $0x658] sm:$0xff]  ;;  %v498_v33 = vld [vmem:[#allocation7 + $0x640] sm:$0xff] }
  0xad   :  { %2161 = vmatpush1.bf16.msra.mxu0 %v2160_v57  ;;  %2291 = vmatprep.subr.bf16.mxu1 %v2290_v2  ;;  %v448_v2 = vld [vmem:[#allocation7 + $0x4b0] sm:$0xff] }
  0xae   :  { %2163 = vmatprep.subr.bf16.mxu0 %v2162_v62  ;;  %v2304_v9 = vpack.c.bf16 %v448_v2, %v444_v1 }
  0xb0   :  { %2293 = vmatpush1.bf16.msra.mxu1 %v2292_v6  ;;  %v457_v6 = vld [vmem:[#allocation7 + $0x4f8] sm:$0xff] }
  0xb1   :  { %2165 = vmatpush1.bf16.msra.mxu0 %v2164_v3  ;;  %2295 = vmatprep.subr.bf16.mxu1 %v2294_v12  ;;  %v451_v3 = vld [vmem:[#allocation7 + $0x4c8] sm:$0xff]  ;;  %v2306_v13 = vpack.c.bf16 %v457_v6, %v453_v5 }
  0xb2   :  { %2167 = vmatprep.subr.bf16.mxu0 %v2166_v10  ;;  %v450_v10 = vld [vmem:[#allocation7 + $0x4c0] sm:$0xff]  ;;  %v2178_v12 = vpack.c.bf16 %v455_v4, %v451_v3 }
  0xb3   :  { %v482_v3 = vld [vmem:[#allocation7 + $0x5c0] sm:$0xff] }
  0xb4   :  { %v486_v4 = vld [vmem:[#allocation7 + $0x5e0] sm:$0xff] }
 0x144   :  { %v202_v21 = vpop.f32.mrb[0].mxu0  ;;  %v3255_v29 = vpop.f32.mrb[0].mxu1 }
 0x145   :  { %v203_v24 = vadd.f32 %v202_v21, %v112_v18  ;;  %v204_v25 = vpop.f32.mrb[1].mxu0  ;;  %v281_v35 = vpop.f32.mrb[1].mxu1  ;;  %v459_v21 = vld [vmem:[#allocation7 + $0x508] sm:$0xff] }
 0x146   :  { %v205_v30 = vadd.f32 %v204_v25, %v116_v19  ;;  %v282_v55 = vadd.f32 %v281_v35, %v3259_v34  ;;  %v2180_v25 = vpack.c.bf16 %v454_v11, %v450_v10  ;;  %v467_v35 = vld [vmem:[#allocation7 + $0x548] sm:$0xff]  ;;  %v493_v11 = vld [vmem:[#allocation7 + $0x618] sm:$0xff] }
 0x147   :  { %v290_v42 = vmax.f32 %v203_v24, 0.0  ;;  %v465_v24 = vld [vmem:[#allocation7 + $0x538] sm:$0xff]  ;;  %v495_v10 = vld [vmem:[#allocation7 + $0x628] sm:$0xff] }
 0x148   :  { %v291_v36 = vmax.f32 %v205_v30, 0.0  ;;  %v3261_v50 = vpop.f32.mrb[2].mxu1  ;;  %v293_v7 = vmax.f32 %v282_v55, 0.0  ;;  %v2182_v30 = vpack.c.bf16 %v463_v22, %v459_v21  ;;  %v2310_v31 = vpack.c.bf16 %v465_v24, %v461_v23  ;;  %v478_v55 = vld [vmem:[#allocation7 + $0x5a0] sm:$0xff]  ;;  %v492_v24 = vld [vmem:[#allocation7 + $0x610] sm:$0xff] }
 0x149   :  { %v208_v41 = vpop.f32.mrb[2].mxu0  ;;  %v3264_v56 = vpop.f32.mrb[3].mxu1  ;;  %v494_v21 = vld [vmem:[#allocation7 + $0x620] sm:$0xff] }
 0x14a   :  { %v209_v48 = vadd.f32 %v208_v41, %v112_v18  ;;  %v210_v49 = vpop.f32.mrb[3].mxu0  ;;  %640 = vmatprep.mubr.f32.mxu0 %v291_v36  ;;  %794 = vmatprep.mubr.f32.mxu1 %v291_v36  ;;  %v452_v18 = vld [vmem:[#allocation7 + $0x4d0] sm:$0xff]  ;;  %v471_v36 = vld [vmem:[#allocation7 + $0x568] sm:$0xff]  ;;  %v466_v41 = vld [vmem:[#allocation7 + $0x540] sm:$0xff] }
 0x14b   :  { %v211_v54 = vadd.f32 %v210_v49, %v116_v19  ;;  %641 = vmatmul.mubr.f32.vlgmr.msra.gmra.mrb[4].mxu0 %v290_v42  ;;  %795 = vmatmul.mubr.f32.vlgmr.msra.gmra.mrb[4].mxu1 %v290_v42  ;;  %v456_v19 = vld [vmem:[#allocation7 + $0x4f0] sm:$0xff]  ;;  %v470_v42 = vld [vmem:[#allocation7 + $0x560] sm:$0xff]  ;;  %v477_v49 = vld [vmem:[#allocation7 + $0x598] sm:$0xff] }
 0x14c   :  { %v294_v57 = vmax.f32 %v209_v48, 0.0  ;;  %2169 = vmatpush1.bf16.msra.mxu0 %v2168_v37  ;;  %2297 = vmatpush1.bf16.msra.mxu1 %v2296_v38  ;;  %v2308_v26 = vpack.c.bf16 %v456_v19, %v452_v18  ;;  %v469_v37 = vld [vmem:[#allocation7 + $0x558] sm:$0xff]  ;;  %v479_v48 = vld [vmem:[#allocation7 + $0x5a8] sm:$0xff]  ;;  %v2188_v52 = vpack.c.bf16 %v470_v42, %v466_v41  ;;  %v490_v19 = vld [vmem:[#allocation7 + $0x600] sm:$0xff] }
 0x14d   :  { %v295_v62 = vmax.f32 %v211_v54, 0.0  ;;  %2171 = vmatprep.subr.bf16.mxu0 %v2170_v43  ;;  %2299 = vmatprep.subr.bf16.mxu1 %v2298_v44  ;;  %v473_v38 = vld [vmem:[#allocation7 + $0x578] sm:$0xff]  ;;  %v2186_v43 = vpack.c.bf16 %v471_v36, %v467_v35  ;;  %v474_v54 = vld [vmem:[#allocation7 + $0x580] sm:$0xff]  ;;  %v511_v41 = vld [vmem:[#allocation7 + $0x6a8] sm:$0xff] }
 0x14e   :  { %v2314_v44 = vpack.c.bf16 %v473_v38, %v469_v37  ;;  %v2192_v1 = vpack.c.bf16 %v478_v55, %v474_v54  ;;  %v502_v35 = vld [vmem:[#allocation7 + $0x660] sm:$0xff]  ;;  %v500_v38 = vld [vmem:[#allocation7 + $0x650] sm:$0xff]  ;;  %v509_v42 = vld [vmem:[#allocation7 + $0x698] sm:$0xff] }
 0x14f   :  { %646 = vmatprep.mubr.f32.mxu0 %v295_v62  ;;  %800 = vmatprep.mubr.f32.mxu1 %v295_v62  ;;  %v487_v62 = vld [vmem:[#allocation7 + $0x5e8] sm:$0xff]  ;;  %v517_v55 = vld [vmem:[#allocation7 + $0x6d8] sm:$0xff] }
 0x150   :  { %647 = vmatmul.mubr.f32.gmra.mrb[6].mxu0 %v294_v57  ;;  %801 = vmatmul.mubr.f32.gmra.mrb[6].mxu1 %v294_v57  ;;  %v2190_v57 = vpack.c.bf16 %v479_v48, %v475_v47  ;;  %v2194_v5 = vpack.c.bf16 %v487_v62, %v483_v61  ;;  %v510_v47 = vld [vmem:[#allocation7 + $0x6a0] sm:$0xff]  ;;  %v519_v54 = vld [vmem:[#allocation7 + $0x6e8] sm:$0xff] }
 0x151   :  { %2173 = vmatpush1.bf16.msra.mxu0 %v2172_v58  ;;  %2301 = vmatpush1.bf16.msra.mxu1 %v2300_v59  ;;  %v2318_v58 = vpack.c.bf16 %v481_v51, %v477_v49  ;;  %v476_v59 = vld [vmem:[#allocation7 + $0x590] sm:$0xff]  ;;  %v518_v61 = vld [vmem:[#allocation7 + $0x6e0] sm:$0xff] }
 0x152   :  { %2175 = vmatprep.subr.bf16.mxu0 %v2174_v63  ;;  %2303 = vmatprep.subr.bf16.mxu1 %v2302_v0  ;;  %v485_v63 = vld [vmem:[#allocation7 + $0x5d8] sm:$0xff]  ;;  %v2320_v2 = vpack.c.bf16 %v480_v60, %v476_v59  ;;  %v508_v51 = vld [vmem:[#allocation7 + $0x690] sm:$0xff]  ;;  %v514_v60 = vld [vmem:[#allocation7 + $0x6c0] sm:$0xff] }
 0x153   :  { %717 = vmatprep.mubr.f32.mxu0 %v293_v7  ;;  %871 = vmatprep.mubr.f32.mxu1 %v293_v7  ;;  %v489_v0 = vld [vmem:[#allocation7 + $0x5f8] sm:$0xff]  ;;  %v484_v7 = vld [vmem:[#allocation7 + $0x5d0] sm:$0xff] }
 0x154   :  { %v2322_v6 = vpack.c.bf16 %v489_v0, %v485_v63  ;;  %v516_v0 = vld [vmem:[#allocation7 + $0x6d0] sm:$0xff] }
 0x155   :  { %2177 = vmatpush1.bf16.msra.mxu0 %v2176_v8  ;;  %2305 = vmatpush1.bf16.msra.mxu1 %v2304_v9  ;;  %v488_v8 = vld [vmem:[#allocation7 + $0x5f0] sm:$0xff]  ;;  %v491_v9 = vld [vmem:[#allocation7 + $0x608] sm:$0xff] }
 0x156   :  { %2179 = vmatprep.subr.bf16.mxu0 %v2178_v12  ;;  %2307 = vmatprep.subr.bf16.mxu1 %v2306_v13  ;;  %v497_v12 = vld [vmem:[#allocation7 + $0x638] sm:$0xff]  ;;  %v2196_v13 = vpack.c.bf16 %v486_v4, %v482_v3  ;;  %v2324_v18 = vpack.c.bf16 %v488_v8, %v484_v7  ;;  %v2198_v22 = vpack.c.bf16 %v495_v10, %v491_v9  ;;  %v527_v3 = vld [vmem:[#allocation7 + $0x728] sm:$0xff]  ;;  %v522_v8 = vld [vmem:[#allocation7 + $0x700] sm:$0xff] }
 0x157   :  { %v2326_v23 = vpack.c.bf16 %v497_v12, %v493_v11  ;;  %v525_v4 = vld [vmem:[#allocation7 + $0x718] sm:$0xff]  ;;  %v526_v9 = vld [vmem:[#allocation7 + $0x720] sm:$0xff]  ;;  %v524_v12 = vld [vmem:[#allocation7 + $0x710] sm:$0xff] }
 0x159   :  { %2181 = vmatpush1.bf16.msra.mxu0 %v2180_v25  ;;  %2309 = vmatpush1.bf16.msra.mxu1 %v2308_v26  ;;  %v496_v25 = vld [vmem:[#allocation7 + $0x630] sm:$0xff]  ;;  %v499_v26 = vld [vmem:[#allocation7 + $0x648] sm:$0xff] }
 0x15a   :  { %2183 = vmatprep.subr.bf16.mxu0 %v2182_v30  ;;  %2311 = vmatprep.subr.bf16.mxu1 %v2310_v31  ;;  %v505_v30 = vld [vmem:[#allocation7 + $0x678] sm:$0xff]  ;;  %v2200_v31 = vpack.c.bf16 %v494_v21, %v490_v19  ;;  %v2328_v32 = vpack.c.bf16 %v496_v25, %v492_v24  ;;  %v2202_v36 = vpack.c.bf16 %v503_v27, %v499_v26  ;;  %v535_v19 = vld [vmem:[#allocation7 + $0x768] sm:$0xff]  ;;  %v530_v25 = vld [vmem:[#allocation7 + $0x740] sm:$0xff] }
 0x15b   :  { %v2330_v37 = vpack.c.bf16 %v505_v30, %v501_v28  ;;  %v533_v21 = vld [vmem:[#allocation7 + $0x758] sm:$0xff]  ;;  %v534_v26 = vld [vmem:[#allocation7 + $0x760] sm:$0xff]  ;;  %v532_v30 = vld [vmem:[#allocation7 + $0x750] sm:$0xff] }
 0x15d   :  { %2185 = vmatpush1.bf16.msra.mxu0 %v2184_v39  ;;  %2313 = vmatpush1.bf16.msra.mxu1 %v2312_v40  ;;  %v504_v39 = vld [vmem:[#allocation7 + $0x670] sm:$0xff]  ;;  %v507_v40 = vld [vmem:[#allocation7 + $0x688] sm:$0xff] }
 0x15e   :  { %2187 = vmatprep.subr.bf16.mxu0 %v2186_v43  ;;  %2315 = vmatprep.subr.bf16.mxu1 %v2314_v44  ;;  %v513_v43 = vld [vmem:[#allocation7 + $0x6b8] sm:$0xff]  ;;  %v2204_v44 = vpack.c.bf16 %v502_v35, %v498_v33  ;;  %v2332_v45 = vpack.c.bf16 %v504_v39, %v500_v38  ;;  %v2206_v48 = vpack.c.bf16 %v511_v41, %v507_v40  ;;  %v543_v33 = vld [vmem:[#allocation7 + $0x7a8] sm:$0xff]  ;;  %v538_v39 = vld [vmem:[#allocation7 + $0x780] sm:$0xff]  ;;  %v3267_v41 = vsub.s32 2, %v3238_v14 }
 0x15f   :  { %v2334_v49 = vpack.c.bf16 %v513_v43, %v509_v42  ;;  %v541_v35 = vld [vmem:[#allocation7 + $0x798] sm:$0xff]  ;;  %v542_v40 = vld [vmem:[#allocation7 + $0x7a0] sm:$0xff] }
 0x161   :  { %2189 = vmatpush1.bf16.msra.mxu0 %v2188_v52  ;;  %2317 = vmatpush1.bf16.msra.mxu1 %v2316_v53  ;;  %v512_v52 = vld [vmem:[#allocation7 + $0x6b0] sm:$0xff]  ;;  %v515_v53 = vld [vmem:[#allocation7 + $0x6c8] sm:$0xff] }
 0x162   :  { %2191 = vmatprep.subr.bf16.mxu0 %v2190_v57  ;;  %2319 = vmatprep.subr.bf16.mxu1 %v2318_v58  ;;  %v521_v57 = vld [vmem:[#allocation7 + $0x6f8] sm:$0xff]  ;;  %v2208_v58 = vpack.c.bf16 %v510_v47, %v506_v46  ;;  %v2336_v59 = vpack.c.bf16 %v512_v52, %v508_v51  ;;  %v2210_v62 = vpack.c.bf16 %v519_v54, %v515_v53  ;;  %v547_v46 = vld [vmem:[#allocation7 + $0x7c8] sm:$0xff]  ;;  %v546_v53 = vld [vmem:[#allocation7 + $0x7c0] sm:$0xff] }
 0x163   :  { %v2338_v63 = vpack.c.bf16 %v521_v57, %v517_v55  ;;  %v551_v47 = vld [vmem:[#allocation7 + $0x7e8] sm:$0xff]  ;;  %v2224_v51 = vpack.c.bf16 %v542_v40, %v538_v39  ;;  %v550_v54 = vld [vmem:[#allocation7 + $0x7e0] sm:$0xff]  ;;  %v120_v55 = vrot.slane %v3243_v16, %v3267_v41  ;;  %v926_v39 = vld [vmem:[#allocation10 + $0x110] sm:$0xff] }
 0x164   :  { %v2226_v57 = vpack.c.bf16 %v551_v47, %v547_v46  ;;  %v934_v40 = vld [vmem:[#allocation10 + $0x150] sm:$0xff] }
 0x165   :  { %2193 = vmatpush1.bf16.msra.mxu0 %v2192_v1  ;;  %2321 = vmatpush1.bf16.msra.mxu1 %v2320_v2  ;;  %v520_v1 = vld [vmem:[#allocation7 + $0x6f0] sm:$0xff]  ;;  %v523_v2 = vld [vmem:[#allocation7 + $0x708] sm:$0xff]  ;;  %v2496_v47 = vpack.c.bf16 %v934_v40, %v926_v39 }
 0x166   :  { %2195 = vmatprep.subr.bf16.mxu0 %v2194_v5  ;;  %2323 = vmatprep.subr.bf16.mxu1 %v2322_v6  ;;  %v529_v5 = vld [vmem:[#allocation7 + $0x738] sm:$0xff]  ;;  %v2212_v6 = vpack.c.bf16 %v518_v61, %v514_v60  ;;  %v2340_v7 = vpack.c.bf16 %v520_v1, %v516_v0  ;;  %v2214_v10 = vpack.c.bf16 %v527_v3, %v523_v2  ;;  %v552_v60 = vld [vmem:[#allocation7 + $0x7f0] sm:$0xff] }
 0x167   :  { %v2342_v11 = vpack.c.bf16 %v529_v5, %v525_v4  ;;  %v893_v61 = vld [vmem:[#allocation10 + $0x8] sm:$0xff]  ;;  %v903_v0 = vld [vmem:[#allocation10 + $0x58] sm:$0xff]  ;;  %v2228_v1 = vpack.c.bf16 %v550_v54, %v546_v53  ;;  %v288_v3 = vadd.f32 %v3264_v56, %v3259_v34  ;;  %v280_v4 = vadd.f32 %v3255_v29, %v120_v55  ;;  %v942_v53 = vld [vmem:[#allocation10 + $0x190] sm:$0xff] }
 0x168   :  { %v950_v54 = vld [vmem:[#allocation10 + $0x1d0] sm:$0xff] }
 0x169   :  { %2197 = vmatpush1.bf16.msra.mxu0 %v2196_v13  ;;  %2325 = vmatpush1.bf16.msra.mxu1 %v2324_v18  ;;  %v528_v13 = vld [vmem:[#allocation7 + $0x730] sm:$0xff]  ;;  %v531_v18 = vld [vmem:[#allocation7 + $0x748] sm:$0xff]  ;;  %v292_v34 = vmax.f32 %v280_v4, 0.0 }
 0x16a   :  { %2199 = vmatprep.subr.bf16.mxu0 %v2198_v22  ;;  %2327 = vmatprep.subr.bf16.mxu1 %v2326_v23  ;;  %v537_v22 = vld [vmem:[#allocation7 + $0x778] sm:$0xff]  ;;  %v2216_v23 = vpack.c.bf16 %v526_v9, %v522_v8  ;;  %v2344_v24 = vpack.c.bf16 %v528_v13, %v524_v12  ;;  %v2218_v27 = vpack.c.bf16 %v535_v19, %v531_v18  ;;  %v917_v12 = vld [vmem:[#allocation10 + $0xc8] sm:$0xff]  ;;  %v297_v19 = vmax.f32 %v288_v3, 0.0 }
 0x16b   :  { %v2346_v28 = vpack.c.bf16 %v537_v22, %v533_v21  ;;  %v894_v8 = vld [vmem:[#allocation10 + $0x10] sm:$0xff]  ;;  %v911_v13 = vld [vmem:[#allocation10 + $0x98] sm:$0xff]  ;;  %v908_v21 = vld [vmem:[#allocation10 + $0x80] sm:$0xff] }
 0x16c   :  { %v902_v9 = vld [vmem:[#allocation10 + $0x50] sm:$0xff]  ;;  %v919_v18 = vld [vmem:[#allocation10 + $0xd8] sm:$0xff]  ;;  %v916_v22 = vld [vmem:[#allocation10 + $0xc0] sm:$0xff] }
 0x16d   :  { %2201 = vmatpush1.bf16.msra.mxu0 %v2200_v31  ;;  %2329 = vmatpush1.bf16.msra.mxu1 %v2328_v32  ;;  %v536_v31 = vld [vmem:[#allocation7 + $0x770] sm:$0xff]  ;;  %v539_v32 = vld [vmem:[#allocation7 + $0x788] sm:$0xff]  ;;  %v2488_v56 = vpack.c.bf16 %v902_v9, %v894_v8 }
 0x16e   :  { %2203 = vmatprep.subr.bf16.mxu0 %v2202_v36  ;;  %2331 = vmatprep.subr.bf16.mxu1 %v2330_v37  ;;  %v545_v36 = vld [vmem:[#allocation7 + $0x7b8] sm:$0xff]  ;;  %v2220_v37 = vpack.c.bf16 %v534_v26, %v530_v25  ;;  %v2348_v38 = vpack.c.bf16 %v536_v31, %v532_v30  ;;  %v2222_v42 = vpack.c.bf16 %v543_v33, %v539_v32  ;;  %v973_v4 = vld [vmem:[#allocation10 + $0x288] sm:$0xff]  ;;  %v972_v9 = vld [vmem:[#allocation10 + $0x280] sm:$0xff] }
 0x16f   :  { %v2350_v43 = vpack.c.bf16 %v545_v36, %v541_v35  ;;  %v910_v25 = vld [vmem:[#allocation10 + $0x90] sm:$0xff]  ;;  %v927_v30 = vld [vmem:[#allocation10 + $0x118] sm:$0xff]  ;;  %v2364_v32 = vpack.c.bf16 %v916_v22, %v908_v21  ;;  %v924_v35 = vld [vmem:[#allocation10 + $0x100] sm:$0xff] }
 0x170   :  { %v918_v26 = vld [vmem:[#allocation10 + $0xd0] sm:$0xff]  ;;  %v935_v31 = vld [vmem:[#allocation10 + $0x158] sm:$0xff]  ;;  %v932_v36 = vld [vmem:[#allocation10 + $0x140] sm:$0xff] }
 0x171   :  { %2205 = vmatpush1.bf16.msra.mxu0 %v2204_v44  ;;  %2333 = vmatpush1.bf16.msra.mxu1 %v2332_v45  ;;  %v540_v44 = vld [vmem:[#allocation7 + $0x790] sm:$0xff]  ;;  %v2492_v33 = vpack.c.bf16 %v918_v26, %v910_v25  ;;  %v2368_v46 = vpack.c.bf16 %v932_v36, %v924_v35  ;;  %v1004_v36 = vld [vmem:[#allocation10 + $0x380] sm:$0xff] }
 0x172   :  { %2207 = vmatprep.subr.bf16.mxu0 %v2206_v48  ;;  %2335 = vmatprep.subr.bf16.mxu1 %v2334_v49  ;;  %v544_v45 = vld [vmem:[#allocation7 + $0x7b0] sm:$0xff]  ;;  %v549_v48 = vld [vmem:[#allocation7 + $0x7d8] sm:$0xff] }
 0x173   :  { %v553_v49 = vld [vmem:[#allocation7 + $0x7f8] sm:$0xff]  ;;  %v2352_v52 = vpack.c.bf16 %v544_v45, %v540_v44 }
 0x174   :  { %v943_v44 = vld [vmem:[#allocation10 + $0x198] sm:$0xff]  ;;  %v966_v3 = vld [vmem:[#allocation10 + $0x250] sm:$0xff] }
 0x175   :  { %2209 = vmatpush1.bf16.msra.mxu0 %v2208_v58  ;;  %2337 = vmatpush1.bf16.msra.mxu1 %v2336_v59  ;;  %v2354_v58 = vpack.c.bf16 %v553_v49, %v549_v48  ;;  %v548_v59 = vld [vmem:[#allocation7 + $0x7d0] sm:$0xff]  ;;  %v951_v45 = vld [vmem:[#allocation10 + $0x1d8] sm:$0xff]  ;;  %v940_v48 = vld [vmem:[#allocation10 + $0x180] sm:$0xff] }
 0x176   :  { %2211 = vmatprep.subr.bf16.mxu0 %v2210_v62  ;;  %2339 = vmatprep.subr.bf16.mxu1 %v2338_v63  ;;  %v901_v62 = vld [vmem:[#allocation10 + $0x48] sm:$0xff]  ;;  %v895_v63 = vld [vmem:[#allocation10 + $0x18] sm:$0xff]  ;;  %v2356_v2 = vpack.c.bf16 %v552_v60, %v548_v59  ;;  %v948_v49 = vld [vmem:[#allocation10 + $0x1c0] sm:$0xff] }
 0x177   :  { %v2358_v16 = vpack.c.bf16 %v901_v62, %v893_v61  ;;  %v2486_v5 = vpack.c.bf16 %v903_v0, %v895_v63  ;;  %v967_v59 = vld [vmem:[#allocation10 + $0x258] sm:$0xff]  ;;  %v2372_v60 = vpack.c.bf16 %v948_v49, %v940_v48  ;;  %v2500_v61 = vpack.c.bf16 %v950_v54, %v942_v53  ;;  %v956_v62 = vld [vmem:[#allocation10 + $0x200] sm:$0xff]  ;;  %v1006_v40 = vld [vmem:[#allocation10 + $0x390] sm:$0xff] }
 0x178   :  { %v964_v63 = vld [vmem:[#allocation10 + $0x240] sm:$0xff]  ;;  %v1022_v54 = vld [vmem:[#allocation10 + $0x410] sm:$0xff] }
 0x179   :  { %2213 = vmatpush1.bf16.msra.mxu0 %v2212_v6  ;;  %2341 = vmatpush1.bf16.msra.mxu1 %v2340_v7  ;;  %v892_v6 = vld [vmem:[#allocation10] sm:$0xff] }
 0x17a   :  { %2215 = vmatprep.subr.bf16.mxu0 %v2214_v10  ;;  %2343 = vmatprep.subr.bf16.mxu1 %v2342_v11  ;;  %v900_v7 = vld [vmem:[#allocation10 + $0x40] sm:$0xff]  ;;  %v909_v10 = vld [vmem:[#allocation10 + $0x88] sm:$0xff]  ;;  %v286_v11 = vadd.f32 %v3261_v50, %v120_v55 }
 0x17b   :  { %v2360_v29 = vpack.c.bf16 %v900_v7, %v892_v6  ;;  %v933_v50 = vld [vmem:[#allocation10 + $0x148] sm:$0xff]  ;;  %v983_v6 = vld [vmem:[#allocation10 + $0x2d8] sm:$0xff]  ;;  %v2376_v7 = vpack.c.bf16 %v964_v63, %v956_v62  ;;  %v1020_v49 = vld [vmem:[#allocation10 + $0x400] sm:$0xff] }
 0x17c   :  { %v957_v55 = vld [vmem:[#allocation10 + $0x208] sm:$0xff]  ;;  %v1036_v63 = vld [vmem:[#allocation10 + $0x480] sm:$0xff] }
 0x17d   :  { %2217 = vmatpush1.bf16.msra.mxu0 %v2216_v23  ;;  %2345 = vmatpush1.bf16.msra.mxu1 %v2344_v24  ;;  %v2362_v23 = vpack.c.bf16 %v917_v12, %v909_v10  ;;  %v2490_v24 = vpack.c.bf16 %v919_v18, %v911_v13  ;;  %v980_v10 = vld [vmem:[#allocation10 + $0x2c0] sm:$0xff]  ;;  %v974_v13 = vld [vmem:[#allocation10 + $0x290] sm:$0xff] }
 0x17e   :  { %2219 = vmatprep.subr.bf16.mxu0 %v2218_v27  ;;  %2347 = vmatprep.subr.bf16.mxu1 %v2346_v28  ;;  %v925_v27 = vld [vmem:[#allocation10 + $0x108] sm:$0xff]  ;;  %v296_v28 = vmax.f32 %v286_v11, 0.0  ;;  %v982_v18 = vld [vmem:[#allocation10 + $0x2d0] sm:$0xff]  ;;  %v2380_v21 = vpack.c.bf16 %v980_v10, %v972_v9  ;;  %v1052_v10 = vld [vmem:[#allocation10 + $0x500] sm:$0xff] }
 0x17f   :  { %v2508_v22 = vpack.c.bf16 %v982_v18, %v974_v13  ;;  %v1054_v18 = vld [vmem:[#allocation10 + $0x510] sm:$0xff] }
 0x181   :  { %2221 = vmatpush1.bf16.msra.mxu0 %v2220_v37  ;;  %2349 = vmatpush1.bf16.msra.mxu1 %v2348_v38  ;;  %v2366_v37 = vpack.c.bf16 %v933_v50, %v925_v27  ;;  %v2494_v38 = vpack.c.bf16 %v935_v31, %v927_v30  ;;  %v990_v27 = vld [vmem:[#allocation10 + $0x310] sm:$0xff]  ;;  %v1005_v50 = vld [vmem:[#allocation10 + $0x388] sm:$0xff]  ;;  %v1007_v31 = vld [vmem:[#allocation10 + $0x398] sm:$0xff] }
 0x182   :  { %2223 = vmatprep.subr.bf16.mxu0 %v2222_v42  ;;  %2351 = vmatprep.subr.bf16.mxu1 %v2350_v43  ;;  %v941_v42 = vld [vmem:[#allocation10 + $0x188] sm:$0xff] }
 0x183   :  { %v949_v43 = vld [vmem:[#allocation10 + $0x1c8] sm:$0xff] }
 0x184   :  { %v1013_v30 = vld [vmem:[#allocation10 + $0x3c8] sm:$0xff] }
 0x185   :  { %2225 = vmatpush1.bf16.msra.mxu0 %v2224_v51  ;;  %2353 = vmatpush1.bf16.msra.mxu1 %v2352_v52  ;;  %v2370_v51 = vpack.c.bf16 %v949_v43, %v941_v42  ;;  %v2498_v52 = vpack.c.bf16 %v951_v45, %v943_v44  ;;  %v1014_v42 = vld [vmem:[#allocation10 + $0x3d0] sm:$0xff]  ;;  %v1021_v43 = vld [vmem:[#allocation10 + $0x408] sm:$0xff]  ;;  %v1023_v45 = vld [vmem:[#allocation10 + $0x418] sm:$0xff] }
 0x186   :  { %2227 = vmatprep.subr.bf16.mxu0 %v2226_v57  ;;  %2355 = vmatprep.subr.bf16.mxu1 %v2354_v58  ;;  %v965_v57 = vld [vmem:[#allocation10 + $0x248] sm:$0xff]  ;;  %v959_v58 = vld [vmem:[#allocation10 + $0x218] sm:$0xff]  ;;  %v2516_v48 = vpack.c.bf16 %v1014_v42, %v1006_v40  ;;  %v1086_v42 = vld [vmem:[#allocation10 + $0x610] sm:$0xff] }
 0x187   :  { %v2374_v0 = vpack.c.bf16 %v965_v57, %v957_v55  ;;  %v1029_v44 = vld [vmem:[#allocation10 + $0x448] sm:$0xff]  ;;  %v1030_v55 = vld [vmem:[#allocation10 + $0x450] sm:$0xff] }
 0x188   :  { %v1037_v57 = vld [vmem:[#allocation10 + $0x488] sm:$0xff]  ;;  %v2520_v62 = vpack.c.bf16 %v1030_v55, %v1022_v54  ;;  %v1102_v55 = vld [vmem:[#allocation10 + $0x690] sm:$0xff] }
 0x189   :  { %2229 = vmatpush1.bf16.msra.mxu0 %v2228_v1  ;;  %2357 = vmatpush1.bf16.msra.mxu1 %v2356_v2  ;;  %v2502_v1 = vpack.c.bf16 %v967_v59, %v959_v58  ;;  %v958_v2 = vld [vmem:[#allocation10 + $0x210] sm:$0xff]  ;;  %v1045_v58 = vld [vmem:[#allocation10 + $0x4c8] sm:$0xff]  ;;  %v1039_v59 = vld [vmem:[#allocation10 + $0x498] sm:$0xff] }
 0x18a   :  { %2359 = vmatprep.subr.bf16.mxu0 %v2358_v16  ;;  %2487 = vmatprep.subr.bf16.mxu1 %v2486_v5  ;;  %v981_v16 = vld [vmem:[#allocation10 + $0x2c8] sm:$0xff]  ;;  %v975_v5 = vld [vmem:[#allocation10 + $0x298] sm:$0xff]  ;;  %v2504_v8 = vpack.c.bf16 %v966_v3, %v958_v2  ;;  %v1038_v3 = vld [vmem:[#allocation10 + $0x490] sm:$0xff] }
 0x18b   :  { %v2378_v11 = vpack.c.bf16 %v981_v16, %v973_v4  ;;  %v2506_v12 = vpack.c.bf16 %v983_v6, %v975_v5  ;;  %v1046_v4 = vld [vmem:[#allocation10 + $0x4d0] sm:$0xff]  ;;  %v1053_v16 = vld [vmem:[#allocation10 + $0x508] sm:$0xff]  ;;  %v1055_v6 = vld [vmem:[#allocation10 + $0x518] sm:$0xff] }
 0x18c   :  { %718 = vmatmul.mubr.f32.vlgmr.msra.gmra.mrb[4].mxu0 %v292_v34  ;;  %872 = vmatmul.mubr.f32.vlgmr.msra.gmra.mrb[4].mxu1 %v292_v34  ;;  %v997_v34 = vld [vmem:[#allocation10 + $0x348] sm:$0xff]  ;;  %v2524_v9 = vpack.c.bf16 %v1046_v4, %v1038_v3  ;;  %v1124_v3 = vld [vmem:[#allocation10 + $0x740] sm:$0xff]  ;;  %v1118_v4 = vld [vmem:[#allocation10 + $0x710] sm:$0xff] }
 0x18d   :  { %723 = vmatprep.mubr.f32.mxu0 %v297_v19  ;;  %877 = vmatprep.mubr.f32.mxu1 %v297_v19  ;;  %v989_v19 = vld [vmem:[#allocation10 + $0x308] sm:$0xff] }
 0x18e   :  { %2361 = vmatpush1.bf16.msra.mxu0 %v2360_v29  ;;  %2489 = vmatpush1.bf16.msra.mxu1 %v2488_v56  ;;  %v991_v29 = vld [vmem:[#allocation10 + $0x318] sm:$0xff]  ;;  %v2382_v25 = vpack.c.bf16 %v997_v34, %v989_v19  ;;  %v1061_v5 = vld [vmem:[#allocation10 + $0x548] sm:$0xff]  ;;  %v1062_v19 = vld [vmem:[#allocation10 + $0x550] sm:$0xff] }
 0x18f   :  { %2363 = vmatprep.subr.bf16.mxu0 %v2362_v23  ;;  %2491 = vmatprep.subr.bf16.mxu1 %v2490_v24  ;;  %v999_v56 = vld [vmem:[#allocation10 + $0x358] sm:$0xff]  ;;  %v988_v23 = vld [vmem:[#allocation10 + $0x300] sm:$0xff]  ;;  %v1069_v34 = vld [vmem:[#allocation10 + $0x588] sm:$0xff] }
 0x190   :  { %724 = vmatmul.mubr.f32.gmra.mrb[6].mxu0 %v296_v28  ;;  %878 = vmatmul.mubr.f32.gmra.mrb[6].mxu1 %v296_v28  ;;  %v996_v24 = vld [vmem:[#allocation10 + $0x340] sm:$0xff]  ;;  %v2510_v26 = vpack.c.bf16 %v999_v56, %v991_v29  ;;  %v998_v28 = vld [vmem:[#allocation10 + $0x350] sm:$0xff]  ;;  %v1077_v29 = vld [vmem:[#allocation10 + $0x5c8] sm:$0xff] }
 0x191   :  { %v2512_v35 = vpack.c.bf16 %v998_v28, %v990_v27  ;;  %v1071_v56 = vld [vmem:[#allocation10 + $0x598] sm:$0xff]  ;;  %v1070_v28 = vld [vmem:[#allocation10 + $0x590] sm:$0xff] }
 0x192   :  { %2365 = vmatpush1.bf16.msra.mxu0 %v2364_v32  ;;  %2493 = vmatpush1.bf16.msra.mxu1 %v2492_v33  ;;  %v1015_v32 = vld [vmem:[#allocation10 + $0x3d8] sm:$0xff]  ;;  %v2384_v33 = vpack.c.bf16 %v996_v24, %v988_v23  ;;  %v2528_v23 = vpack.c.bf16 %v1062_v19, %v1054_v18  ;;  %v1068_v24 = vld [vmem:[#allocation10 + $0x580] sm:$0xff] }
 0x193   :  { %2367 = vmatprep.subr.bf16.mxu0 %v2366_v37  ;;  %2495 = vmatprep.subr.bf16.mxu1 %v2494_v38  ;;  %v1012_v37 = vld [vmem:[#allocation10 + $0x3c0] sm:$0xff]  ;;  %v2386_v38 = vpack.c.bf16 %v1013_v30, %v1005_v50  ;;  %v2514_v39 = vpack.c.bf16 %v1015_v32, %v1007_v31  ;;  %v1078_v50 = vld [vmem:[#allocation10 + $0x5d0] sm:$0xff]  ;;  %v1085_v30 = vld [vmem:[#allocation10 + $0x608] sm:$0xff] }
 0x194   :  { %v1093_v31 = vld [vmem:[#allocation10 + $0x648] sm:$0xff]  ;;  %v1087_v32 = vld [vmem:[#allocation10 + $0x618] sm:$0xff] }
 0x196   :  { %2369 = vmatpush1.bf16.msra.mxu0 %v2368_v46  ;;  %2497 = vmatpush1.bf16.msra.mxu1 %v2496_v47  ;;  %v1031_v46 = vld [vmem:[#allocation10 + $0x458] sm:$0xff]  ;;  %v2388_v47 = vpack.c.bf16 %v1012_v37, %v1004_v36  ;;  %v2532_v36 = vpack.c.bf16 %v1078_v50, %v1070_v28  ;;  %v1084_v37 = vld [vmem:[#allocation10 + $0x600] sm:$0xff] }
 0x197   :  { %2371 = vmatprep.subr.bf16.mxu0 %v2370_v51  ;;  %2499 = vmatprep.subr.bf16.mxu1 %v2498_v52  ;;  %v1028_v51 = vld [vmem:[#allocation10 + $0x440] sm:$0xff]  ;;  %v2390_v52 = vpack.c.bf16 %v1029_v44, %v1021_v43  ;;  %v2518_v53 = vpack.c.bf16 %v1031_v46, %v1023_v45  ;;  %v1094_v43 = vld [vmem:[#allocation10 + $0x650] sm:$0xff]  ;;  %v1101_v44 = vld [vmem:[#allocation10 + $0x688] sm:$0xff] }
 0x198   :  { %v1109_v45 = vld [vmem:[#allocation10 + $0x6c8] sm:$0xff]  ;;  %v1103_v46 = vld [vmem:[#allocation10 + $0x698] sm:$0xff] }
 0x19a   :  { %2373 = vmatpush1.bf16.msra.mxu0 %v2372_v60  ;;  %2501 = vmatpush1.bf16.msra.mxu1 %v2500_v61  ;;  %v1047_v60 = vld [vmem:[#allocation10 + $0x4d8] sm:$0xff]  ;;  %v2392_v61 = vpack.c.bf16 %v1028_v51, %v1020_v49  ;;  %v2536_v49 = vpack.c.bf16 %v1094_v43, %v1086_v42  ;;  %v1100_v51 = vld [vmem:[#allocation10 + $0x680] sm:$0xff]  ;;  %v1173_v43 = vld [vmem:[#allocation10 + $0x8c8] sm:$0xff] }
 0x19b   :  { %2375 = vmatprep.subr.bf16.mxu0 %v2374_v0  ;;  %2503 = vmatprep.subr.bf16.mxu1 %v2502_v1  ;;  %v1044_v0 = vld [vmem:[#allocation10 + $0x4c0] sm:$0xff]  ;;  %v2394_v1 = vpack.c.bf16 %v1045_v58, %v1037_v57  ;;  %v2522_v2 = vpack.c.bf16 %v1047_v60, %v1039_v59  ;;  %v1110_v57 = vld [vmem:[#allocation10 + $0x6d0] sm:$0xff]  ;;  %v1117_v58 = vld [vmem:[#allocation10 + $0x708] sm:$0xff] }
 0x19c   :  { %v1125_v59 = vld [vmem:[#allocation10 + $0x748] sm:$0xff]  ;;  %v1119_v60 = vld [vmem:[#allocation10 + $0x718] sm:$0xff] }
 0x19e   :  { %2377 = vmatpush1.bf16.msra.mxu0 %v2376_v7  ;;  %2505 = vmatpush1.bf16.msra.mxu1 %v2504_v8  ;;  %v1063_v7 = vld [vmem:[#allocation10 + $0x558] sm:$0xff]  ;;  %v2396_v8 = vpack.c.bf16 %v1044_v0, %v1036_v63  ;;  %v2540_v63 = vpack.c.bf16 %v1110_v57, %v1102_v55  ;;  %v1116_v0 = vld [vmem:[#allocation10 + $0x700] sm:$0xff] }
 0x19f   :  { %2379 = vmatprep.subr.bf16.mxu0 %v2378_v11  ;;  %2507 = vmatprep.subr.bf16.mxu1 %v2506_v12  ;;  %v1060_v11 = vld [vmem:[#allocation10 + $0x540] sm:$0xff]  ;;  %v2398_v12 = vpack.c.bf16 %v1061_v5, %v1053_v16  ;;  %v2526_v13 = vpack.c.bf16 %v1063_v7, %v1055_v6  ;;  %v1126_v16 = vld [vmem:[#allocation10 + $0x750] sm:$0xff]  ;;  %v2416_v5 = vpack.c.bf16 %v1124_v3, %v1116_v0  ;;  %v1133_v7 = vld [vmem:[#allocation10 + $0x788] sm:$0xff] }
 0x1a0   :  { %v2544_v6 = vpack.c.bf16 %v1126_v16, %v1118_v4  ;;  %v1189_v3 = vld [vmem:[#allocation10 + $0x948] sm:$0xff]  ;;  %v1183_v4 = vld [vmem:[#allocation10 + $0x918] sm:$0xff] }
 0x1a1   :  { %v1191_v16 = vld [vmem:[#allocation10 + $0x958] sm:$0xff] }
 0x1a2   :  { %2381 = vmatpush1.bf16.msra.mxu0 %v2380_v21  ;;  %2509 = vmatpush1.bf16.msra.mxu1 %v2508_v22  ;;  %v1079_v21 = vld [vmem:[#allocation10 + $0x5d8] sm:$0xff]  ;;  %v2400_v22 = vpack.c.bf16 %v1060_v11, %v1052_v10 }
 0x1a3   :  { %2383 = vmatprep.subr.bf16.mxu0 %v2382_v25  ;;  %2511 = vmatprep.subr.bf16.mxu1 %v2510_v26  ;;  %v1076_v25 = vld [vmem:[#allocation10 + $0x5c0] sm:$0xff]  ;;  %v2402_v26 = vpack.c.bf16 %v1077_v29, %v1069_v34  ;;  %v2530_v27 = vpack.c.bf16 %v1079_v21, %v1071_v56  ;;  %v1143_v11 = vld [vmem:[#allocation10 + $0x7d8] sm:$0xff]  ;;  %v1134_v34 = vld [vmem:[#allocation10 + $0x790] sm:$0xff] }
 0x1a4   :  { %v1142_v29 = vld [vmem:[#allocation10 + $0x7d0] sm:$0xff]  ;;  %v1149_v21 = vld [vmem:[#allocation10 + $0x808] sm:$0xff] }
 0x1a5   :  { %v2548_v56 = vpack.c.bf16 %v1142_v29, %v1134_v34  ;;  %v1205_v34 = vld [vmem:[#allocation10 + $0x9c8] sm:$0xff]  ;;  %v1199_v29 = vld [vmem:[#allocation10 + $0x998] sm:$0xff] }
 0x1a6   :  { %2385 = vmatpush1.bf16.msra.mxu0 %v2384_v33  ;;  %2513 = vmatpush1.bf16.msra.mxu1 %v2512_v35  ;;  %v1095_v33 = vld [vmem:[#allocation10 + $0x658] sm:$0xff]  ;;  %v2404_v35 = vpack.c.bf16 %v1076_v25, %v1068_v24 }
 0x1a7   :  { %2387 = vmatprep.subr.bf16.mxu0 %v2386_v38  ;;  %2515 = vmatprep.subr.bf16.mxu1 %v2514_v39  ;;  %v1092_v38 = vld [vmem:[#allocation10 + $0x640] sm:$0xff]  ;;  %v2406_v39 = vpack.c.bf16 %v1093_v31, %v1085_v30  ;;  %v2534_v40 = vpack.c.bf16 %v1095_v33, %v1087_v32  ;;  %v1159_v25 = vld [vmem:[#allocation10 + $0x858] sm:$0xff] }
 0x1a8   :  { %v1148_v32 = vld [vmem:[#allocation10 + $0x800] sm:$0xff] }
 0x1a9   :  { %v1156_v33 = vld [vmem:[#allocation10 + $0x840] sm:$0xff] }
 0x1aa   :  { %2389 = vmatpush1.bf16.msra.mxu0 %v2388_v47  ;;  %2517 = vmatpush1.bf16.msra.mxu1 %v2516_v48  ;;  %v1111_v47 = vld [vmem:[#allocation10 + $0x6d8] sm:$0xff]  ;;  %v2408_v48 = vpack.c.bf16 %v1092_v38, %v1084_v37  ;;  %v1150_v38 = vld [vmem:[#allocation10 + $0x810] sm:$0xff] }
 0x1ab   :  { %2391 = vmatprep.subr.bf16.mxu0 %v2390_v52  ;;  %2519 = vmatprep.subr.bf16.mxu1 %v2518_v53  ;;  %v1108_v52 = vld [vmem:[#allocation10 + $0x6c0] sm:$0xff]  ;;  %v2410_v53 = vpack.c.bf16 %v1109_v45, %v1101_v44  ;;  %v2538_v54 = vpack.c.bf16 %v1111_v47, %v1103_v46  ;;  %v1167_v44 = vld [vmem:[#allocation10 + $0x898] sm:$0xff] }
 0x1ac   :  { %v1175_v45 = vld [vmem:[#allocation10 + $0x8d8] sm:$0xff] }
 0x1ae   :  { %2393 = vmatpush1.bf16.msra.mxu0 %v2392_v61  ;;  %2521 = vmatpush1.bf16.msra.mxu1 %v2520_v62  ;;  %v1127_v61 = vld [vmem:[#allocation10 + $0x758] sm:$0xff]  ;;  %v2412_v62 = vpack.c.bf16 %v1108_v52, %v1100_v51  ;;  %v2424_v51 = vpack.c.bf16 %v1156_v33, %v1148_v32  ;;  %v1213_v32 = vld [vmem:[#allocation10 + $0xa08] sm:$0xff] }
 0x1af   :  { %2395 = vmatprep.subr.bf16.mxu0 %v2394_v1  ;;  %2523 = vmatprep.subr.bf16.mxu1 %v2522_v2  ;;  %v2414_v1 = vpack.c.bf16 %v1125_v59, %v1117_v58  ;;  %v2542_v2 = vpack.c.bf16 %v1127_v61, %v1119_v60  ;;  %v2554_v60 = vpack.c.bf16 %v1175_v45, %v1167_v44  ;;  %v1172_v61 = vld [vmem:[#allocation10 + $0x8c0] sm:$0xff]  ;;  %v1221_v33 = vld [vmem:[#allocation10 + $0xa48] sm:$0xff]  ;;  %v1214_v44 = vld [vmem:[#allocation10 + $0xa10] sm:$0xff] }
 0x1b0   :  { %v1222_v45 = vld [vmem:[#allocation10 + $0xa50] sm:$0xff] }
 0x1b2   :  { %2397 = vmatpush1.bf16.msra.mxu0 %v2396_v8  ;;  %2525 = vmatpush1.bf16.msra.mxu1 %v2524_v9  ;;  %v1141_v8 = vld [vmem:[#allocation10 + $0x7c8] sm:$0xff]  ;;  %v1135_v9 = vld [vmem:[#allocation10 + $0x798] sm:$0xff] }
 0x1b3   :  { %2399 = vmatprep.subr.bf16.mxu0 %v2398_v12  ;;  %2527 = vmatprep.subr.bf16.mxu1 %v2526_v13  ;;  %v2418_v10 = vpack.c.bf16 %v1141_v8, %v1133_v7  ;;  %v1132_v12 = vld [vmem:[#allocation10 + $0x780] sm:$0xff]  ;;  %v2546_v18 = vpack.c.bf16 %v1143_v11, %v1135_v9  ;;  %v1182_v11 = vld [vmem:[#allocation10 + $0x910] sm:$0xff] }
 0x1b4   :  { %v1140_v13 = vld [vmem:[#allocation10 + $0x7c0] sm:$0xff] }
 0x1b5   :  { %v2420_v19 = vpack.c.bf16 %v1140_v13, %v1132_v12  ;;  %v1180_v8 = vld [vmem:[#allocation10 + $0x900] sm:$0xff]  ;;  %v1190_v12 = vld [vmem:[#allocation10 + $0x950] sm:$0xff]  ;;  %v1197_v13 = vld [vmem:[#allocation10 + $0x988] sm:$0xff] }
 0x1b6   :  { %2401 = vmatpush1.bf16.msra.mxu0 %v2400_v22  ;;  %2529 = vmatpush1.bf16.msra.mxu1 %v2528_v23  ;;  %v1157_v22 = vld [vmem:[#allocation10 + $0x848] sm:$0xff]  ;;  %v1151_v23 = vld [vmem:[#allocation10 + $0x818] sm:$0xff]  ;;  %v1188_v9 = vld [vmem:[#allocation10 + $0x940] sm:$0xff] }
 0x1b7   :  { %2403 = vmatprep.subr.bf16.mxu0 %v2402_v26  ;;  %2531 = vmatprep.subr.bf16.mxu1 %v2530_v27  ;;  %v2422_v24 = vpack.c.bf16 %v1157_v22, %v1149_v21  ;;  %v2550_v26 = vpack.c.bf16 %v1159_v25, %v1151_v23  ;;  %v3275_v27 = vld [vmem:[#allocation8] sm:$0xf]  ;;  %v2432_v22 = vpack.c.bf16 %v1188_v9, %v1180_v8  ;;  %v1204_v25 = vld [vmem:[#allocation10 + $0x9c0] sm:$0xff] }
 0x1b8   :  { %v559_v28 = vrot.slane %v3275_v27, %v3241_v15  ;;  %v563_v50 = vrot.slane %v3275_v27, %v3246_v17  ;;  %v3285_v46 = vrot.slane %v3275_v27, %v3253_v20  ;;  %v2560_v23 = vpack.c.bf16 %v1190_v12, %v1182_v11  ;;  %v1252_v8 = vld [vmem:[#allocation10 + $0xb40] sm:$0xff]  ;;  %v1246_v12 = vld [vmem:[#allocation10 + $0xb10] sm:$0xff] }
 0x1ba   :  { %2405 = vmatpush1.bf16.msra.mxu0 %v2404_v35  ;;  %2533 = vmatpush1.bf16.msra.mxu1 %v2532_v36 }
 0x1bb   :  { %2407 = vmatprep.subr.bf16.mxu0 %v2406_v39  ;;  %2535 = vmatprep.subr.bf16.mxu1 %v2534_v40  ;;  %v1158_v39 = vld [vmem:[#allocation10 + $0x850] sm:$0xff]  ;;  %v1165_v40 = vld [vmem:[#allocation10 + $0x888] sm:$0xff] }
 0x1bc   :  { %v2552_v52 = vpack.c.bf16 %v1158_v39, %v1150_v38  ;;  %v2426_v59 = vpack.c.bf16 %v1173_v43, %v1165_v40  ;;  %v1212_v39 = vld [vmem:[#allocation10 + $0xa00] sm:$0xff] }
 0x1bd   :  { %v1220_v40 = vld [vmem:[#allocation10 + $0xa40] sm:$0xff] }
 0x1be   :  { %2409 = vmatpush1.bf16.msra.mxu0 %v2408_v48  ;;  %2537 = vmatpush1.bf16.msra.mxu1 %v2536_v49 }
 0x1bf   :  { %2411 = vmatprep.subr.bf16.mxu0 %v2410_v53  ;;  %2539 = vmatprep.subr.bf16.mxu1 %v2538_v54  ;;  %v1164_v53 = vld [vmem:[#allocation10 + $0x880] sm:$0xff] }
 0x1c2   :  { %2413 = vmatpush1.bf16.msra.mxu0 %v2412_v62  ;;  %2541 = vmatpush1.bf16.msra.mxu1 %v2540_v63  ;;  %v1166_v62 = vld [vmem:[#allocation10 + $0x890] sm:$0xff] }
 0x1c3   :  { %2415 = vmatprep.subr.bf16.mxu0 %v2414_v1  ;;  %2543 = vmatprep.subr.bf16.mxu1 %v2542_v2  ;;  %v1174_v63 = vld [vmem:[#allocation10 + $0x8d0] sm:$0xff]  ;;  %v1181_v1 = vld [vmem:[#allocation10 + $0x908] sm:$0xff] }
 0x1c4   :  { %v2556_v7 = vpack.c.bf16 %v1174_v63, %v1166_v62  ;;  %v1230_v63 = vld [vmem:[#allocation10 + $0xa90] sm:$0xff] }
 0x1c6   :  { %2417 = vmatpush1.bf16.msra.mxu0 %v2416_v5  ;;  %2545 = vmatpush1.bf16.msra.mxu1 %v2544_v6  ;;  %v2428_v6 = vpack.c.bf16 %v1172_v61, %v1164_v53  ;;  %v1239_v53 = vld [vmem:[#allocation10 + $0xad8] sm:$0xff] }
 0x1c7   :  { %2419 = vmatprep.subr.bf16.mxu0 %v2418_v10  ;;  %2547 = vmatprep.subr.bf16.mxu1 %v2546_v18  ;;  %v2430_v18 = vpack.c.bf16 %v1189_v3, %v1181_v1  ;;  %v1245_v1 = vld [vmem:[#allocation10 + $0xb08] sm:$0xff]  ;;  %v1247_v3 = vld [vmem:[#allocation10 + $0xb18] sm:$0xff] }
 0x1ca   :  { %2421 = vmatpush1.bf16.msra.mxu0 %v2420_v19  ;;  %2549 = vmatpush1.bf16.msra.mxu1 %v2548_v56  ;;  %v2558_v19 = vpack.c.bf16 %v1191_v16, %v1183_v4  ;;  %v1207_v56 = vld [vmem:[#allocation10 + $0x9d8] sm:$0xff] }
 0x1cb   :  { %2423 = vmatprep.subr.bf16.mxu0 %v2422_v24  ;;  %2551 = vmatprep.subr.bf16.mxu1 %v2550_v26  ;;  %v1196_v24 = vld [vmem:[#allocation10 + $0x980] sm:$0xff]  ;;  %v2434_v26 = vpack.c.bf16 %v1205_v34, %v1197_v13  ;;  %v1255_v4 = vld [vmem:[#allocation10 + $0xb58] sm:$0xff]  ;;  %v1254_v13 = vld [vmem:[#allocation10 + $0xb50] sm:$0xff] }
 0x1cc   :  { %v2574_v11 = vpack.c.bf16 %v1255_v4, %v1247_v3  ;;  %v1263_v34 = vld [vmem:[#allocation10 + $0xb98] sm:$0xff] }
 0x1cd   :  { %v1319_v3 = vld [vmem:[#allocation10 + $0xd58] sm:$0xff] }
 0x25f   :  { %v719_v30 = vpop.f32.mrb[4].mxu0  ;;  %v3281_v31 = vpop.f32.mrb[4].mxu1 }
 0x260   :  { %v2870_v35 = vadd.f32 %v719_v30, %v559_v28  ;;  %v721_v36 = vpop.f32.mrb[5].mxu0  ;;  %v875_v37 = vpop.f32.mrb[5].mxu1  ;;  %v1206_v30 = vld [vmem:[#allocation10 + $0x9d0] sm:$0xff] }
 0x261   :  { %v2871_v42 = vadd.f32 %v721_v36, %v563_v50  ;;  %v2875_v2 = vadd.f32 %v875_v37, %v3285_v46  ;;  %v1223_v36 = vld [vmem:[#allocation10 + $0xa58] sm:$0xff]  ;;  %v2436_v37 = vpack.c.bf16 %v1204_v25, %v1196_v24  ;;  %v1268_v24 = vld [vmem:[#allocation10 + $0xbc0] sm:$0xff] }
 0x262   :  { %v3291_v54 = vmax.f32 %v2870_v35, 0.0  ;;  %v1215_v35 = vld [vmem:[#allocation10 + $0xa18] sm:$0xff] }
 0x263   :  { %v3287_v47 = vmax.f32 %v2871_v42, 0.0  ;;  %v725_v48 = vpop.f32.mrb[6].mxu0  ;;  %v3289_v49 = vpop.f32.mrb[6].mxu1  ;;  %v3306_v21 = vmax.f32 %v2875_v2, 0.0  ;;  %v2438_v42 = vpack.c.bf16 %v1221_v33, %v1213_v32  ;;  %v2566_v43 = vpack.c.bf16 %v1223_v36, %v1215_v35  ;;  %v1253_v2 = vld [vmem:[#allocation10 + $0xb48] sm:$0xff]  ;;  %v1279_v33 = vld [vmem:[#allocation10 + $0xc18] sm:$0xff] }
 0x264   :  { %v2872_v55 = vadd.f32 %v725_v48, %v559_v28  ;;  %v727_v57 = vpop.f32.mrb[7].mxu0  ;;  %v3293_v58 = vpop.f32.mrb[7].mxu1  ;;  %v2562_v28 = vpack.c.bf16 %v1207_v56, %v1199_v29  ;;  %v1229_v48 = vld [vmem:[#allocation10 + $0xa88] sm:$0xff]  ;;  %v2446_v9 = vpack.c.bf16 %v1253_v2, %v1245_v1  ;;  %v1271_v29 = vld [vmem:[#allocation10 + $0xbd8] sm:$0xff] }
 0x265   :  { %v2873_v0 = vadd.f32 %v727_v57, %v563_v50  ;;  %1510 = vmatprep.mubr.f32.mxu0 %v3287_v47  ;;  %1664 = vmatprep.mubr.f32.mxu1 %v3287_v47  ;;  %v1198_v50 = vld [vmem:[#allocation10 + $0x990] sm:$0xff]  ;;  %v2568_v57 = vpack.c.bf16 %v1222_v45, %v1214_v44  ;;  %v1285_v32 = vld [vmem:[#allocation10 + $0xc48] sm:$0xff]  ;;  %v1287_v35 = vld [vmem:[#allocation10 + $0xc58] sm:$0xff] }
 0x266   :  { %1511 = vmatmul.mubr.f32.vlgmr.msra.gmra.mrb[8].mxu0 %v3291_v54  ;;  %1665 = vmatmul.mubr.f32.vlgmr.msra.gmra.mrb[8].mxu1 %v3291_v54  ;;  %v3302_v10 = vmax.f32 %v2872_v55, 0.0  ;;  %v2564_v38 = vpack.c.bf16 %v1206_v30, %v1198_v50  ;;  %v2440_v55 = vpack.c.bf16 %v1220_v40, %v1212_v39  ;;  %v1270_v50 = vld [vmem:[#allocation10 + $0xbd0] sm:$0xff]  ;;  %v1277_v30 = vld [vmem:[#allocation10 + $0xc08] sm:$0xff]  ;;  %v1284_v39 = vld [vmem:[#allocation10 + $0xc40] sm:$0xff] }
 0x267   :  { %v3300_v5 = vmax.f32 %v2873_v0, 0.0  ;;  %2425 = vmatpush1.bf16.msra.mxu0 %v2424_v51  ;;  %2553 = vmatpush1.bf16.msra.mxu1 %v2552_v52  ;;  %v1237_v51 = vld [vmem:[#allocation10 + $0xac8] sm:$0xff]  ;;  %v1231_v52 = vld [vmem:[#allocation10 + $0xa98] sm:$0xff]  ;;  %v1238_v0 = vld [vmem:[#allocation10 + $0xad0] sm:$0xff]  ;;  %v2454_v40 = vpack.c.bf16 %v1285_v32, %v1277_v30 }
 0x268   :  { %2427 = vmatprep.subr.bf16.mxu0 %v2426_v59  ;;  %2555 = vmatprep.subr.bf16.mxu1 %v2554_v60  ;;  %v1228_v59 = vld [vmem:[#allocation10 + $0xa80] sm:$0xff]  ;;  %v2442_v61 = vpack.c.bf16 %v1237_v51, %v1229_v48  ;;  %v2570_v62 = vpack.c.bf16 %v1239_v53, %v1231_v52  ;;  %v1286_v44 = vld [vmem:[#allocation10 + $0xc50] sm:$0xff]  ;;  %v1293_v45 = vld [vmem:[#allocation10 + $0xc88] sm:$0xff] }
 0x269   :  { %1516 = vmatprep.mubr.f32.mxu0 %v3300_v5  ;;  %1670 = vmatprep.mubr.f32.mxu1 %v3300_v5  ;;  %v1236_v60 = vld [vmem:[#allocation10 + $0xac0] sm:$0xff]  ;;  %v1301_v48 = vld [vmem:[#allocation10 + $0xcc8] sm:$0xff]  ;;  %v1295_v51 = vld [vmem:[#allocation10 + $0xc98] sm:$0xff] }
 0x26a   :  { %1517 = vmatmul.mubr.f32.gmra.mrb[10].mxu0 %v3302_v10  ;;  %1671 = vmatmul.mubr.f32.gmra.mrb[10].mxu1 %v3302_v10  ;;  %v2444_v16 = vpack.c.bf16 %v1236_v60, %v1228_v59  ;;  %v1303_v52 = vld [vmem:[#allocation10 + $0xcd8] sm:$0xff]  ;;  %v1300_v59 = vld [vmem:[#allocation10 + $0xcc0] sm:$0xff]  ;;  %v2458_v60 = vpack.c.bf16 %v1301_v48, %v1293_v45  ;;  %v1317_v1 = vld [vmem:[#allocation10 + $0xd48] sm:$0xff] }
 0x26b   :  { %2429 = vmatpush1.bf16.msra.mxu0 %v2428_v6  ;;  %2557 = vmatpush1.bf16.msra.mxu1 %v2556_v7  ;;  %v2572_v6 = vpack.c.bf16 %v1238_v0, %v1230_v63  ;;  %v1244_v7 = vld [vmem:[#allocation10 + $0xb00] sm:$0xff]  ;;  %v1302_v63 = vld [vmem:[#allocation10 + $0xcd0] sm:$0xff]  ;;  %v1309_v0 = vld [vmem:[#allocation10 + $0xd08] sm:$0xff] }
 0x26c   :  { %1587 = vmatprep.mubr.f32.mxu0 %v3306_v21  ;;  %1741 = vmatprep.mubr.f32.mxu1 %v3306_v21  ;;  %v2448_v56 = vpack.c.bf16 %v1252_v8, %v1244_v7  ;;  %v1311_v2 = vld [vmem:[#allocation10 + $0xd18] sm:$0xff]  ;;  %v1316_v7 = vld [vmem:[#allocation10 + $0xd40] sm:$0xff]  ;;  %v2462_v8 = vpack.c.bf16 %v1317_v1, %v1309_v0  ;;  %v1349_v30 = vld [vmem:[#allocation10 + $0xe48] sm:$0xff] }
 0x26d   :  { %2431 = vmatprep.subr.bf16.mxu0 %v2430_v18  ;;  %2559 = vmatprep.subr.bf16.mxu1 %v2558_v19  ;;  %v1261_v18 = vld [vmem:[#allocation10 + $0xb88] sm:$0xff]  ;;  %v1343_v32 = vld [vmem:[#allocation10 + $0xe18] sm:$0xff] }
 0x26e   :  { %v1269_v19 = vld [vmem:[#allocation10 + $0xbc8] sm:$0xff]  ;;  %v1359_v48 = vld [vmem:[#allocation10 + $0xe98] sm:$0xff] }
 0x26f   :  { %2433 = vmatpush1.bf16.msra.mxu0 %v2432_v22  ;;  %2561 = vmatpush1.bf16.msra.mxu1 %v2560_v23  ;;  %v2576_v22 = vpack.c.bf16 %v1254_v13, %v1246_v12  ;;  %v1260_v23 = vld [vmem:[#allocation10 + $0xb80] sm:$0xff]  ;;  %v2450_v25 = vpack.c.bf16 %v1269_v19, %v1261_v18  ;;  %v1318_v12 = vld [vmem:[#allocation10 + $0xd50] sm:$0xff]  ;;  %v1325_v13 = vld [vmem:[#allocation10 + $0xd88] sm:$0xff] }
 0x270   :  { %2435 = vmatprep.subr.bf16.mxu0 %v2434_v26  ;;  %2563 = vmatprep.subr.bf16.mxu1 %v2562_v28  ;;  %v2578_v26 = vpack.c.bf16 %v1271_v29, %v1263_v34  ;;  %v1262_v28 = vld [vmem:[#allocation10 + $0xb90] sm:$0xff]  ;;  %v2452_v36 = vpack.c.bf16 %v1268_v24, %v1260_v23  ;;  %v1333_v18 = vld [vmem:[#allocation10 + $0xdc8] sm:$0xff]  ;;  %v1327_v19 = vld [vmem:[#allocation10 + $0xd98] sm:$0xff] }
 0x271   :  { %v1335_v34 = vld [vmem:[#allocation10 + $0xdd8] sm:$0xff]  ;;  %v1332_v23 = vld [vmem:[#allocation10 + $0xdc0] sm:$0xff]  ;;  %v2466_v24 = vpack.c.bf16 %v1333_v18, %v1325_v13  ;;  %v1365_v45 = vld [vmem:[#allocation10 + $0xec8] sm:$0xff] }
 0x272   :  { %v1381_v0 = vld [vmem:[#allocation10 + $0xf48] sm:$0xff]  ;;  %v1375_v1 = vld [vmem:[#allocation10 + $0xf18] sm:$0xff] }
 0x273   :  { %2437 = vmatpush1.bf16.msra.mxu0 %v2436_v37  ;;  %2565 = vmatpush1.bf16.msra.mxu1 %v2564_v38  ;;  %v2580_v37 = vpack.c.bf16 %v1270_v50, %v1262_v28  ;;  %v1276_v38 = vld [vmem:[#allocation10 + $0xc00] sm:$0xff]  ;;  %v1334_v28 = vld [vmem:[#allocation10 + $0xdd0] sm:$0xff]  ;;  %v1341_v50 = vld [vmem:[#allocation10 + $0xe08] sm:$0xff] }
 0x274   :  { %2439 = vmatprep.subr.bf16.mxu0 %v2438_v42  ;;  %2567 = vmatprep.subr.bf16.mxu1 %v2566_v43  ;;  %v2582_v42 = vpack.c.bf16 %v1287_v35, %v1279_v33  ;;  %v1278_v43 = vld [vmem:[#allocation10 + $0xc10] sm:$0xff]  ;;  %v2456_v53 = vpack.c.bf16 %v1284_v39, %v1276_v38  ;;  %v1351_v33 = vld [vmem:[#allocation10 + $0xe58] sm:$0xff]  ;;  %v1348_v38 = vld [vmem:[#allocation10 + $0xe40] sm:$0xff]  ;;  %v2470_v39 = vpack.c.bf16 %v1349_v30, %v1341_v50 }
 0x275   :  { %v1397_v13 = vld [vmem:[#allocation10 + $0xfc8] sm:$0xff]  ;;  %v1391_v18 = vld [vmem:[#allocation10 + $0xf98] sm:$0xff] }
 0x276   :  { %v897_v50 = vld [vmem:[#allocation10 + $0x28] sm:$0xff] }
 0x277   :  { %2441 = vmatpush1.bf16.msra.mxu0 %v2440_v55  ;;  %2569 = vmatpush1.bf16.msra.mxu1 %v2568_v57  ;;  %v2584_v55 = vpack.c.bf16 %v1286_v44, %v1278_v43  ;;  %v1292_v57 = vld [vmem:[#allocation10 + $0xc80] sm:$0xff]  ;;  %v1350_v43 = vld [vmem:[#allocation10 + $0xe50] sm:$0xff]  ;;  %v1357_v44 = vld [vmem:[#allocation10 + $0xe88] sm:$0xff] }
 0x278   :  { %2443 = vmatprep.subr.bf16.mxu0 %v2442_v61  ;;  %2571 = vmatprep.subr.bf16.mxu1 %v2570_v62  ;;  %v2586_v61 = vpack.c.bf16 %v1303_v52, %v1295_v51  ;;  %v1294_v62 = vld [vmem:[#allocation10 + $0xc90] sm:$0xff]  ;;  %v2460_v4 = vpack.c.bf16 %v1300_v59, %v1292_v57  ;;  %v1367_v51 = vld [vmem:[#allocation10 + $0xed8] sm:$0xff]  ;;  %v1364_v57 = vld [vmem:[#allocation10 + $0xec0] sm:$0xff]  ;;  %v2474_v59 = vpack.c.bf16 %v1365_v45, %v1357_v44 }
 0x279   :  { %v905_v30 = vld [vmem:[#allocation10 + $0x68] sm:$0xff]  ;;  %v906_v44 = vld [vmem:[#allocation10 + $0x70] sm:$0xff] }
 0x27a   :  { %v913_v45 = vld [vmem:[#allocation10 + $0xa8] sm:$0xff] }
 0x27b   :  { %2445 = vmatpush1.bf16.msra.mxu0 %v2444_v16  ;;  %2573 = vmatpush1.bf16.msra.mxu1 %v2572_v6  ;;  %v2588_v16 = vpack.c.bf16 %v1302_v63, %v1294_v62  ;;  %v1308_v6 = vld [vmem:[#allocation10 + $0xd00] sm:$0xff]  ;;  %v1366_v62 = vld [vmem:[#allocation10 + $0xed0] sm:$0xff]  ;;  %v1373_v63 = vld [vmem:[#allocation10 + $0xf08] sm:$0xff] }
 0x27c   :  { %2447 = vmatprep.subr.bf16.mxu0 %v2446_v9  ;;  %2575 = vmatprep.subr.bf16.mxu1 %v2574_v11  ;;  %v2590_v9 = vpack.c.bf16 %v1319_v3, %v1311_v2  ;;  %v1310_v11 = vld [vmem:[#allocation10 + $0xd10] sm:$0xff]  ;;  %v2464_v29 = vpack.c.bf16 %v1316_v7, %v1308_v6  ;;  %v1383_v2 = vld [vmem:[#allocation10 + $0xf58] sm:$0xff]  ;;  %v1380_v6 = vld [vmem:[#allocation10 + $0xf40] sm:$0xff]  ;;  %v2478_v7 = vpack.c.bf16 %v1381_v0, %v1373_v63 }
 0x27d   :  { %v922_v63 = vld [vmem:[#allocation10 + $0xf0] sm:$0xff]  ;;  %v929_v0 = vld [vmem:[#allocation10 + $0x128] sm:$0xff] }
 0x27f   :  { %2449 = vmatpush1.bf16.msra.mxu0 %v2448_v56  ;;  %2577 = vmatpush1.bf16.msra.mxu1 %v2576_v22  ;;  %v2592_v56 = vpack.c.bf16 %v1318_v12, %v1310_v11  ;;  %v1324_v22 = vld [vmem:[#allocation10 + $0xd80] sm:$0xff]  ;;  %v1382_v11 = vld [vmem:[#allocation10 + $0xf50] sm:$0xff]  ;;  %v1389_v12 = vld [vmem:[#allocation10 + $0xf88] sm:$0xff] }
 0x280   :  { %2451 = vmatprep.subr.bf16.mxu0 %v2450_v25  ;;  %2579 = vmatprep.subr.bf16.mxu1 %v2578_v26  ;;  %v2594_v25 = vpack.c.bf16 %v1335_v34, %v1327_v19  ;;  %v1326_v26 = vld [vmem:[#allocation10 + $0xd90] sm:$0xff]  ;;  %v2468_v35 = vpack.c.bf16 %v1332_v23, %v1324_v22  ;;  %v1399_v19 = vld [vmem:[#allocation10 + $0xfd8] sm:$0xff]  ;;  %v1396_v22 = vld [vmem:[#allocation10 + $0xfc0] sm:$0xff]  ;;  %v567_v23 = vrot.slane %v3275_v27, %v3267_v41 }
 0x283   :  { %2453 = vmatpush1.bf16.msra.mxu0 %v2452_v36  ;;  %2581 = vmatpush1.bf16.msra.mxu1 %v2580_v37  ;;  %v2596_v36 = vpack.c.bf16 %v1334_v28, %v1326_v26  ;;  %v1340_v37 = vld [vmem:[#allocation10 + $0xe00] sm:$0xff]  ;;  %v1390_v26 = vld [vmem:[#allocation10 + $0xf90] sm:$0xff] }
 0x284   :  { %2455 = vmatprep.subr.bf16.mxu0 %v2454_v40  ;;  %2583 = vmatprep.subr.bf16.mxu1 %v2582_v42  ;;  %v2598_v40 = vpack.c.bf16 %v1351_v33, %v1343_v32  ;;  %v1342_v42 = vld [vmem:[#allocation10 + $0xe10] sm:$0xff]  ;;  %v2472_v52 = vpack.c.bf16 %v1348_v38, %v1340_v37  ;;  %v899_v32 = vld [vmem:[#allocation10 + $0x38] sm:$0xff]  ;;  %v2874_v37 = vadd.f32 %v3281_v31, %v567_v23 }
 0x285   :  { %v1398_v28 = vld [vmem:[#allocation10 + $0xfd0] sm:$0xff]  ;;  %v907_v33 = vld [vmem:[#allocation10 + $0x78] sm:$0xff]  ;;  %v2614_v38 = vpack.c.bf16 %v905_v30, %v897_v50  ;;  %v2876_v31 = vadd.f32 %v3289_v49, %v567_v23  ;;  %v952_v23 = vld [vmem:[#allocation10 + $0x1e0] sm:$0xff] }
 0x286   :  { %v2742_v27 = vpack.c.bf16 %v907_v33, %v899_v32  ;;  %v939_v49 = vld [vmem:[#allocation10 + $0x178] sm:$0xff]  ;;  %v961_v50 = vld [vmem:[#allocation10 + $0x228] sm:$0xff] }
 0x287   :  { %2457 = vmatpush1.bf16.msra.mxu0 %v2456_v53  ;;  %2585 = vmatpush1.bf16.msra.mxu1 %v2584_v55  ;;  %v2600_v53 = vpack.c.bf16 %v1350_v43, %v1342_v42  ;;  %v1356_v55 = vld [vmem:[#allocation10 + $0xe80] sm:$0xff]  ;;  %v2877_v42 = vadd.f32 %v3293_v58, %v3285_v46  ;;  %v898_v43 = vld [vmem:[#allocation10 + $0x30] sm:$0xff]  ;;  %v969_v30 = vld [vmem:[#allocation10 + $0x268] sm:$0xff] }
 0x288   :  { %2459 = vmatprep.subr.bf16.mxu0 %v2458_v60  ;;  %2587 = vmatprep.subr.bf16.mxu1 %v2586_v61  ;;  %v2602_v60 = vpack.c.bf16 %v1367_v51, %v1359_v48  ;;  %v1358_v61 = vld [vmem:[#allocation10 + $0xe90] sm:$0xff]  ;;  %v2476_v3 = vpack.c.bf16 %v1364_v57, %v1356_v55  ;;  %v921_v48 = vld [vmem:[#allocation10 + $0xe8] sm:$0xff]  ;;  %v915_v51 = vld [vmem:[#allocation10 + $0xb8] sm:$0xff]  ;;  %v2744_v57 = vpack.c.bf16 %v906_v44, %v898_v43 }
 0x289   :  { %v2618_v46 = vpack.c.bf16 %v921_v48, %v913_v45  ;;  %v963_v32 = vld [vmem:[#allocation10 + $0x238] sm:$0xff]  ;;  %v985_v43 = vld [vmem:[#allocation10 + $0x2e8] sm:$0xff] }
 0x28a   :  { %v971_v33 = vld [vmem:[#allocation10 + $0x278] sm:$0xff] }
 0x28b   :  { %2461 = vmatpush1.bf16.msra.mxu0 %v2460_v4  ;;  %2589 = vmatpush1.bf16.msra.mxu1 %v2588_v16  ;;  %v2604_v4 = vpack.c.bf16 %v1366_v62, %v1358_v61  ;;  %v1372_v16 = vld [vmem:[#allocation10 + $0xf00] sm:$0xff]  ;;  %v3320_v61 = vmax.f32 %v2877_v42, 0.0  ;;  %v914_v62 = vld [vmem:[#allocation10 + $0xb0] sm:$0xff]  ;;  %v977_v42 = vld [vmem:[#allocation10 + $0x2a8] sm:$0xff] }
 0x28c   :  { %2463 = vmatprep.subr.bf16.mxu0 %v2462_v8  ;;  %2591 = vmatprep.subr.bf16.mxu1 %v2590_v9  ;;  %v2606_v8 = vpack.c.bf16 %v1383_v2, %v1375_v1  ;;  %v1374_v9 = vld [vmem:[#allocation10 + $0xf10] sm:$0xff]  ;;  %v2480_v34 = vpack.c.bf16 %v1380_v6, %v1372_v16  ;;  %v937_v1 = vld [vmem:[#allocation10 + $0x168] sm:$0xff]  ;;  %v931_v2 = vld [vmem:[#allocation10 + $0x138] sm:$0xff]  ;;  %v2748_v16 = vpack.c.bf16 %v922_v63, %v914_v62 }
 0x28d   :  { %v928_v6 = vld [vmem:[#allocation10 + $0x120] sm:$0xff]  ;;  %v979_v44 = vld [vmem:[#allocation10 + $0x2b8] sm:$0xff] }
 0x28e   :  { %v987_v45 = vld [vmem:[#allocation10 + $0x2f8] sm:$0xff] }
 0x28f   :  { %2465 = vmatpush1.bf16.msra.mxu0 %v2464_v29  ;;  %2593 = vmatpush1.bf16.msra.mxu1 %v2592_v56  ;;  %v2608_v29 = vpack.c.bf16 %v1382_v11, %v1374_v9  ;;  %v1388_v56 = vld [vmem:[#allocation10 + $0xf80] sm:$0xff]  ;;  %v2750_v9 = vpack.c.bf16 %v939_v49, %v931_v2  ;;  %v930_v11 = vld [vmem:[#allocation10 + $0x130] sm:$0xff]  ;;  %v995_v62 = vld [vmem:[#allocation10 + $0x338] sm:$0xff] }
 0x290   :  { %2467 = vmatprep.subr.bf16.mxu0 %v2466_v24  ;;  %2595 = vmatprep.subr.bf16.mxu1 %v2594_v25  ;;  %v2482_v24 = vpack.c.bf16 %v1397_v13, %v1389_v12  ;;  %v2610_v25 = vpack.c.bf16 %v1399_v19, %v1391_v18  ;;  %v938_v12 = vld [vmem:[#allocation10 + $0x170] sm:$0xff]  ;;  %v945_v13 = vld [vmem:[#allocation10 + $0x1a8] sm:$0xff]  ;;  %v947_v19 = vld [vmem:[#allocation10 + $0x1b8] sm:$0xff] }
 0x291   :  { %v953_v18 = vld [vmem:[#allocation10 + $0x1e8] sm:$0xff]  ;;  %v1003_v63 = vld [vmem:[#allocation10 + $0x378] sm:$0xff]  ;;  %v992_v2 = vld [vmem:[#allocation10 + $0x320] sm:$0xff] }
 0x292   :  { %v1000_v49 = vld [vmem:[#allocation10 + $0x360] sm:$0xff] }
 0x293   :  { %2469 = vmatpush1.bf16.msra.mxu0 %v2468_v35  ;;  %2597 = vmatpush1.bf16.msra.mxu1 %v2596_v36  ;;  %v2484_v35 = vpack.c.bf16 %v1396_v22, %v1388_v56  ;;  %v2612_v36 = vpack.c.bf16 %v1398_v28, %v1390_v26  ;;  %v2752_v56 = vpack.c.bf16 %v938_v12, %v930_v11  ;;  %v944_v22 = vld [vmem:[#allocation10 + $0x1a0] sm:$0xff]  ;;  %v946_v26 = vld [vmem:[#allocation10 + $0x1b0] sm:$0xff]  ;;  %v1011_v11 = vld [vmem:[#allocation10 + $0x3b8] sm:$0xff] }
 0x294   :  { %2471 = vmatprep.subr.bf16.mxu0 %v2470_v39  ;;  %2599 = vmatprep.subr.bf16.mxu1 %v2598_v40  ;;  %v896_v39 = vld [vmem:[#allocation10 + $0x20] sm:$0xff]  ;;  %v954_v28 = vld [vmem:[#allocation10 + $0x1f0] sm:$0xff]  ;;  %v1019_v12 = vld [vmem:[#allocation10 + $0x3f8] sm:$0xff] }
 0x295   :  { %v904_v40 = vld [vmem:[#allocation10 + $0x60] sm:$0xff] }
 0x296   :  { %v2616_v55 = vpack.c.bf16 %v904_v40, %v896_v39  ;;  %v962_v39 = vld [vmem:[#allocation10 + $0x230] sm:$0xff] }
 0x297   :  { %2473 = vmatpush1.bf16.msra.mxu0 %v2472_v52  ;;  %2601 = vmatpush1.bf16.msra.mxu1 %v2600_v53  ;;  %v923_v52 = vld [vmem:[#allocation10 + $0xf8] sm:$0xff]  ;;  %v3317_v53 = vmax.f32 %v2874_v37, 0.0  ;;  %v968_v37 = vld [vmem:[#allocation10 + $0x260] sm:$0xff]  ;;  %v970_v40 = vld [vmem:[#allocation10 + $0x270] sm:$0xff] }
 0x298   :  { %2475 = vmatprep.subr.bf16.mxu0 %v2474_v59  ;;  %2603 = vmatprep.subr.bf16.mxu1 %v2602_v60  ;;  %v912_v59 = vld [vmem:[#allocation10 + $0xa0] sm:$0xff]  ;;  %v2746_v58 = vpack.c.bf16 %v923_v52, %v915_v51  ;;  %v2760_v51 = vpack.c.bf16 %v970_v40, %v962_v39  ;;  %v1043_v39 = vld [vmem:[#allocation10 + $0x4b8] sm:$0xff] }
 0x299   :  { %v920_v60 = vld [vmem:[#allocation10 + $0xe0] sm:$0xff]  ;;  %v1051_v40 = vld [vmem:[#allocation10 + $0x4f8] sm:$0xff] }
 0x29a   :  { %v976_v52 = vld [vmem:[#allocation10 + $0x2a0] sm:$0xff] }
 0x29b   :  { %2477 = vmatpush1.bf16.msra.mxu0 %v2476_v3  ;;  %2605 = vmatpush1.bf16.msra.mxu1 %v2604_v4  ;;  %v3326_v3 = vmax.f32 %v2876_v31, 0.0  ;;  %v2620_v4 = vpack.c.bf16 %v920_v60, %v912_v59  ;;  %v984_v31 = vld [vmem:[#allocation10 + $0x2e0] sm:$0xff]  ;;  %v978_v59 = vld [vmem:[#allocation10 + $0x2b0] sm:$0xff] }
 0x29c   :  { %2479 = vmatprep.subr.bf16.mxu0 %v2478_v7  ;;  %2607 = vmatprep.subr.bf16.mxu1 %v2606_v8  ;;  %v936_v7 = vld [vmem:[#allocation10 + $0x160] sm:$0xff]  ;;  %v2622_v8 = vpack.c.bf16 %v937_v1, %v929_v0  ;;  %v986_v60 = vld [vmem:[#allocation10 + $0x2f0] sm:$0xff]  ;;  %v2636_v0 = vpack.c.bf16 %v984_v31, %v976_v52 }
 0x29d   :  { %v2764_v1 = vpack.c.bf16 %v986_v60, %v978_v59  ;;  %v1042_v52 = vld [vmem:[#allocation10 + $0x4b0] sm:$0xff]  ;;  %v1059_v59 = vld [vmem:[#allocation10 + $0x538] sm:$0xff] }
 0x29e   :  { %v1050_v31 = vld [vmem:[#allocation10 + $0x4f0] sm:$0xff]  ;;  %v1067_v60 = vld [vmem:[#allocation10 + $0x578] sm:$0xff] }
 0x29f   :  { %2481 = vmatpush1.bf16.msra.mxu0 %v2480_v34  ;;  %2609 = vmatpush1.bf16.msra.mxu1 %v2608_v29  ;;  %v955_v34 = vld [vmem:[#allocation10 + $0x1f8] sm:$0xff]  ;;  %v2624_v29 = vpack.c.bf16 %v936_v7, %v928_v6  ;;  %v994_v6 = vld [vmem:[#allocation10 + $0x330] sm:$0xff] }
 0x2a0   :  { %2483 = vmatprep.subr.bf16.mxu0 %v2482_v24  ;;  %2611 = vmatprep.subr.bf16.mxu1 %v2610_v25  ;;  %v2626_v24 = vpack.c.bf16 %v953_v18, %v945_v13  ;;  %v2754_v25 = vpack.c.bf16 %v955_v34, %v947_v19  ;;  %v1002_v7 = vld [vmem:[#allocation10 + $0x370] sm:$0xff]  ;;  %v2640_v13 = vpack.c.bf16 %v1000_v49, %v992_v2  ;;  %v1008_v19 = vld [vmem:[#allocation10 + $0x3a0] sm:$0xff] }
 0x2a1   :  { %v2768_v18 = vpack.c.bf16 %v1002_v7, %v994_v6  ;;  %v1016_v34 = vld [vmem:[#allocation10 + $0x3e0] sm:$0xff]  ;;  %v1058_v2 = vld [vmem:[#allocation10 + $0x530] sm:$0xff]  ;;  %v1075_v6 = vld [vmem:[#allocation10 + $0x5b8] sm:$0xff] }
 0x2a2   :  { %v1066_v49 = vld [vmem:[#allocation10 + $0x570] sm:$0xff]  ;;  %v1083_v7 = vld [vmem:[#allocation10 + $0x5f8] sm:$0xff] }
 0x2a3   :  { %2485 = vmatpush1.bf16.msra.mxu0 %v2484_v35  ;;  %2613 = vmatpush1.bf16.msra.mxu1 %v2612_v36  ;;  %v2628_v35 = vpack.c.bf16 %v952_v23, %v944_v22  ;;  %v960_v36 = vld [vmem:[#allocation10 + $0x220] sm:$0xff]  ;;  %v1010_v22 = vld [vmem:[#allocation10 + $0x3b0] sm:$0xff] }
 0x2a4   :  { %2615 = vmatprep.subr.bf16.mxu0 %v2614_v38  ;;  %2743 = vmatprep.subr.bf16.mxu1 %v2742_v27  ;;  %v2630_v38 = vpack.c.bf16 %v969_v30, %v961_v50  ;;  %v2758_v27 = vpack.c.bf16 %v971_v33, %v963_v32  ;;  %v2632_v48 = vpack.c.bf16 %v968_v37, %v960_v36  ;;  %v1018_v23 = vld [vmem:[#allocation10 + $0x3f0] sm:$0xff]  ;;  %v1024_v32 = vld [vmem:[#allocation10 + $0x420] sm:$0xff] }
 0x2a5   :  { %v2644_v50 = vpack.c.bf16 %v1016_v34, %v1008_v19  ;;  %v2772_v30 = vpack.c.bf16 %v1018_v23, %v1010_v22  ;;  %v1032_v33 = vld [vmem:[#allocation10 + $0x460] sm:$0xff]  ;;  %v1026_v36 = vld [vmem:[#allocation10 + $0x430] sm:$0xff]  ;;  %v1091_v22 = vld [vmem:[#allocation10 + $0x638] sm:$0xff] }
 0x2a6   :  { %1588 = vmatmul.mubr.f32.vlgmr.msra.gmra.mrb[8].mxu0 %v3317_v53  ;;  %1742 = vmatmul.mubr.f32.vlgmr.msra.gmra.mrb[8].mxu1 %v3317_v53  ;;  %v1034_v37 = vld [vmem:[#allocation10 + $0x470] sm:$0xff]  ;;  %v1099_v23 = vld [vmem:[#allocation10 + $0x678] sm:$0xff] }
 0x2a7   :  { %1593 = vmatprep.mubr.f32.mxu0 %v3320_v61  ;;  %1747 = vmatprep.mubr.f32.mxu1 %v3320_v61  ;;  %v1074_v19 = vld [vmem:[#allocation10 + $0x5b0] sm:$0xff] }
 0x2a8   :  { %2617 = vmatpush1.bf16.msra.mxu0 %v2616_v55  ;;  %2745 = vmatpush1.bf16.msra.mxu1 %v2744_v57  ;;  %v2634_v55 = vpack.c.bf16 %v985_v43, %v977_v42  ;;  %v2762_v57 = vpack.c.bf16 %v987_v45, %v979_v44  ;;  %v2648_v42 = vpack.c.bf16 %v1032_v33, %v1024_v32  ;;  %v1040_v44 = vld [vmem:[#allocation10 + $0x4a0] sm:$0xff]  ;;  %v1082_v34 = vld [vmem:[#allocation10 + $0x5f0] sm:$0xff] }
 0x2a9   :  { %2619 = vmatprep.subr.bf16.mxu0 %v2618_v46  ;;  %2747 = vmatprep.subr.bf16.mxu1 %v2746_v58  ;;  %v993_v46 = vld [vmem:[#allocation10 + $0x328] sm:$0xff]  ;;  %v2776_v43 = vpack.c.bf16 %v1034_v37, %v1026_v36  ;;  %v1048_v45 = vld [vmem:[#allocation10 + $0x4e0] sm:$0xff]  ;;  %v1090_v32 = vld [vmem:[#allocation10 + $0x630] sm:$0xff] }
 0x2aa   :  { %1594 = vmatmul.mubr.f32.gmra.mrb[10].mxu0 %v3326_v3  ;;  %1748 = vmatmul.mubr.f32.gmra.mrb[10].mxu1 %v3326_v3  ;;  %v1001_v58 = vld [vmem:[#allocation10 + $0x368] sm:$0xff]  ;;  %v1098_v33 = vld [vmem:[#allocation10 + $0x670] sm:$0xff]  ;;  %v1107_v36 = vld [vmem:[#allocation10 + $0x6b8] sm:$0xff] }
 0x2ab   :  { %1818 = vmatprep.mubr.f32.mxu0 %v3287_v47  ;;  %1972 = vmatprep.mubr.f32.mxu1 %v3287_v47  ;;  %v2756_v47 = vpack.c.bf16 %v954_v28, %v946_v26  ;;  %v1027_v26 = vld [vmem:[#allocation10 + $0x438] sm:$0xff] }
 0x2ac   :  { %2621 = vmatpush1.bf16.msra.mxu0 %v2620_v4  ;;  %2749 = vmatpush1.bf16.msra.mxu1 %v2748_v16  ;;  %v2638_v4 = vpack.c.bf16 %v1001_v58, %v993_v46  ;;  %v2766_v16 = vpack.c.bf16 %v1003_v63, %v995_v62  ;;  %v1035_v28 = vld [vmem:[#allocation10 + $0x478] sm:$0xff]  ;;  %v2652_v46 = vpack.c.bf16 %v1048_v45, %v1040_v44  ;;  %v1056_v62 = vld [vmem:[#allocation10 + $0x520] sm:$0xff]  ;;  %v1106_v44 = vld [vmem:[#allocation10 + $0x6b0] sm:$0xff] }
 0x2ad   :  { %2623 = vmatprep.subr.bf16.mxu0 %v2622_v8  ;;  %2751 = vmatprep.subr.bf16.mxu1 %v2750_v9  ;;  %v1009_v8 = vld [vmem:[#allocation10 + $0x3a8] sm:$0xff]  ;;  %v2780_v58 = vpack.c.bf16 %v1050_v31, %v1042_v52  ;;  %v1064_v63 = vld [vmem:[#allocation10 + $0x560] sm:$0xff]  ;;  %v1115_v37 = vld [vmem:[#allocation10 + $0x6f8] sm:$0xff] }
 0x2ae   :  { %v1017_v9 = vld [vmem:[#allocation10 + $0x3e8] sm:$0xff]  ;;  %v1114_v45 = vld [vmem:[#allocation10 + $0x6f0] sm:$0xff]  ;;  %v1123_v52 = vld [vmem:[#allocation10 + $0x738] sm:$0xff] }
 0x2af   :  { %v1131_v31 = vld [vmem:[#allocation10 + $0x778] sm:$0xff] }
 0x2b0   :  { %2625 = vmatpush1.bf16.msra.mxu0 %v2624_v29  ;;  %2753 = vmatpush1.bf16.msra.mxu1 %v2752_v56  ;;  %v2642_v29 = vpack.c.bf16 %v1017_v9, %v1009_v8  ;;  %v2770_v56 = vpack.c.bf16 %v1019_v12, %v1011_v11  ;;  %v2656_v8 = vpack.c.bf16 %v1064_v63, %v1056_v62  ;;  %v1072_v11 = vld [vmem:[#allocation10 + $0x5a0] sm:$0xff]  ;;  %v1122_v62 = vld [vmem:[#allocation10 + $0x730] sm:$0xff] }
 0x2b1   :  { %2627 = vmatprep.subr.bf16.mxu0 %v2626_v24  ;;  %2755 = vmatprep.subr.bf16.mxu1 %v2754_v25  ;;  %v1025_v24 = vld [vmem:[#allocation10 + $0x428] sm:$0xff]  ;;  %v2784_v9 = vpack.c.bf16 %v1066_v49, %v1058_v2  ;;  %v1080_v12 = vld [vmem:[#allocation10 + $0x5e0] sm:$0xff]  ;;  %v1130_v63 = vld [vmem:[#allocation10 + $0x770] sm:$0xff] }
 0x2b2   :  { %v1033_v25 = vld [vmem:[#allocation10 + $0x468] sm:$0xff]  ;;  %v1139_v2 = vld [vmem:[#allocation10 + $0x7b8] sm:$0xff] }
 0x2b3   :  { %v1147_v49 = vld [vmem:[#allocation10 + $0x7f8] sm:$0xff] }
 0x2b4   :  { %2629 = vmatpush1.bf16.msra.mxu0 %v2628_v35  ;;  %2757 = vmatpush1.bf16.msra.mxu1 %v2756_v47  ;;  %v2646_v35 = vpack.c.bf16 %v1033_v25, %v1025_v24  ;;  %v2774_v47 = vpack.c.bf16 %v1035_v28, %v1027_v26  ;;  %v2660_v24 = vpack.c.bf16 %v1080_v12, %v1072_v11  ;;  %v1088_v26 = vld [vmem:[#allocation10 + $0x620] sm:$0xff]  ;;  %v1138_v11 = vld [vmem:[#allocation10 + $0x7b0] sm:$0xff] }
 0x2b5   :  { %2631 = vmatprep.subr.bf16.mxu0 %v2630_v38  ;;  %2759 = vmatprep.subr.bf16.mxu1 %v2758_v27  ;;  %v1041_v38 = vld [vmem:[#allocation10 + $0x4a8] sm:$0xff]  ;;  %v2788_v25 = vpack.c.bf16 %v1082_v34, %v1074_v19  ;;  %v1096_v28 = vld [vmem:[#allocation10 + $0x660] sm:$0xff]  ;;  %v1146_v12 = vld [vmem:[#allocation10 + $0x7f0] sm:$0xff] }
 0x2b6   :  { %v1049_v27 = vld [vmem:[#allocation10 + $0x4e8] sm:$0xff]  ;;  %v1155_v19 = vld [vmem:[#allocation10 + $0x838] sm:$0xff] }
 0x2b7   :  { %v1163_v34 = vld [vmem:[#allocation10 + $0x878] sm:$0xff] }
 0x2b8   :  { %2633 = vmatpush1.bf16.msra.mxu0 %v2632_v48  ;;  %2761 = vmatpush1.bf16.msra.mxu1 %v2760_v51  ;;  %v2650_v48 = vpack.c.bf16 %v1049_v27, %v1041_v38  ;;  %v2778_v51 = vpack.c.bf16 %v1051_v40, %v1043_v39  ;;  %v2664_v38 = vpack.c.bf16 %v1096_v28, %v1088_v26  ;;  %v1104_v39 = vld [vmem:[#allocation10 + $0x6a0] sm:$0xff]  ;;  %v1154_v26 = vld [vmem:[#allocation10 + $0x830] sm:$0xff] }
 0x2b9   :  { %2635 = vmatprep.subr.bf16.mxu0 %v2634_v55  ;;  %2763 = vmatprep.subr.bf16.mxu1 %v2762_v57  ;;  %v1057_v55 = vld [vmem:[#allocation10 + $0x528] sm:$0xff]  ;;  %v2792_v27 = vpack.c.bf16 %v1098_v33, %v1090_v32  ;;  %v1112_v40 = vld [vmem:[#allocation10 + $0x6e0] sm:$0xff]  ;;  %v1162_v28 = vld [vmem:[#allocation10 + $0x870] sm:$0xff] }
 0x2ba   :  { %v1065_v57 = vld [vmem:[#allocation10 + $0x568] sm:$0xff]  ;;  %v1171_v32 = vld [vmem:[#allocation10 + $0x8b8] sm:$0xff] }
 0x2bb   :  { %v1179_v33 = vld [vmem:[#allocation10 + $0x8f8] sm:$0xff] }
 0x2bc   :  { %2637 = vmatpush1.bf16.msra.mxu0 %v2636_v0  ;;  %2765 = vmatpush1.bf16.msra.mxu1 %v2764_v1  ;;  %v2654_v0 = vpack.c.bf16 %v1065_v57, %v1057_v55  ;;  %v2782_v1 = vpack.c.bf16 %v1067_v60, %v1059_v59  ;;  %v2668_v55 = vpack.c.bf16 %v1112_v40, %v1104_v39  ;;  %v1120_v59 = vld [vmem:[#allocation10 + $0x720] sm:$0xff]  ;;  %v1170_v39 = vld [vmem:[#allocation10 + $0x8b0] sm:$0xff] }
 0x2bd   :  { %2639 = vmatprep.subr.bf16.mxu0 %v2638_v4  ;;  %2767 = vmatprep.subr.bf16.mxu1 %v2766_v16  ;;  %v1073_v4 = vld [vmem:[#allocation10 + $0x5a8] sm:$0xff]  ;;  %v2796_v57 = vpack.c.bf16 %v1114_v45, %v1106_v44  ;;  %v1128_v60 = vld [vmem:[#allocation10 + $0x760] sm:$0xff]  ;;  %v1178_v40 = vld [vmem:[#allocation10 + $0x8f0] sm:$0xff] }
 0x2be   :  { %v1081_v16 = vld [vmem:[#allocation10 + $0x5e8] sm:$0xff]  ;;  %v1187_v44 = vld [vmem:[#allocation10 + $0x938] sm:$0xff] }
 0x2bf   :  { %v1195_v45 = vld [vmem:[#allocation10 + $0x978] sm:$0xff] }
 0x2c0   :  { %2641 = vmatpush1.bf16.msra.mxu0 %v2640_v13  ;;  %2769 = vmatpush1.bf16.msra.mxu1 %v2768_v18  ;;  %v2658_v13 = vpack.c.bf16 %v1081_v16, %v1073_v4  ;;  %v2786_v18 = vpack.c.bf16 %v1083_v7, %v1075_v6  ;;  %v2672_v4 = vpack.c.bf16 %v1128_v60, %v1120_v59  ;;  %v1136_v6 = vld [vmem:[#allocation10 + $0x7a0] sm:$0xff]  ;;  %v1194_v60 = vld [vmem:[#allocation10 + $0x970] sm:$0xff] }
 0x2c1   :  { %2643 = vmatprep.subr.bf16.mxu0 %v2642_v29  ;;  %2771 = vmatprep.subr.bf16.mxu1 %v2770_v56  ;;  %v1089_v29 = vld [vmem:[#allocation10 + $0x628] sm:$0xff]  ;;  %v2800_v16 = vpack.c.bf16 %v1130_v63, %v1122_v62  ;;  %v1144_v7 = vld [vmem:[#allocation10 + $0x7e0] sm:$0xff]  ;;  %v2814_v59 = vpack.c.bf16 %v1195_v45, %v1187_v44  ;;  %v1211_v62 = vld [vmem:[#allocation10 + $0x9f8] sm:$0xff] }
 0x2c2   :  { %v1097_v56 = vld [vmem:[#allocation10 + $0x668] sm:$0xff]  ;;  %v1258_v45 = vld [vmem:[#allocation10 + $0xb70] sm:$0xff] }
 0x2c4   :  { %2645 = vmatpush1.bf16.msra.mxu0 %v2644_v50  ;;  %2773 = vmatpush1.bf16.msra.mxu1 %v2772_v30  ;;  %v2662_v50 = vpack.c.bf16 %v1097_v56, %v1089_v29  ;;  %v2790_v30 = vpack.c.bf16 %v1099_v23, %v1091_v22  ;;  %v2676_v29 = vpack.c.bf16 %v1144_v7, %v1136_v6  ;;  %v1217_v6 = vld [vmem:[#allocation10 + $0xa28] sm:$0xff]  ;;  %v1219_v7 = vld [vmem:[#allocation10 + $0xa38] sm:$0xff] }
 0x2c5   :  { %2647 = vmatprep.subr.bf16.mxu0 %v2646_v35  ;;  %2775 = vmatprep.subr.bf16.mxu1 %v2774_v47  ;;  %v1105_v35 = vld [vmem:[#allocation10 + $0x6a8] sm:$0xff]  ;;  %v2804_v56 = vpack.c.bf16 %v1146_v12, %v1138_v11  ;;  %v2806_v23 = vpack.c.bf16 %v1163_v34, %v1155_v19  ;;  %v1226_v34 = vld [vmem:[#allocation10 + $0xa70] sm:$0xff] }
 0x2c6   :  { %v1113_v47 = vld [vmem:[#allocation10 + $0x6e8] sm:$0xff] }
 0x2c8   :  { %2649 = vmatpush1.bf16.msra.mxu0 %v2648_v42  ;;  %2777 = vmatpush1.bf16.msra.mxu1 %v2776_v43  ;;  %v2666_v42 = vpack.c.bf16 %v1113_v47, %v1105_v35  ;;  %v2794_v43 = vpack.c.bf16 %v1115_v37, %v1107_v36  ;;  %v2808_v47 = vpack.c.bf16 %v1162_v28, %v1154_v26  ;;  %v1168_v36 = vld [vmem:[#allocation10 + $0x8a0] sm:$0xff] }
 0x2c9   :  { %2651 = vmatprep.subr.bf16.mxu0 %v2650_v48  ;;  %2779 = vmatprep.subr.bf16.mxu1 %v2778_v51  ;;  %v1121_v48 = vld [vmem:[#allocation10 + $0x728] sm:$0xff]  ;;  %v1176_v37 = vld [vmem:[#allocation10 + $0x8e0] sm:$0xff] }
 0x2ca   :  { %v1129_v51 = vld [vmem:[#allocation10 + $0x768] sm:$0xff]  ;;  %v1232_v28 = vld [vmem:[#allocation10 + $0xaa0] sm:$0xff] }
 0x2cc   :  { %2653 = vmatpush1.bf16.msra.mxu0 %v2652_v46  ;;  %2781 = vmatpush1.bf16.msra.mxu1 %v2780_v58  ;;  %v2670_v46 = vpack.c.bf16 %v1129_v51, %v1121_v48  ;;  %v2798_v58 = vpack.c.bf16 %v1131_v31, %v1123_v52  ;;  %v2684_v48 = vpack.c.bf16 %v1176_v37, %v1168_v36  ;;  %v1184_v52 = vld [vmem:[#allocation10 + $0x920] sm:$0xff]  ;;  %v1251_v36 = vld [vmem:[#allocation10 + $0xb38] sm:$0xff] }
 0x2cd   :  { %2655 = vmatprep.subr.bf16.mxu0 %v2654_v0  ;;  %2783 = vmatprep.subr.bf16.mxu1 %v2782_v1  ;;  %v1137_v0 = vld [vmem:[#allocation10 + $0x7a8] sm:$0xff]  ;;  %v2812_v51 = vpack.c.bf16 %v1178_v40, %v1170_v39  ;;  %v1192_v31 = vld [vmem:[#allocation10 + $0x960] sm:$0xff]  ;;  %v1259_v37 = vld [vmem:[#allocation10 + $0xb78] sm:$0xff] }
 0x2ce   :  { %v1145_v1 = vld [vmem:[#allocation10 + $0x7e8] sm:$0xff]  ;;  %v1248_v40 = vld [vmem:[#allocation10 + $0xb20] sm:$0xff]  ;;  %v2830_v44 = vpack.c.bf16 %v1259_v37, %v1251_v36  ;;  %v1322_v37 = vld [vmem:[#allocation10 + $0xd70] sm:$0xff] }
 0x2d0   :  { %2657 = vmatpush1.bf16.msra.mxu0 %v2656_v8  ;;  %2785 = vmatpush1.bf16.msra.mxu1 %v2784_v9  ;;  %v2674_v8 = vpack.c.bf16 %v1145_v1, %v1137_v0  ;;  %v2802_v9 = vpack.c.bf16 %v1147_v49, %v1139_v2  ;;  %v1200_v1 = vld [vmem:[#allocation10 + $0x9a0] sm:$0xff]  ;;  %v1202_v49 = vld [vmem:[#allocation10 + $0x9b0] sm:$0xff] }
 0x2d1   :  { %2659 = vmatprep.subr.bf16.mxu0 %v2658_v13  ;;  %2787 = vmatprep.subr.bf16.mxu1 %v2786_v18  ;;  %v1153_v13 = vld [vmem:[#allocation10 + $0x828] sm:$0xff]  ;;  %v1208_v2 = vld [vmem:[#allocation10 + $0x9e0] sm:$0xff] }
 0x2d2   :  { %v1161_v18 = vld [vmem:[#allocation10 + $0x868] sm:$0xff] }
 0x2d3   :  { %v2678_v22 = vpack.c.bf16 %v1161_v18, %v1153_v13  ;;  %v1224_v13 = vld [vmem:[#allocation10 + $0xa60] sm:$0xff]  ;;  %v1218_v18 = vld [vmem:[#allocation10 + $0xa30] sm:$0xff] }
 0x2d4   :  { %2661 = vmatpush1.bf16.msra.mxu0 %v2660_v24  ;;  %2789 = vmatpush1.bf16.msra.mxu1 %v2788_v25  ;;  %v1152_v24 = vld [vmem:[#allocation10 + $0x820] sm:$0xff] }
 0x2d5   :  { %2663 = vmatprep.subr.bf16.mxu0 %v2662_v50  ;;  %2791 = vmatprep.subr.bf16.mxu1 %v2790_v30  ;;  %v1160_v25 = vld [vmem:[#allocation10 + $0x860] sm:$0xff]  ;;  %v1169_v50 = vld [vmem:[#allocation10 + $0x8a8] sm:$0xff] }
 0x2d6   :  { %v1177_v30 = vld [vmem:[#allocation10 + $0x8e8] sm:$0xff]  ;;  %v2680_v35 = vpack.c.bf16 %v1160_v25, %v1152_v24  ;;  %v2824_v25 = vpack.c.bf16 %v1226_v34, %v1218_v18  ;;  %v1296_v34 = vld [vmem:[#allocation10 + $0xca0] sm:$0xff] }
 0x2d8   :  { %2665 = vmatpush1.bf16.msra.mxu0 %v2664_v38  ;;  %2793 = vmatpush1.bf16.msra.mxu1 %v2792_v27  ;;  %v2682_v38 = vpack.c.bf16 %v1177_v30, %v1169_v50  ;;  %v2810_v27 = vpack.c.bf16 %v1179_v33, %v1171_v32  ;;  %v1240_v50 = vld [vmem:[#allocation10 + $0xae0] sm:$0xff]  ;;  %v1234_v30 = vld [vmem:[#allocation10 + $0xab0] sm:$0xff] }
 0x2d9   :  { %2667 = vmatprep.subr.bf16.mxu0 %v2666_v42  ;;  %2795 = vmatprep.subr.bf16.mxu1 %v2794_v43  ;;  %v1185_v42 = vld [vmem:[#allocation10 + $0x928] sm:$0xff]  ;;  %v1242_v33 = vld [vmem:[#allocation10 + $0xaf0] sm:$0xff] }
 0x2da   :  { %v1193_v43 = vld [vmem:[#allocation10 + $0x968] sm:$0xff] }
 0x2dc   :  { %2669 = vmatpush1.bf16.msra.mxu0 %v2668_v55  ;;  %2797 = vmatpush1.bf16.msra.mxu1 %v2796_v57  ;;  %v1186_v55 = vld [vmem:[#allocation10 + $0x930] sm:$0xff]  ;;  %v2686_v57 = vpack.c.bf16 %v1193_v43, %v1185_v42  ;;  %v1256_v42 = vld [vmem:[#allocation10 + $0xb60] sm:$0xff] }
 0x2dd   :  { %2671 = vmatprep.subr.bf16.mxu0 %v2670_v46  ;;  %2799 = vmatprep.subr.bf16.mxu1 %v2798_v58  ;;  %v1209_v46 = vld [vmem:[#allocation10 + $0x9e8] sm:$0xff]  ;;  %v1203_v58 = vld [vmem:[#allocation10 + $0x9b8] sm:$0xff]  ;;  %v2816_v63 = vpack.c.bf16 %v1194_v60, %v1186_v55  ;;  %v1250_v43 = vld [vmem:[#allocation10 + $0xb30] sm:$0xff]  ;;  %v2704_v55 = vpack.c.bf16 %v1256_v42, %v1248_v40 }
 0x2de   :  { %v1264_v60 = vld [vmem:[#allocation10 + $0xba0] sm:$0xff]  ;;  %v1339_v40 = vld [vmem:[#allocation10 + $0xdf8] sm:$0xff] }
 0x2e0   :  { %2673 = vmatpush1.bf16.msra.mxu0 %v2672_v4  ;;  %2801 = vmatpush1.bf16.msra.mxu1 %v2800_v16  ;;  %v2818_v4 = vpack.c.bf16 %v1211_v62, %v1203_v58  ;;  %v1210_v16 = vld [vmem:[#allocation10 + $0x9f0] sm:$0xff] }
 0x2e1   :  { %2675 = vmatprep.subr.bf16.mxu0 %v2674_v8  ;;  %2803 = vmatprep.subr.bf16.mxu1 %v2802_v9  ;;  %v1227_v8 = vld [vmem:[#allocation10 + $0xa78] sm:$0xff]  ;;  %v2692_v9 = vpack.c.bf16 %v1208_v2, %v1200_v1  ;;  %v2820_v11 = vpack.c.bf16 %v1210_v16, %v1202_v49  ;;  %v1274_v62 = vld [vmem:[#allocation10 + $0xbf0] sm:$0xff]  ;;  %v1280_v16 = vld [vmem:[#allocation10 + $0xc20] sm:$0xff] }
 0x2e2   :  { %v2822_v19 = vpack.c.bf16 %v1227_v8, %v1219_v7  ;;  %v1291_v1 = vld [vmem:[#allocation10 + $0xc78] sm:$0xff]  ;;  %v1290_v8 = vld [vmem:[#allocation10 + $0xc70] sm:$0xff] }
 0x2e4   :  { %2677 = vmatpush1.bf16.msra.mxu0 %v2676_v29  ;;  %2805 = vmatpush1.bf16.msra.mxu1 %v2804_v56  ;;  %v1233_v29 = vld [vmem:[#allocation10 + $0xaa8] sm:$0xff] }
 0x2e5   :  { %2679 = vmatprep.subr.bf16.mxu0 %v2678_v22  ;;  %2807 = vmatprep.subr.bf16.mxu1 %v2806_v23  ;;  %v1241_v56 = vld [vmem:[#allocation10 + $0xae8] sm:$0xff]  ;;  %v1235_v22 = vld [vmem:[#allocation10 + $0xab8] sm:$0xff] }
 0x2e6   :  { %v1243_v23 = vld [vmem:[#allocation10 + $0xaf8] sm:$0xff]  ;;  %v2698_v26 = vpack.c.bf16 %v1241_v56, %v1233_v29  ;;  %v1304_v29 = vld [vmem:[#allocation10 + $0xce0] sm:$0xff]  ;;  %v1298_v56 = vld [vmem:[#allocation10 + $0xcb0] sm:$0xff] }
 0x2e7   :  { %1819 = vmatmul.mubr.f32.vlgmr.msra.gmra.mrb[12].mxu0 %v3291_v54  ;;  %1973 = vmatmul.mubr.f32.vlgmr.msra.gmra.mrb[12].mxu1 %v3291_v54  ;;  %v1201_v54 = vld [vmem:[#allocation10 + $0x9a8] sm:$0xff]  ;;  %v2826_v32 = vpack.c.bf16 %v1243_v23, %v1235_v22  ;;  %v1306_v23 = vld [vmem:[#allocation10 + $0xcf0] sm:$0xff] }
 0x2e8   :  { %1824 = vmatprep.mubr.f32.mxu0 %v3300_v5  ;;  %2681 = vmatpush1.bf16.msra.mxu0 %v2680_v35  ;;  %v2690_v0 = vpack.c.bf16 %v1209_v46, %v1201_v54  ;;  %v1249_v35 = vld [vmem:[#allocation10 + $0xb28] sm:$0xff]  ;;  %v1272_v54 = vld [vmem:[#allocation10 + $0xbe0] sm:$0xff]  ;;  %v1266_v46 = vld [vmem:[#allocation10 + $0xbb0] sm:$0xff] }
 0x2e9   :  { %1978 = vmatprep.mubr.f32.mxu1 %v3300_v5  ;;  %2809 = vmatpush1.bf16.msra.mxu1 %v2808_v47  ;;  %v2688_v5 = vpack.c.bf16 %v1192_v31, %v1184_v52  ;;  %v1257_v47 = vld [vmem:[#allocation10 + $0xb68] sm:$0xff]  ;;  %v1267_v52 = vld [vmem:[#allocation10 + $0xbb8] sm:$0xff]  ;;  %v2708_v2 = vpack.c.bf16 %v1272_v54, %v1264_v60  ;;  %v2836_v49 = vpack.c.bf16 %v1274_v62, %v1266_v46  ;;  %v1344_v62 = vld [vmem:[#allocation10 + $0xe20] sm:$0xff] }
 0x2ea   :  { %2683 = vmatprep.subr.bf16.mxu0 %v2682_v38  ;;  %2811 = vmatprep.subr.bf16.mxu1 %v2810_v27  ;;  %v2700_v38 = vpack.c.bf16 %v1240_v50, %v1232_v28  ;;  %v2828_v27 = vpack.c.bf16 %v1242_v33, %v1234_v30  ;;  %v2702_v39 = vpack.c.bf16 %v1257_v47, %v1249_v35  ;;  %v1275_v31 = vld [vmem:[#allocation10 + $0xbf8] sm:$0xff]  ;;  %v1312_v33 = vld [vmem:[#allocation10 + $0xd20] sm:$0xff]  ;;  %v1314_v47 = vld [vmem:[#allocation10 + $0xd30] sm:$0xff] }
 0x2eb   :  { %1825 = vmatmul.mubr.f32.gmra.mrb[14].mxu0 %v3302_v10  ;;  %1979 = vmatmul.mubr.f32.gmra.mrb[14].mxu1 %v3302_v10  ;;  %v1225_v10 = vld [vmem:[#allocation10 + $0xa68] sm:$0xff]  ;;  %v2834_v58 = vpack.c.bf16 %v1275_v31, %v1267_v52  ;;  %v1323_v28 = vld [vmem:[#allocation10 + $0xd78] sm:$0xff]  ;;  %v2716_v50 = vpack.c.bf16 %v1304_v29, %v1296_v34  ;;  %v2844_v30 = vpack.c.bf16 %v1306_v23, %v1298_v56  ;;  %v1320_v35 = vld [vmem:[#allocation10 + $0xd60] sm:$0xff] }
 0x2ec   :  { %2685 = vmatpush1.bf16.msra.mxu0 %v2684_v48  ;;  %1895 = vmatprep.mubr.f32.mxu0 %v3306_v21  ;;  %v2694_v12 = vpack.c.bf16 %v1225_v10, %v1217_v6  ;;  %v1265_v48 = vld [vmem:[#allocation10 + $0xba8] sm:$0xff]  ;;  %v1288_v6 = vld [vmem:[#allocation10 + $0xc60] sm:$0xff]  ;;  %v1282_v10 = vld [vmem:[#allocation10 + $0xc30] sm:$0xff]  ;;  %v2720_v42 = vpack.c.bf16 %v1320_v35, %v1312_v33 }
 0x2ed   :  { %2813 = vmatpush1.bf16.msra.mxu1 %v2812_v51  ;;  %2049 = vmatprep.mubr.f32.mxu1 %v3306_v21  ;;  %v1216_v21 = vld [vmem:[#allocation10 + $0xa20] sm:$0xff]  ;;  %v1273_v51 = vld [vmem:[#allocation10 + $0xbe8] sm:$0xff]  ;;  %v2840_v18 = vpack.c.bf16 %v1290_v8, %v1282_v10  ;;  %v1338_v31 = vld [vmem:[#allocation10 + $0xdf0] sm:$0xff] }
 0x2ee   :  { %2687 = vmatprep.subr.bf16.mxu0 %v2686_v57  ;;  %2815 = vmatprep.subr.bf16.mxu1 %v2814_v59  ;;  %v2696_v24 = vpack.c.bf16 %v1224_v13, %v1216_v21  ;;  %v2832_v57 = vpack.c.bf16 %v1258_v45, %v1250_v43  ;;  %v2706_v59 = vpack.c.bf16 %v1273_v51, %v1265_v48  ;;  %v1307_v21 = vld [vmem:[#allocation10 + $0xcf8] sm:$0xff]  ;;  %v1328_v45 = vld [vmem:[#allocation10 + $0xda0] sm:$0xff]  ;;  %v1330_v51 = vld [vmem:[#allocation10 + $0xdb0] sm:$0xff] }
 0x2ef   :  { %v2712_v13 = vpack.c.bf16 %v1288_v6, %v1280_v16  ;;  %v2848_v43 = vpack.c.bf16 %v1322_v37, %v1314_v47  ;;  %v1336_v48 = vld [vmem:[#allocation10 + $0xde0] sm:$0xff]  ;;  %v1355_v60 = vld [vmem:[#allocation10 + $0xe78] sm:$0xff]  ;;  %v2852_v46 = vpack.c.bf16 %v1338_v31, %v1330_v51 }
 0x2f0   :  { %2689 = vmatpush1.bf16.msra.mxu0 %v2688_v5  ;;  %v1281_v5 = vld [vmem:[#allocation10 + $0xc28] sm:$0xff]  ;;  %v2724_v54 = vpack.c.bf16 %v1336_v48, %v1328_v45  ;;  %v1371_v16 = vld [vmem:[#allocation10 + $0xef8] sm:$0xff]  ;;  %v1360_v8 = vld [vmem:[#allocation10 + $0xea0] sm:$0xff] }
 0x2f1   :  { %2817 = vmatpush1.bf16.msra.mxu1 %v2816_v63  ;;  %2691 = vmatprep.subr.bf16.mxu0 %v2690_v0  ;;  %v1289_v63 = vld [vmem:[#allocation10 + $0xc68] sm:$0xff]  ;;  %v1283_v0 = vld [vmem:[#allocation10 + $0xc38] sm:$0xff]  ;;  %v1376_v23 = vld [vmem:[#allocation10 + $0xf20] sm:$0xff] }
 0x2f2   :  { %2819 = vmatprep.subr.bf16.mxu1 %v2818_v4  ;;  %v2710_v4 = vpack.c.bf16 %v1289_v63, %v1281_v5  ;;  %v2838_v7 = vpack.c.bf16 %v1291_v1, %v1283_v0  ;;  %v1352_v5 = vld [vmem:[#allocation10 + $0xe60] sm:$0xff]  ;;  %v1346_v63 = vld [vmem:[#allocation10 + $0xe30] sm:$0xff]  ;;  %v1387_v34 = vld [vmem:[#allocation10 + $0xf78] sm:$0xff] }
 0x2f3   :  { %v1354_v1 = vld [vmem:[#allocation10 + $0xe70] sm:$0xff]  ;;  %v2728_v6 = vpack.c.bf16 %v1352_v5, %v1344_v62  ;;  %v1403_v33 = vld [vmem:[#allocation10 + $0xff8] sm:$0xff]  ;;  %v1392_v37 = vld [vmem:[#allocation10 + $0xfa0] sm:$0xff]  ;;  %v1424_v5 = vsub.s32 4, %v3238_v14 }
 0x2f4   :  { %2693 = vmatpush1.bf16.msra.mxu0 %v2692_v9  ;;  %v1297_v9 = vld [vmem:[#allocation10 + $0xca8] sm:$0xff]  ;;  %v2856_v10 = vpack.c.bf16 %v1354_v1, %v1346_v63  ;;  %v1432_v63 = vsub.s32 6, %v3238_v14  ;;  %v1436_v1 = vsub.s32 7, %v3238_v14 }
 0x2f5   :  { %2821 = vmatpush1.bf16.msra.mxu1 %v2820_v11  ;;  %2695 = vmatprep.subr.bf16.mxu0 %v2694_v12  ;;  %v1305_v11 = vld [vmem:[#allocation10 + $0xce8] sm:$0xff]  ;;  %v1299_v12 = vld [vmem:[#allocation10 + $0xcb8] sm:$0xff] }
 0x2f6   :  { %2823 = vmatprep.subr.bf16.mxu1 %v2822_v19  ;;  %v2714_v19 = vpack.c.bf16 %v1305_v11, %v1297_v9  ;;  %v2842_v22 = vpack.c.bf16 %v1307_v21, %v1299_v12  ;;  %v1368_v9 = vld [vmem:[#allocation10 + $0xee0] sm:$0xff]  ;;  %v1362_v11 = vld [vmem:[#allocation10 + $0xeb0] sm:$0xff] }
 0x2f7   :  { %v1370_v21 = vld [vmem:[#allocation10 + $0xef0] sm:$0xff]  ;;  %v2732_v29 = vpack.c.bf16 %v1368_v9, %v1360_v8 }
 0x2f8   :  { %2697 = vmatpush1.bf16.msra.mxu0 %v2696_v24  ;;  %v1313_v24 = vld [vmem:[#allocation10 + $0xd28] sm:$0xff]  ;;  %v2860_v56 = vpack.c.bf16 %v1370_v21, %v1362_v11 }
 0x2f9   :  { %2825 = vmatpush1.bf16.msra.mxu1 %v2824_v25  ;;  %2699 = vmatprep.subr.bf16.mxu0 %v2698_v26  ;;  %v1321_v25 = vld [vmem:[#allocation10 + $0xd68] sm:$0xff]  ;;  %v1315_v26 = vld [vmem:[#allocation10 + $0xd38] sm:$0xff] }
 0x2fa   :  { %2827 = vmatprep.subr.bf16.mxu1 %v2826_v32  ;;  %v2718_v32 = vpack.c.bf16 %v1321_v25, %v1313_v24  ;;  %v2846_v36 = vpack.c.bf16 %v1323_v28, %v1315_v26  ;;  %v1384_v24 = vld [vmem:[#allocation10 + $0xf60] sm:$0xff]  ;;  %v1378_v25 = vld [vmem:[#allocation10 + $0xf30] sm:$0xff] }
 0x2fb   :  { %v1386_v28 = vld [vmem:[#allocation10 + $0xf70] sm:$0xff]  ;;  %v2736_v35 = vpack.c.bf16 %v1384_v24, %v1376_v23 }
 0x2fc   :  { %2701 = vmatpush1.bf16.msra.mxu0 %v2700_v38  ;;  %v1329_v38 = vld [vmem:[#allocation10 + $0xda8] sm:$0xff]  ;;  %v2864_v47 = vpack.c.bf16 %v1386_v28, %v1378_v25 }
 0x2fd   :  { %2829 = vmatpush1.bf16.msra.mxu1 %v2828_v27  ;;  %2703 = vmatprep.subr.bf16.mxu0 %v2702_v39  ;;  %v1337_v27 = vld [vmem:[#allocation10 + $0xde8] sm:$0xff]  ;;  %v1331_v39 = vld [vmem:[#allocation10 + $0xdb8] sm:$0xff] }
 0x2fe   :  { %2831 = vmatprep.subr.bf16.mxu1 %v2830_v44  ;;  %v2722_v44 = vpack.c.bf16 %v1337_v27, %v1329_v38  ;;  %v2850_v52 = vpack.c.bf16 %v1339_v40, %v1331_v39  ;;  %v1400_v38 = vld [vmem:[#allocation10 + $0xfe0] sm:$0xff]  ;;  %v1394_v39 = vld [vmem:[#allocation10 + $0xfb0] sm:$0xff] }
 0x2ff   :  { %v1402_v40 = vld [vmem:[#allocation10 + $0xff0] sm:$0xff] }
 0x300   :  { %2705 = vmatpush1.bf16.msra.mxu0 %v2704_v55  ;;  %v1345_v55 = vld [vmem:[#allocation10 + $0xe28] sm:$0xff] }
 0x301   :  { %2833 = vmatpush1.bf16.msra.mxu1 %v2832_v57  ;;  %2707 = vmatprep.subr.bf16.mxu0 %v2706_v59  ;;  %v1353_v57 = vld [vmem:[#allocation10 + $0xe68] sm:$0xff]  ;;  %v1347_v59 = vld [vmem:[#allocation10 + $0xe38] sm:$0xff] }
 0x302   :  { %2835 = vmatprep.subr.bf16.mxu1 %v2834_v58  ;;  %v2726_v58 = vpack.c.bf16 %v1353_v57, %v1345_v55  ;;  %v2854_v0 = vpack.c.bf16 %v1355_v60, %v1347_v59 }
 0x304   :  { %2709 = vmatpush1.bf16.msra.mxu0 %v2708_v2  ;;  %v1361_v2 = vld [vmem:[#allocation10 + $0xea8] sm:$0xff] }
 0x305   :  { %2837 = vmatpush1.bf16.msra.mxu1 %v2836_v49  ;;  %2711 = vmatprep.subr.bf16.mxu0 %v2710_v4  ;;  %v1369_v49 = vld [vmem:[#allocation10 + $0xee8] sm:$0xff]  ;;  %v1363_v4 = vld [vmem:[#allocation10 + $0xeb8] sm:$0xff] }
 0x306   :  { %2839 = vmatprep.subr.bf16.mxu1 %v2838_v7  ;;  %v2730_v7 = vpack.c.bf16 %v1369_v49, %v1361_v2  ;;  %v2858_v12 = vpack.c.bf16 %v1371_v16, %v1363_v4 }
 0x308   :  { %2713 = vmatpush1.bf16.msra.mxu0 %v2712_v13  ;;  %v1377_v13 = vld [vmem:[#allocation10 + $0xf28] sm:$0xff] }
 0x309   :  { %2841 = vmatpush1.bf16.msra.mxu1 %v2840_v18  ;;  %2715 = vmatprep.subr.bf16.mxu0 %v2714_v19  ;;  %v1385_v18 = vld [vmem:[#allocation10 + $0xf68] sm:$0xff]  ;;  %v1379_v19 = vld [vmem:[#allocation10 + $0xf38] sm:$0xff] }
 0x30a   :  { %2843 = vmatprep.subr.bf16.mxu1 %v2842_v22  ;;  %v2734_v22 = vpack.c.bf16 %v1385_v18, %v1377_v13  ;;  %v2862_v26 = vpack.c.bf16 %v1387_v34, %v1379_v19 }
 0x30c   :  { %2717 = vmatpush1.bf16.msra.mxu0 %v2716_v50  ;;  %v1393_v50 = vld [vmem:[#allocation10 + $0xfa8] sm:$0xff] }
 0x30d   :  { %2845 = vmatpush1.bf16.msra.mxu1 %v2844_v30  ;;  %2719 = vmatprep.subr.bf16.mxu0 %v2718_v32  ;;  %v1401_v30 = vld [vmem:[#allocation10 + $0xfe8] sm:$0xff]  ;;  %v1395_v32 = vld [vmem:[#allocation10 + $0xfb8] sm:$0xff] }
 0x30e   :  { %2847 = vmatprep.subr.bf16.mxu1 %v2846_v36  ;;  %v2738_v36 = vpack.c.bf16 %v1401_v30, %v1393_v50  ;;  %v2866_v27 = vpack.c.bf16 %v1403_v33, %v1395_v32 }
 0x310   :  { %2721 = vmatpush1.bf16.msra.mxu0 %v2720_v42  ;;  %v2740_v42 = vpack.c.bf16 %v1400_v38, %v1392_v37 }
 0x311   :  { %2849 = vmatpush1.bf16.msra.mxu1 %v2848_v43  ;;  %2723 = vmatprep.subr.bf16.mxu0 %v2722_v44  ;;  %v2868_v43 = vpack.c.bf16 %v1402_v40, %v1394_v39  ;;  %v1404_v44 = vld [vmem:[#allocation11] sm:$0xff] }
 0x312   :  { %2851 = vmatprep.subr.bf16.mxu1 %v2850_v52  ;;  %v1409_v45 = vrot.slane %v1404_v44, %v3241_v15  ;;  %v1417_v48 = vrot.slane %v1404_v44, %v3267_v41  ;;  %v1413_v51 = vrot.slane %v1404_v44, %v3246_v17  ;;  %v1421_v52 = vrot.slane %v1404_v44, %v3253_v20 }
 0x313   :  { %v1425_v2 = vrot.slane %v1404_v44, %v1424_v5  ;;  %v1433_v49 = vrot.slane %v1404_v44, %v1432_v63  ;;  %v1437_v16 = vrot.slane %v1404_v44, %v1436_v1 }
 0x314   :  { %2725 = vmatpush1.bf16.msra.mxu0 %v2724_v54 }
 0x315   :  { %2853 = vmatpush1.bf16.msra.mxu1 %v2852_v46  ;;  %2727 = vmatprep.subr.bf16.mxu0 %v2726_v58 }
 0x316   :  { %2855 = vmatprep.subr.bf16.mxu1 %v2854_v0  ;;  %v1428_v0 = vsub.s32 5, %v3238_v14 }
 0x318   :  { %2729 = vmatpush1.bf16.msra.mxu0 %v2728_v6  ;;  %v1429_v4 = vrot.slane %v1404_v44, %v1428_v0 }
 0x319   :  { %2857 = vmatpush1.bf16.msra.mxu1 %v2856_v10  ;;  %2731 = vmatprep.subr.bf16.mxu0 %v2730_v7 }
 0x31a   :  { %2859 = vmatprep.subr.bf16.mxu1 %v2858_v12 }
 0x31c   :  { %2733 = vmatpush1.bf16.msra.mxu0 %v2732_v29 }
 0x31d   :  { %2861 = vmatpush1.bf16.msra.mxu1 %v2860_v56  ;;  %2735 = vmatprep.subr.bf16.mxu0 %v2734_v22 }
 0x31e   :  { %2863 = vmatprep.subr.bf16.mxu1 %v2862_v26 }
 0x320   :  { %2737 = vmatpush1.bf16.msra.mxu0 %v2736_v35 }
 0x321   :  { %2865 = vmatpush1.bf16.msra.mxu1 %v2864_v47  ;;  %2739 = vmatprep.subr.bf16.mxu0 %v2738_v36 }
 0x322   :  { %2867 = vmatprep.subr.bf16.mxu1 %v2866_v27 }
 0x324   :  { %2741 = vmatpush1.bf16.msra.mxu0 %v2740_v42 }
 0x325   :  { %2869 = vmatpush1.bf16.msra.mxu1 %v2868_v43 }
 0x327   :  { %1896 = vmatmul.mubr.f32.vlgmr.msra.gmra.mrb[12].mxu0 %v3317_v53 }
 0x328   :  { %2050 = vmatmul.mubr.f32.vlgmr.msra.gmra.mrb[12].mxu1 %v3317_v53  ;;  %1901 = vmatprep.mubr.f32.mxu0 %v3320_v61 }
 0x329   :  { %2055 = vmatprep.mubr.f32.mxu1 %v3320_v61 }
 0x32b   :  { %1902 = vmatmul.mubr.f32.gmra.mrb[14].mxu0 %v3326_v3 }
 0x32c   :  { %2056 = vmatmul.mubr.f32.gmra.mrb[14].mxu1 %v3326_v3 }
 0x379   :  { %v1589_v31 = vpop.f32.mrb[8].mxu0  ;;  %v1743_v55 = vpop.f32.mrb[8].mxu1 }
 0x37a   :  { %v2878_v53 = vadd.f32 %v1589_v31, %v1409_v45  ;;  %v2882_v57 = vadd.f32 %v1743_v55, %v1417_v48  ;;  %v1591_v59 = vpop.f32.mrb[9].mxu0  ;;  %v1745_v60 = vpop.f32.mrb[9].mxu1 }
 0x37b   :  { %v2879_v61 = vadd.f32 %v1591_v59, %v1413_v51  ;;  %v2883_v54 = vadd.f32 %v1745_v60, %v1421_v52 }
 0x37c   :  { %2062 = vst [vmem:[#allocation13] sm:$0xff] %v2878_v53  ;;  %2064 = vst [vmem:[#allocation13 + $0x10] sm:$0xff] %v2882_v57 }
 0x37d   :  { %2063 = vst [vmem:[#allocation13 + $0x8] sm:$0xff] %v2879_v61  ;;  %2065 = vst [vmem:[#allocation13 + $0x18] sm:$0xff] %v2883_v54  ;;  %v1595_v3 = vpop.f32.mrb[10].mxu0  ;;  %v1749_v15 = vpop.f32.mrb[10].mxu1 }
 0x37e   :  { %v2880_v46 = vadd.f32 %v1595_v3, %v1409_v45  ;;  %v2884_v41 = vadd.f32 %v1749_v15, %v1417_v48  ;;  %v1597_v58 = vpop.f32.mrb[11].mxu0  ;;  %v1751_v17 = vpop.f32.mrb[11].mxu1 }
 0x37f   :  { %v2881_v62 = vadd.f32 %v1597_v58, %v1413_v51  ;;  %v2885_v20 = vadd.f32 %v1751_v17, %v1421_v52 }
 0x380   :  { %2070 = vst [vmem:[#allocation13 + $0x40] sm:$0xff] %v2880_v46  ;;  %2072 = vst [vmem:[#allocation13 + $0x50] sm:$0xff] %v2884_v41 }
 0x381   :  { %2071 = vst [vmem:[#allocation13 + $0x48] sm:$0xff] %v2881_v62  ;;  %2073 = vst [vmem:[#allocation13 + $0x58] sm:$0xff] %v2885_v20 }
 0x3fa   :  { %v1897_v6 = vpop.f32.mrb[12].mxu0 }
 0x3fb   :  { %v2886_v10 = vadd.f32 %v1897_v6, %v1425_v2  ;;  %v2051_v7 = vpop.f32.mrb[12].mxu1  ;;  %v1899_v8 = vpop.f32.mrb[13].mxu0 }
 0x3fc   :  { %v2890_v9 = vadd.f32 %v2051_v7, %v1433_v49  ;;  %v2887_v11 = vadd.f32 %v1899_v8, %v1429_v4  ;;  %v2053_v12 = vpop.f32.mrb[13].mxu1 }
 0x3fd   :  { %2066 = vst [vmem:[#allocation13 + $0x20] sm:$0xff] %v2886_v10  ;;  %v2891_v21 = vadd.f32 %v2053_v12, %v1437_v16 }
 0x3fe   :  { %2068 = vst [vmem:[#allocation13 + $0x30] sm:$0xff] %v2890_v9  ;;  %2067 = vst [vmem:[#allocation13 + $0x28] sm:$0xff] %v2887_v11  ;;  %v1903_v13 = vpop.f32.mrb[14].mxu0 }
 0x3ff   :  { %2069 = vst [vmem:[#allocation13 + $0x38] sm:$0xff] %v2891_v21  ;;  %v2888_v14 = vadd.f32 %v1903_v13, %v1425_v2  ;;  %v2057_v18 = vpop.f32.mrb[14].mxu1  ;;  %v1905_v19 = vpop.f32.mrb[15].mxu0 }
 0x400   :  { %v2892_v34 = vadd.f32 %v2057_v18, %v1433_v49  ;;  %v2889_v29 = vadd.f32 %v1905_v19, %v1429_v4  ;;  %v2059_v56 = vpop.f32.mrb[15].mxu1 }
 0x401   :  { %2074 = vst [vmem:[#allocation13 + $0x60] sm:$0xff] %v2888_v14  ;;  %v2893_v22 = vadd.f32 %v2059_v56, %v1437_v16 }
 0x402   :  { %2076 = vst [vmem:[#allocation13 + $0x70] sm:$0xff] %v2892_v34  ;;  %2075 = vst [vmem:[#allocation13 + $0x68] sm:$0xff] %v2889_v29 }
 0x403   :  { %2077 = vst [vmem:[#allocation13 + $0x78] sm:$0xff] %v2893_v22 }
 0x404   :  { %3073 = shalt.err (!%p3070_p10)
}
 0x405   :  { %s3074_s8 = scalar_lea.hbm %s3376_s7, 2048 }
 0x406   :  { %p3075_p11 = scmp.ne.s32.totalorder %s3376_s7, %s3074_s8  ;;  %p3078_p12 = scmp.lt.u32.totalorder %s3074_s8, %s3376_s7 }
 0x408   :  { %p3080_p13 = pnand %p3078_p12, %p3075_p11 }
 0x40a   :  { %3083 = shalt.err (!%p3080_p13)
}
 0x40b   :  { %2089 = dma.vmem_to_hbm [thread:$0]  %s2084_s25, 2048, %s3376_s7, [#allocation4], %s3101_s3, %s3101_s3, %s3102_s28  }
 0x40c   :  { %3092 = dma.done.wait [#allocation4], 2048  }
 0x40d   :  { %3093 = vsyncadd [#allocation4], 4294965248 }
 0x40e   :  { %2093 = vsyncpa [#allocation3], 1 }
 0x40f   :  { %2094 = vsyncpa [#allocation6], 1 }
 0x410   :  { %2095 = vsyncpa [#allocation9], 1 }
 0x411   :  { %2096 = vsyncpa [#allocation12], 1 }
 0x412   :  { %2097 = vsyncpa [#allocation4], 1 }

// kernel: tpu_custom_call.1
= control target key start
LH: loop header
LB: loop body
LE: loop exit
PB: predicated region body
PF: predicated region fallthrough
CT: control target
= control target key end

     0   :  { %12 = vsyncpa [#allocation3], 0  ;;  %s3369_s0 = inlined_call_operand.vmem [shape: f32[16,8], index: 0, kind: input, shape index: {}]   ;;  %s3370_s1 = inlined_call_operand.hbm [shape: f32[8,512], index: 1, kind: input, shape index: {}]   ;;  %s3371_s2 = inlined_call_operand.hbm [shape: f32[1,512], index: 2, kind: input, shape index: {}]   ;;  %s3372_s3 = inlined_call_operand.hbm [shape: f32[512,512], index: 3, kind: input, shape index: {}]   ;;  %s3373_s4 = inlined_call_operand.hbm [shape: f32[1,512], index: 4, kind: input, shape index: {}]   ;;  %s3374_s5 = inlined_call_operand.hbm [shape: f32[512,1024], index: 5, kind: input, shape index: {}]   ;;  %s3375_s6 = inlined_call_operand.hbm [shape: f32[1,1024], index: 6, kind: input, shape index: {}]   ;;  %s3376_s7 = inlined_call_operand.hbm [shape: f32[16,1024], index: 7, kind: output, shape index: {}]  }
   0x1   :  { %13 = vsyncpa [#allocation6], 0 }
   0x2   :  { %14 = vsyncpa [#allocation9], 0 }
   0x3   :  { %15 = vsyncpa [#allocation12], 0 }
   0x4   :  { %16 = vsyncpa [#allocation4], 0  ;;  %s3094_s24 = smov [#allocation5]   ;;  %s3095_s26 = smov [#allocation8]  }
   0x5   :  { %s35_s25 = sshll.u32 %s3094_s24, 4  ;;  %s57_s27 = sshll.u32 %s3095_s26, 4  ;;  %s36_s25 = int_to_ptr.vmem [resolvable:$true] %s35_s25  ;;  %s58_s27 = int_to_ptr.vmem [resolvable:$true] %s57_s27 }
   0x6   :  { %s2930_s30 = scalar_lea.hbm %s3371_s2, 64 }
   0x7   :  { %p2931_p0 = scmp.ne.s32.totalorder %s3371_s2, %s2930_s30  ;;  %p2934_p1 = scmp.lt.u32.totalorder %s2930_s30, %s3371_s2 }
   0x9   :  { %p2936_p2 = pnand %p2934_p1, %p2931_p0 }
   0xb   :  { %2939 = shalt.err (!%p2936_p2)
}
   0xc   :  { %s2940_s12 = scalar_lea.vmem %s36_s25, 64  ;;  %p2945_p4 = scmp.lt.s32.totalorder %s36_s25, %s36_s25 }
   0xd   :  { %p2941_p3 = scmp.ne.s32.totalorder %s36_s25, %s2940_s12  ;;  %p2946_p5 = scmp.lt.s32.totalorder %s2940_s12, %s2940_s12 }
   0xf   :  { %p2947_p6 = por %p2946_p5, %p2945_p4 }
  0x11   :  { %p2948_p7 = pnand %p2947_p6, %p2941_p3 }
  0x13   :  { %2951 = shalt.err (!%p2948_p7)
}
  0x14   :  { %38 = dma.hbm_to_vmem [thread:$0]  %s3371_s2, 64, %s36_s25, [#allocation6]  }
  0x15   :  { %s2952_s17 = scalar_lea.hbm %s3373_s4, 64 }
  0x16   :  { %p2953_p8 = scmp.ne.s32.totalorder %s3373_s4, %s2952_s17  ;;  %p2956_p9 = scmp.lt.u32.totalorder %s2952_s17, %s3373_s4 }
  0x18   :  { %p2958_p10 = pnand %p2956_p9, %p2953_p8 }
  0x1a   :  { %2961 = shalt.err (!%p2958_p10)
}
  0x1b   :  { %s2962_s22 = scalar_lea.vmem %s58_s27, 64  ;;  %p2967_p12 = scmp.lt.s32.totalorder %s58_s27, %s58_s27 }
  0x1c   :  { %p2963_p11 = scmp.ne.s32.totalorder %s58_s27, %s2962_s22  ;;  %p2968_p13 = scmp.lt.s32.totalorder %s2962_s22, %s2962_s22 }
  0x1e   :  { %p2969_p0 = por %p2968_p13, %p2967_p12 }
  0x20   :  { %p2970_p1 = pnand %p2969_p0, %p2963_p11 }
  0x22   :  { %2973 = shalt.err (!%p2970_p1)
}
  0x23   :  { %60 = dma.hbm_to_vmem [thread:$0]  %s3373_s4, 64, %s58_s27, [#allocation9]  }
  0x24   :  { %s3096_s24 = smov [#allocation2]   ;;  %s3097_s26 = smov [#allocation7]  }
  0x25   :  { %s25_s25 = sshll.u32 %s3096_s24, 4  ;;  %s44_s28 = sshll.u32 %s3097_s26, 4  ;;  %s26_s25 = int_to_ptr.vmem [resolvable:$true] %s25_s25  ;;  %s3170_s28 = int_to_ptr.vmem [resolvable:$true] %s44_s28 }
  0x26   :  { %s2974_s8 = scalar_lea.hbm %s3370_s1, 512 }
  0x27   :  { %p2975_p2 = scmp.ne.s32.totalorder %s3370_s1, %s2974_s8  ;;  %p2978_p3 = scmp.lt.u32.totalorder %s2974_s8, %s3370_s1 }
  0x29   :  { %p2980_p4 = pnand %p2978_p3, %p2975_p2 }
  0x2b   :  { %2983 = shalt.err (!%p2980_p4)
}
  0x2c   :  { %s2984_s4 = scalar_lea.vmem %s26_s25, 512  ;;  %p2989_p6 = scmp.lt.s32.totalorder %s26_s25, %s26_s25 }
  0x2d   :  { %p2985_p5 = scmp.ne.s32.totalorder %s26_s25, %s2984_s4  ;;  %p2990_p7 = scmp.lt.s32.totalorder %s2984_s4, %s2984_s4 }
  0x2f   :  { %p2991_p8 = por %p2990_p7, %p2989_p6 }
  0x31   :  { %p2992_p9 = pnand %p2991_p8, %p2985_p5 }
  0x33   :  { %2995 = shalt.err (!%p2992_p9)
}
  0x34   :  { %28 = dma.hbm_to_vmem [thread:$0]  %s3370_s1, 512, %s26_s25, [#allocation3]  }
  0x35   :  { %s2996_s16 = scalar_lea.hbm %s3372_s3, 32768 }
  0x36   :  { %p2997_p10 = scmp.ne.s32.totalorder %s3372_s3, %s2996_s16  ;;  %p3000_p11 = scmp.lt.u32.totalorder %s2996_s16, %s3372_s3 }
  0x38   :  { %p3002_p12 = pnand %p3000_p11, %p2997_p10 }
  0x3a   :  { %3005 = shalt.err (!%p3002_p12)
}
  0x3b   :  { %s3006_s21 = scalar_lea.vmem %s3170_s28, 32768  ;;  %p3011_p0 = scmp.lt.s32.totalorder %s3170_s28, %s3170_s28 }
  0x3c   :  { %p3007_p13 = scmp.ne.s32.totalorder %s3170_s28, %s3006_s21  ;;  %p3012_p1 = scmp.lt.s32.totalorder %s3006_s21, %s3006_s21 }
  0x3e   :  { %p3013_p2 = por %p3012_p1, %p3011_p0 }
  0x40   :  { %p3014_p3 = pnand %p3013_p2, %p3007_p13 }
  0x42   :  { %3017 = shalt.err (!%p3014_p3)
}
  0x43   :  { %s3098_s1 = smov 512   ;;  %s3099_s22 = smov 32  }
  0x44   :  { %50 = dma.hbm_to_vmem [thread:$0]  %s3372_s3, 32768, %s3170_s28, [#allocation6], %s3098_s1, %s3098_s1, %s3099_s22  }
  0x45   :  { %s3100_s24 = smov [#allocation10]   ;;  %s3018_s30 = scalar_lea.hbm %s3374_s5, 65536 }
  0x46   :  { %s66_s25 = sshll.u32 %s3100_s24, 4  ;;  %p3019_p4 = scmp.ne.s32.totalorder %s3374_s5, %s3018_s30  ;;  %s67_s25 = int_to_ptr.vmem [resolvable:$true] %s66_s25 }
  0x47   :  { %p3022_p5 = scmp.lt.u32.totalorder %s3018_s30, %s3374_s5 }
  0x49   :  { %p3024_p6 = pnand %p3022_p5, %p3019_p4 }
  0x4b   :  { %3027 = shalt.err (!%p3024_p6)
}
  0x4c   :  { %s3028_s12 = scalar_lea.vmem %s67_s25, 65536  ;;  %p3033_p8 = scmp.lt.s32.totalorder %s67_s25, %s67_s25 }
  0x4d   :  { %p3029_p7 = scmp.ne.s32.totalorder %s67_s25, %s3028_s12  ;;  %p3034_p9 = scmp.lt.s32.totalorder %s3028_s12, %s3028_s12 }
  0x4f   :  { %p3035_p10 = por %p3034_p9, %p3033_p8 }
  0x51   :  { %p3036_p11 = pnand %p3035_p10, %p3029_p7 }
  0x53   :  { %3039 = shalt.err (!%p3036_p11)
}
  0x54   :  { %s3101_s3 = smov 1024   ;;  %s3102_s28 = smov 64  }
  0x55   :  { %72 = dma.hbm_to_vmem [thread:$0]  %s3374_s5, 65536, %s67_s25, [#allocation9], %s3101_s3, %s3101_s3, %s3102_s28  }
  0x56   :  { %s3103_s13 = smov [#allocation11]   ;;  %s3040_s17 = scalar_lea.hbm %s3375_s6, 128 }
  0x57   :  { %s79_s14 = sshll.u32 %s3103_s13, 4  ;;  %p3041_p12 = scmp.ne.s32.totalorder %s3375_s6, %s3040_s17  ;;  %s80_s14 = int_to_ptr.vmem [resolvable:$true] %s79_s14 }
  0x58   :  { %p3044_p13 = scmp.lt.u32.totalorder %s3040_s17, %s3375_s6 }
  0x5a   :  { %p3046_p0 = pnand %p3044_p13, %p3041_p12 }
  0x5c   :  { %3049 = shalt.err (!%p3046_p0)
}
  0x5d   :  { %s3050_s1 = scalar_lea.vmem %s80_s14, 128  ;;  %p3055_p2 = scmp.lt.s32.totalorder %s80_s14, %s80_s14 }
  0x5e   :  { %p3051_p1 = scmp.ne.s32.totalorder %s80_s14, %s3050_s1  ;;  %p3056_p3 = scmp.lt.s32.totalorder %s3050_s1, %s3050_s1 }
  0x60   :  { %p3057_p4 = por %p3056_p3, %p3055_p2 }
  0x62   :  { %p3058_p5 = pnand %p3057_p4, %p3051_p1 }
  0x64   :  { %3061 = shalt.err (!%p3058_p5)
}
  0x65   :  { %82 = dma.hbm_to_vmem [thread:$0]  %s3375_s6, 128, %s80_s14, [#allocation12]  }
  0x66   :  { %3084 = dma.done.wait [#allocation3], 512  }
  0x67   :  { %3085 = vsyncadd [#allocation3], 4294966784 }
  0x68   :  { %3086 = dma.done.wait [#allocation6], 32832  }
  0x69   :  { %3087 = vsyncadd [#allocation6], 4294934464 }
  0x6a   :  { %3088 = dma.done.wait [#allocation9], 65600  }
  0x6b   :  { %3089 = vsyncadd [#allocation9], 4294901696 }
  0x6c   :  { %3090 = dma.done.wait [#allocation12], 128  }
  0x6d   :  { %3091 = vsyncadd [#allocation12], 4294967168  ;;  %v3104_v0 = vmov 0.0   ;;  %v104_v1 = vld [vmem:[#allocation2 + $0x8] sm:$0xff]  ;;  %v103_v2 = vld [vmem:[#allocation2] sm:$0xff]  ;;  %vm129_vm0 = vcmask 64512  }
  0x6e   :  { %200 = vmatprep.mubr.f32.mxu0 %v3104_v0  ;;  %277 = vmatprep.mubr.f32.mxu1 %v3104_v0  ;;  %v101_v3 = vld [vmem:[%s3369_s0] sm:$0xff]  ;;  %v106_v4 = vld [vmem:[#allocation2 + $0x18] sm:$0xff]  ;;  %v105_v5 = vld [vmem:[#allocation2 + $0x10] sm:$0xff] }
  0x6f   :  { %136 = vmatprep.subr.mxu0 %v104_v1  ;;  %v102_v6 = vld [vmem:[%s3369_s0 + $0x8] sm:$0xff]  ;;  %213 = vmatprep.subr.mxu1 %v106_v4  ;;  %v301_v9 = vld [vmem:[#allocation7 + $0x18] sm:$0xff]  ;;  %v300_v16 = vld [vmem:[#allocation7 + $0x10] sm:$0xff]  ;;  %s3105_s0 = smov [#allocation13]  }
  0x70   :  { %137 = vmatpush1.msra.mxu0 %v103_v2  ;;  %v299_v7 = vld [vmem:[#allocation7 + $0x8] sm:$0xff]  ;;  %214 = vmatpush1.msra.mxu1 %v105_v5  ;;  %v305_v11 = vld [vmem:[#allocation7 + $0x38] sm:$0xff]  ;;  %v298_v12 = vld [vmem:[#allocation7] sm:$0xff]  ;;  %s2083_s25 = sshll.u32 %s3105_s0, 4  ;;  %s2084_s25 = int_to_ptr.vmem [resolvable:$true] %s2083_s25 }
  0x71   :  { %v303_v8 = vld [vmem:[#allocation7 + $0x28] sm:$0xff]  ;;  %2098 = vmatmul.mubr.msk.f32.vlgmr.msra.gmra.mrb[0].mxu0 %vm129_vm0, %v101_v3  ;;  %v302_v13 = vld [vmem:[#allocation7 + $0x20] sm:$0xff]  ;;  %2100 = vmatmul.mubr.msk.f32.vlgmr.msra.gmra.mrb[0].mxu1 %vm129_vm0, %v101_v3  ;;  %v2230_v14 = vpack.c.bf16 %v305_v11, %v301_v9  ;;  %v304_v17 = vld [vmem:[#allocation7 + $0x30] sm:$0xff]  ;;  %s3062_s26 = scalar_lea.vmem %s2084_s25, 2048  ;;  %p3067_p7 = scmp.lt.s32.totalorder %s2084_s25, %s2084_s25 }
  0x72   :  { %v2102_v10 = vpack.c.bf16 %v303_v8, %v299_v7  ;;  %206 = vmatprep.mubr.f32.mxu0 %v3104_v0  ;;  %v2104_v15 = vpack.c.bf16 %v302_v13, %v298_v12  ;;  %v307_v18 = vld [vmem:[#allocation7 + $0x48] sm:$0xff]  ;;  %283 = vmatprep.mubr.f32.mxu1 %v3104_v0  ;;  %v2232_v19 = vpack.c.bf16 %v304_v17, %v300_v16  ;;  %v309_v21 = vld [vmem:[#allocation7 + $0x58] sm:$0xff]  ;;  %v306_v25 = vld [vmem:[#allocation7 + $0x40] sm:$0xff]  ;;  %p3063_p6 = scmp.ne.s32.totalorder %s2084_s25, %s3062_s26  ;;  %p3068_p8 = scmp.lt.s32.totalorder %s3062_s26, %s3062_s26 }
  0x73   :  { %v311_v20 = vld [vmem:[#allocation7 + $0x68] sm:$0xff]  ;;  %v313_v22 = vld [vmem:[#allocation7 + $0x78] sm:$0xff]  ;;  %2231 = vmatprep.subr.bf16.mxu1 %v2230_v14  ;;  %v310_v26 = vld [vmem:[#allocation7 + $0x60] sm:$0xff] }
  0x74   :  { %2103 = vmatprep.subr.bf16.mxu0 %v2102_v10  ;;  %v2106_v23 = vpack.c.bf16 %v311_v20, %v307_v18  ;;  %v2234_v24 = vpack.c.bf16 %v313_v22, %v309_v21  ;;  %v308_v27 = vld [vmem:[#allocation7 + $0x50] sm:$0xff]  ;;  %2233 = vmatpush1.bf16.msra.mxu1 %v2232_v19  ;;  %v2108_v28 = vpack.c.bf16 %v310_v26, %v306_v25  ;;  %v315_v30 = vld [vmem:[#allocation7 + $0x88] sm:$0xff]  ;;  %v317_v34 = vld [vmem:[#allocation7 + $0x98] sm:$0xff]  ;;  %p3069_p9 = por %p3068_p8, %p3067_p7 }
  0x75   :  { %2105 = vmatpush1.bf16.msra.mxu0 %v2104_v15  ;;  %v312_v29 = vld [vmem:[#allocation7 + $0x70] sm:$0xff]  ;;  %v319_v31 = vld [vmem:[#allocation7 + $0xa8] sm:$0xff]  ;;  %2101 = vmatmul.mubr.msk.f32.gmra.mrb[2].mxu1 %vm129_vm0, %v102_v6  ;;  %v321_v35 = vld [vmem:[#allocation7 + $0xb8] sm:$0xff] }
  0x76   :  { %2099 = vmatmul.mubr.msk.f32.gmra.mrb[2].mxu0 %vm129_vm0, %v102_v6  ;;  %2107 = vmatprep.subr.bf16.mxu0 %v2106_v23  ;;  %v2236_v32 = vpack.c.bf16 %v312_v29, %v308_v27  ;;  %v2110_v33 = vpack.c.bf16 %v319_v31, %v315_v30  ;;  %v314_v36 = vld [vmem:[#allocation7 + $0x80] sm:$0xff]  ;;  %v2238_v37 = vpack.c.bf16 %v321_v35, %v317_v34  ;;  %v316_v39 = vld [vmem:[#allocation7 + $0x90] sm:$0xff]  ;;  %v323_v42 = vld [vmem:[#allocation7 + $0xc8] sm:$0xff]  ;;  %p3070_p10 = pnand %p3069_p9, %p3063_p6 }
  0x77   :  { %2235 = vmatprep.subr.bf16.mxu1 %v2234_v24  ;;  %v318_v38 = vld [vmem:[#allocation7 + $0xa0] sm:$0xff]  ;;  %v320_v40 = vld [vmem:[#allocation7 + $0xb0] sm:$0xff]  ;;  %v327_v43 = vld [vmem:[#allocation7 + $0xe8] sm:$0xff] }
  0x78   :  { %v2112_v41 = vpack.c.bf16 %v318_v38, %v314_v36  ;;  %v325_v44 = vld [vmem:[#allocation7 + $0xd8] sm:$0xff]  ;;  %2237 = vmatpush1.bf16.msra.mxu1 %v2236_v32  ;;  %v2240_v45 = vpack.c.bf16 %v320_v40, %v316_v39  ;;  %v2114_v46 = vpack.c.bf16 %v327_v43, %v323_v42  ;;  %v322_v48 = vld [vmem:[#allocation7 + $0xc0] sm:$0xff]  ;;  %v324_v51 = vld [vmem:[#allocation7 + $0xd0] sm:$0xff] }
  0x79   :  { %2109 = vmatpush1.bf16.msra.mxu0 %v2108_v28  ;;  %v329_v47 = vld [vmem:[#allocation7 + $0xf8] sm:$0xff]  ;;  %v326_v49 = vld [vmem:[#allocation7 + $0xe0] sm:$0xff]  ;;  %2239 = vmatprep.subr.bf16.mxu1 %v2238_v37  ;;  %v328_v52 = vld [vmem:[#allocation7 + $0xf0] sm:$0xff] }
  0x7a   :  { %2111 = vmatprep.subr.bf16.mxu0 %v2110_v33  ;;  %v2242_v50 = vpack.c.bf16 %v329_v47, %v325_v44  ;;  %v331_v53 = vld [vmem:[#allocation7 + $0x108] sm:$0xff]  ;;  %v333_v55 = vld [vmem:[#allocation7 + $0x118] sm:$0xff]  ;;  %v2116_v57 = vpack.c.bf16 %v326_v49, %v322_v48  ;;  %v2244_v58 = vpack.c.bf16 %v328_v52, %v324_v51  ;;  %v330_v60 = vld [vmem:[#allocation7 + $0x100] sm:$0xff] }
  0x7b   :  { %v335_v54 = vld [vmem:[#allocation7 + $0x128] sm:$0xff]  ;;  %v337_v56 = vld [vmem:[#allocation7 + $0x138] sm:$0xff]  ;;  %v334_v61 = vld [vmem:[#allocation7 + $0x120] sm:$0xff] }
  0x7c   :  { %2241 = vmatpush1.bf16.msra.mxu1 %v2240_v45  ;;  %v2118_v59 = vpack.c.bf16 %v335_v54, %v331_v53  ;;  %v332_v62 = vld [vmem:[#allocation7 + $0x110] sm:$0xff]  ;;  %v2246_v63 = vpack.c.bf16 %v337_v56, %v333_v55  ;;  %v339_v1 = vld [vmem:[#allocation7 + $0x148] sm:$0xff]  ;;  %v341_v3 = vld [vmem:[#allocation7 + $0x158] sm:$0xff]  ;;  %v2120_v5 = vpack.c.bf16 %v334_v61, %v330_v60 }
  0x7d   :  { %2113 = vmatpush1.bf16.msra.mxu0 %v2112_v41  ;;  %2243 = vmatprep.subr.bf16.mxu1 %v2242_v50  ;;  %v336_v0 = vld [vmem:[#allocation7 + $0x130] sm:$0xff]  ;;  %v343_v2 = vld [vmem:[#allocation7 + $0x168] sm:$0xff]  ;;  %v345_v4 = vld [vmem:[#allocation7 + $0x178] sm:$0xff] }
  0x7e   :  { %2115 = vmatprep.subr.bf16.mxu0 %v2114_v46  ;;  %v2248_v6 = vpack.c.bf16 %v336_v0, %v332_v62  ;;  %v2122_v7 = vpack.c.bf16 %v343_v2, %v339_v1  ;;  %v338_v8 = vld [vmem:[#allocation7 + $0x140] sm:$0xff]  ;;  %v340_v10 = vld [vmem:[#allocation7 + $0x150] sm:$0xff]  ;;  %v2250_v11 = vpack.c.bf16 %v345_v4, %v341_v3  ;;  %v347_v13 = vld [vmem:[#allocation7 + $0x188] sm:$0xff] }
  0x7f   :  { %v342_v9 = vld [vmem:[#allocation7 + $0x160] sm:$0xff]  ;;  %v344_v12 = vld [vmem:[#allocation7 + $0x170] sm:$0xff]  ;;  %v351_v14 = vld [vmem:[#allocation7 + $0x1a8] sm:$0xff] }
  0x80   :  { %2245 = vmatpush1.bf16.msra.mxu1 %v2244_v58  ;;  %v349_v15 = vld [vmem:[#allocation7 + $0x198] sm:$0xff]  ;;  %v2124_v17 = vpack.c.bf16 %v342_v9, %v338_v8  ;;  %v2252_v18 = vpack.c.bf16 %v344_v12, %v340_v10  ;;  %v2126_v19 = vpack.c.bf16 %v351_v14, %v347_v13  ;;  %v346_v20 = vld [vmem:[#allocation7 + $0x180] sm:$0xff]  ;;  %v348_v22 = vld [vmem:[#allocation7 + $0x190] sm:$0xff] }
  0x81   :  { %2117 = vmatpush1.bf16.msra.mxu0 %v2116_v57  ;;  %2247 = vmatprep.subr.bf16.mxu1 %v2246_v63  ;;  %v353_v16 = vld [vmem:[#allocation7 + $0x1b8] sm:$0xff]  ;;  %v350_v21 = vld [vmem:[#allocation7 + $0x1a0] sm:$0xff]  ;;  %v352_v24 = vld [vmem:[#allocation7 + $0x1b0] sm:$0xff] }
  0x82   :  { %2119 = vmatprep.subr.bf16.mxu0 %v2118_v59  ;;  %v2254_v23 = vpack.c.bf16 %v353_v16, %v349_v15  ;;  %v355_v25 = vld [vmem:[#allocation7 + $0x1c8] sm:$0xff]  ;;  %v357_v27 = vld [vmem:[#allocation7 + $0x1d8] sm:$0xff]  ;;  %v2128_v29 = vpack.c.bf16 %v350_v21, %v346_v20  ;;  %v2256_v30 = vpack.c.bf16 %v352_v24, %v348_v22  ;;  %v354_v32 = vld [vmem:[#allocation7 + $0x1c0] sm:$0xff] }
  0x83   :  { %v359_v26 = vld [vmem:[#allocation7 + $0x1e8] sm:$0xff]  ;;  %v361_v28 = vld [vmem:[#allocation7 + $0x1f8] sm:$0xff]  ;;  %v358_v33 = vld [vmem:[#allocation7 + $0x1e0] sm:$0xff] }
  0x84   :  { %2249 = vmatpush1.bf16.msra.mxu1 %v2248_v6  ;;  %v2130_v31 = vpack.c.bf16 %v359_v26, %v355_v25  ;;  %v356_v34 = vld [vmem:[#allocation7 + $0x1d0] sm:$0xff]  ;;  %v2258_v35 = vpack.c.bf16 %v361_v28, %v357_v27  ;;  %v363_v37 = vld [vmem:[#allocation7 + $0x208] sm:$0xff]  ;;  %v365_v39 = vld [vmem:[#allocation7 + $0x218] sm:$0xff]  ;;  %v2132_v41 = vpack.c.bf16 %v358_v33, %v354_v32 }
  0x85   :  { %2121 = vmatpush1.bf16.msra.mxu0 %v2120_v5  ;;  %2251 = vmatprep.subr.bf16.mxu1 %v2250_v11  ;;  %v360_v36 = vld [vmem:[#allocation7 + $0x1f0] sm:$0xff]  ;;  %v367_v38 = vld [vmem:[#allocation7 + $0x228] sm:$0xff]  ;;  %v369_v40 = vld [vmem:[#allocation7 + $0x238] sm:$0xff] }
  0x86   :  { %2123 = vmatprep.subr.bf16.mxu0 %v2122_v7  ;;  %v2260_v42 = vpack.c.bf16 %v360_v36, %v356_v34  ;;  %v2134_v43 = vpack.c.bf16 %v367_v38, %v363_v37  ;;  %v362_v44 = vld [vmem:[#allocation7 + $0x200] sm:$0xff]  ;;  %v364_v46 = vld [vmem:[#allocation7 + $0x210] sm:$0xff]  ;;  %v2262_v47 = vpack.c.bf16 %v369_v40, %v365_v39  ;;  %v371_v49 = vld [vmem:[#allocation7 + $0x248] sm:$0xff] }
  0x87   :  { %v366_v45 = vld [vmem:[#allocation7 + $0x220] sm:$0xff]  ;;  %v368_v48 = vld [vmem:[#allocation7 + $0x230] sm:$0xff]  ;;  %v375_v50 = vld [vmem:[#allocation7 + $0x268] sm:$0xff] }
  0x88   :  { %2253 = vmatpush1.bf16.msra.mxu1 %v2252_v18  ;;  %v373_v51 = vld [vmem:[#allocation7 + $0x258] sm:$0xff]  ;;  %v2136_v53 = vpack.c.bf16 %v366_v45, %v362_v44  ;;  %v2264_v54 = vpack.c.bf16 %v368_v48, %v364_v46  ;;  %v2138_v55 = vpack.c.bf16 %v375_v50, %v371_v49  ;;  %v370_v56 = vld [vmem:[#allocation7 + $0x240] sm:$0xff]  ;;  %v372_v58 = vld [vmem:[#allocation7 + $0x250] sm:$0xff] }
  0x89   :  { %2125 = vmatpush1.bf16.msra.mxu0 %v2124_v17  ;;  %2255 = vmatprep.subr.bf16.mxu1 %v2254_v23  ;;  %v377_v52 = vld [vmem:[#allocation7 + $0x278] sm:$0xff]  ;;  %v374_v57 = vld [vmem:[#allocation7 + $0x260] sm:$0xff]  ;;  %v376_v60 = vld [vmem:[#allocation7 + $0x270] sm:$0xff] }
  0x8a   :  { %2127 = vmatprep.subr.bf16.mxu0 %v2126_v19  ;;  %v2266_v59 = vpack.c.bf16 %v377_v52, %v373_v51  ;;  %v379_v61 = vld [vmem:[#allocation7 + $0x288] sm:$0xff]  ;;  %v381_v63 = vld [vmem:[#allocation7 + $0x298] sm:$0xff]  ;;  %v2140_v1 = vpack.c.bf16 %v374_v57, %v370_v56  ;;  %v2268_v2 = vpack.c.bf16 %v376_v60, %v372_v58  ;;  %v378_v4 = vld [vmem:[#allocation7 + $0x280] sm:$0xff] }
  0x8b   :  { %v383_v62 = vld [vmem:[#allocation7 + $0x2a8] sm:$0xff]  ;;  %v385_v0 = vld [vmem:[#allocation7 + $0x2b8] sm:$0xff]  ;;  %v382_v5 = vld [vmem:[#allocation7 + $0x2a0] sm:$0xff] }
  0x8c   :  { %2257 = vmatpush1.bf16.msra.mxu1 %v2256_v30  ;;  %v2142_v3 = vpack.c.bf16 %v383_v62, %v379_v61  ;;  %v380_v6 = vld [vmem:[#allocation7 + $0x290] sm:$0xff]  ;;  %v2270_v7 = vpack.c.bf16 %v385_v0, %v381_v63  ;;  %v387_v9 = vld [vmem:[#allocation7 + $0x2c8] sm:$0xff]  ;;  %v389_v11 = vld [vmem:[#allocation7 + $0x2d8] sm:$0xff]  ;;  %v2144_v13 = vpack.c.bf16 %v382_v5, %v378_v4 }
  0x8d   :  { %2129 = vmatpush1.bf16.msra.mxu0 %v2128_v29  ;;  %2259 = vmatprep.subr.bf16.mxu1 %v2258_v35  ;;  %v384_v8 = vld [vmem:[#allocation7 + $0x2b0] sm:$0xff]  ;;  %v391_v10 = vld [vmem:[#allocation7 + $0x2e8] sm:$0xff]  ;;  %v393_v12 = vld [vmem:[#allocation7 + $0x2f8] sm:$0xff] }
  0x8e   :  { %2131 = vmatprep.subr.bf16.mxu0 %v2130_v31  ;;  %v2272_v14 = vpack.c.bf16 %v384_v8, %v380_v6  ;;  %v2146_v15 = vpack.c.bf16 %v391_v10, %v387_v9  ;;  %v386_v16 = vld [vmem:[#allocation7 + $0x2c0] sm:$0xff]  ;;  %v388_v18 = vld [vmem:[#allocation7 + $0x2d0] sm:$0xff]  ;;  %v2274_v19 = vpack.c.bf16 %v393_v12, %v389_v11  ;;  %v395_v21 = vld [vmem:[#allocation7 + $0x308] sm:$0xff] }
  0x8f   :  { %v390_v17 = vld [vmem:[#allocation7 + $0x2e0] sm:$0xff]  ;;  %v392_v20 = vld [vmem:[#allocation7 + $0x2f0] sm:$0xff]  ;;  %v399_v22 = vld [vmem:[#allocation7 + $0x328] sm:$0xff] }
  0x90   :  { %2261 = vmatpush1.bf16.msra.mxu1 %v2260_v42  ;;  %v397_v23 = vld [vmem:[#allocation7 + $0x318] sm:$0xff]  ;;  %v2148_v25 = vpack.c.bf16 %v390_v17, %v386_v16  ;;  %v2276_v26 = vpack.c.bf16 %v392_v20, %v388_v18  ;;  %v2150_v27 = vpack.c.bf16 %v399_v22, %v395_v21  ;;  %v394_v28 = vld [vmem:[#allocation7 + $0x300] sm:$0xff]  ;;  %v396_v30 = vld [vmem:[#allocation7 + $0x310] sm:$0xff] }
  0x91   :  { %2133 = vmatpush1.bf16.msra.mxu0 %v2132_v41  ;;  %2263 = vmatprep.subr.bf16.mxu1 %v2262_v47  ;;  %v401_v24 = vld [vmem:[#allocation7 + $0x338] sm:$0xff]  ;;  %v398_v29 = vld [vmem:[#allocation7 + $0x320] sm:$0xff]  ;;  %v400_v32 = vld [vmem:[#allocation7 + $0x330] sm:$0xff] }
  0x92   :  { %2135 = vmatprep.subr.bf16.mxu0 %v2134_v43  ;;  %v2278_v31 = vpack.c.bf16 %v401_v24, %v397_v23  ;;  %v403_v33 = vld [vmem:[#allocation7 + $0x348] sm:$0xff]  ;;  %v405_v35 = vld [vmem:[#allocation7 + $0x358] sm:$0xff]  ;;  %v2152_v37 = vpack.c.bf16 %v398_v29, %v394_v28  ;;  %v2280_v38 = vpack.c.bf16 %v400_v32, %v396_v30  ;;  %v402_v40 = vld [vmem:[#allocation7 + $0x340] sm:$0xff] }
  0x93   :  { %v407_v34 = vld [vmem:[#allocation7 + $0x368] sm:$0xff]  ;;  %v409_v36 = vld [vmem:[#allocation7 + $0x378] sm:$0xff]  ;;  %v406_v41 = vld [vmem:[#allocation7 + $0x360] sm:$0xff] }
  0x94   :  { %2265 = vmatpush1.bf16.msra.mxu1 %v2264_v54  ;;  %v2154_v39 = vpack.c.bf16 %v407_v34, %v403_v33  ;;  %v404_v42 = vld [vmem:[#allocation7 + $0x350] sm:$0xff]  ;;  %v2282_v43 = vpack.c.bf16 %v409_v36, %v405_v35  ;;  %v411_v45 = vld [vmem:[#allocation7 + $0x388] sm:$0xff]  ;;  %v413_v47 = vld [vmem:[#allocation7 + $0x398] sm:$0xff]  ;;  %v2156_v49 = vpack.c.bf16 %v406_v41, %v402_v40 }
  0x95   :  { %2137 = vmatpush1.bf16.msra.mxu0 %v2136_v53  ;;  %2267 = vmatprep.subr.bf16.mxu1 %v2266_v59  ;;  %v408_v44 = vld [vmem:[#allocation7 + $0x370] sm:$0xff]  ;;  %v415_v46 = vld [vmem:[#allocation7 + $0x3a8] sm:$0xff]  ;;  %v417_v48 = vld [vmem:[#allocation7 + $0x3b8] sm:$0xff] }
  0x96   :  { %2139 = vmatprep.subr.bf16.mxu0 %v2138_v55  ;;  %v2284_v50 = vpack.c.bf16 %v408_v44, %v404_v42  ;;  %v2158_v51 = vpack.c.bf16 %v415_v46, %v411_v45  ;;  %v410_v52 = vld [vmem:[#allocation7 + $0x380] sm:$0xff]  ;;  %v2286_v54 = vpack.c.bf16 %v417_v48, %v413_v47  ;;  %v412_v55 = vld [vmem:[#allocation7 + $0x390] sm:$0xff]  ;;  %v419_v59 = vld [vmem:[#allocation7 + $0x3c8] sm:$0xff] }
  0x97   :  { %v414_v53 = vld [vmem:[#allocation7 + $0x3a0] sm:$0xff]  ;;  %v416_v56 = vld [vmem:[#allocation7 + $0x3b0] sm:$0xff]  ;;  %v423_v60 = vld [vmem:[#allocation7 + $0x3e8] sm:$0xff] }
  0x98   :  { %2269 = vmatpush1.bf16.msra.mxu1 %v2268_v2  ;;  %v2160_v57 = vpack.c.bf16 %v414_v53, %v410_v52  ;;  %v2288_v58 = vpack.c.bf16 %v416_v56, %v412_v55  ;;  %v421_v61 = vld [vmem:[#allocation7 + $0x3d8] sm:$0xff]  ;;  %v2162_v62 = vpack.c.bf16 %v423_v60, %v419_v59  ;;  %v418_v0 = vld [vmem:[#allocation7 + $0x3c0] sm:$0xff]  ;;  %v420_v4 = vld [vmem:[#allocation7 + $0x3d0] sm:$0xff] }
  0x99   :  { %2141 = vmatpush1.bf16.msra.mxu0 %v2140_v1  ;;  %2271 = vmatprep.subr.bf16.mxu1 %v2270_v7  ;;  %v425_v63 = vld [vmem:[#allocation7 + $0x3f8] sm:$0xff]  ;;  %v422_v1 = vld [vmem:[#allocation7 + $0x3e0] sm:$0xff]  ;;  %v424_v5 = vld [vmem:[#allocation7 + $0x3f0] sm:$0xff] }
  0x9a   :  { %2143 = vmatprep.subr.bf16.mxu0 %v2142_v3  ;;  %v2290_v2 = vpack.c.bf16 %v425_v63, %v421_v61  ;;  %v2164_v3 = vpack.c.bf16 %v422_v1, %v418_v0  ;;  %v2292_v6 = vpack.c.bf16 %v424_v5, %v420_v4  ;;  %v427_v7 = vld [vmem:[#allocation7 + $0x408] sm:$0xff]  ;;  %v429_v9 = vld [vmem:[#allocation7 + $0x418] sm:$0xff]  ;;  %v426_v22 = vld [vmem:[#allocation7 + $0x400] sm:$0xff] }
  0x9b   :  { %v431_v8 = vld [vmem:[#allocation7 + $0x428] sm:$0xff]  ;;  %v433_v11 = vld [vmem:[#allocation7 + $0x438] sm:$0xff]  ;;  %v430_v23 = vld [vmem:[#allocation7 + $0x420] sm:$0xff] }
  0x9c   :  { %2273 = vmatpush1.bf16.msra.mxu1 %v2272_v14  ;;  %v2166_v10 = vpack.c.bf16 %v431_v8, %v427_v7  ;;  %v2294_v12 = vpack.c.bf16 %v433_v11, %v429_v9  ;;  %v3243_v16 = vld [vmem:[#allocation5] sm:$0xf]  ;;  %v435_v28 = vld [vmem:[#allocation7 + $0x448] sm:$0xff]  ;;  %v438_v40 = vld [vmem:[#allocation7 + $0x460] sm:$0xff] }
  0x9d   :  { %2145 = vmatpush1.bf16.msra.mxu0 %v2144_v13  ;;  %2275 = vmatprep.subr.bf16.mxu1 %v2274_v19  ;;  %v109_v13 = vlaneseq  ;;  %v437_v32 = vld [vmem:[#allocation7 + $0x458] sm:$0xff]  ;;  %v436_v45 = vld [vmem:[#allocation7 + $0x450] sm:$0xff]  ;;  %v443_v47 = vld [vmem:[#allocation7 + $0x488] sm:$0xff] }
  0x9e   :  { %2147 = vmatprep.subr.bf16.mxu0 %v2146_v15  ;;  %v441_v33 = vld [vmem:[#allocation7 + $0x478] sm:$0xff]  ;;  %v440_v46 = vld [vmem:[#allocation7 + $0x470] sm:$0xff]  ;;  %v442_v60 = vld [vmem:[#allocation7 + $0x480] sm:$0xff] }
  0x9f   :  { %v3238_v14 = vshrl.u32 %v109_v13, 7  ;;  %v2298_v44 = vpack.c.bf16 %v441_v33, %v437_v32  ;;  %v445_v52 = vld [vmem:[#allocation7 + $0x498] sm:$0xff]  ;;  %v2300_v59 = vpack.c.bf16 %v440_v46, %v436_v45  ;;  %v446_v61 = vld [vmem:[#allocation7 + $0x4a0] sm:$0xff]  ;;  %v444_v1 = vld [vmem:[#allocation7 + $0x490] sm:$0xff] }
  0xa0   :  { %2277 = vmatpush1.bf16.msra.mxu1 %v2276_v26  ;;  %v428_v26 = vld [vmem:[#allocation7 + $0x410] sm:$0xff]  ;;  %v449_v53 = vld [vmem:[#allocation7 + $0x4b8] sm:$0xff]  ;;  %v455_v4 = vld [vmem:[#allocation7 + $0x4e8] sm:$0xff]  ;;  %v2176_v8 = vpack.c.bf16 %v446_v61, %v442_v60 }
  0xa1   :  { %2149 = vmatpush1.bf16.msra.mxu0 %v2148_v25  ;;  %2279 = vmatprep.subr.bf16.mxu1 %v2278_v31  ;;  %v3241_v15 = vsub.s32 0, %v3238_v14  ;;  %v3246_v17 = vsub.s32 1, %v3238_v14  ;;  %v3253_v20 = vsub.s32 3, %v3238_v14  ;;  %v439_v31 = vld [vmem:[#allocation7 + $0x468] sm:$0xff]  ;;  %v2302_v0 = vpack.c.bf16 %v449_v53, %v445_v52  ;;  %v453_v5 = vld [vmem:[#allocation7 + $0x4d8] sm:$0xff]  ;;  %v454_v11 = vld [vmem:[#allocation7 + $0x4e0] sm:$0xff] }
  0xa2   :  { %2151 = vmatprep.subr.bf16.mxu0 %v2150_v27  ;;  %v432_v27 = vld [vmem:[#allocation7 + $0x430] sm:$0xff]  ;;  %v483_v61 = vld [vmem:[#allocation7 + $0x5c8] sm:$0xff] }
  0xa3   :  { %v112_v18 = vrot.slane %v3243_v16, %v3241_v15  ;;  %v116_v19 = vrot.slane %v3243_v16, %v3246_v17  ;;  %v3259_v34 = vrot.slane %v3243_v16, %v3253_v20  ;;  %v460_v32 = vld [vmem:[#allocation7 + $0x510] sm:$0xff] }
  0xa4   :  { %2281 = vmatpush1.bf16.msra.mxu1 %v2280_v38  ;;  %v2296_v38 = vpack.c.bf16 %v432_v27, %v428_v26  ;;  %v458_v27 = vld [vmem:[#allocation7 + $0x500] sm:$0xff]  ;;  %v464_v33 = vld [vmem:[#allocation7 + $0x530] sm:$0xff] }
  0xa5   :  { %2153 = vmatpush1.bf16.msra.mxu0 %v2152_v37  ;;  %2283 = vmatprep.subr.bf16.mxu1 %v2282_v43  ;;  %v2168_v37 = vpack.c.bf16 %v430_v23, %v426_v22  ;;  %v2170_v43 = vpack.c.bf16 %v439_v31, %v435_v28  ;;  %v463_v22 = vld [vmem:[#allocation7 + $0x528] sm:$0xff]  ;;  %v461_v23 = vld [vmem:[#allocation7 + $0x518] sm:$0xff]  ;;  %v462_v28 = vld [vmem:[#allocation7 + $0x520] sm:$0xff] }
  0xa6   :  { %2155 = vmatprep.subr.bf16.mxu0 %v2154_v39  ;;  %v434_v39 = vld [vmem:[#allocation7 + $0x440] sm:$0xff]  ;;  %v468_v45 = vld [vmem:[#allocation7 + $0x550] sm:$0xff] }
  0xa7   :  { %v472_v46 = vld [vmem:[#allocation7 + $0x570] sm:$0xff] }
  0xa8   :  { %2285 = vmatpush1.bf16.msra.mxu1 %v2284_v50  ;;  %v2316_v53 = vpack.c.bf16 %v472_v46, %v468_v45  ;;  %v480_v60 = vld [vmem:[#allocation7 + $0x5b0] sm:$0xff]  ;;  %v506_v46 = vld [vmem:[#allocation7 + $0x680] sm:$0xff] }
  0xa9   :  { %2157 = vmatpush1.bf16.msra.mxu0 %v2156_v49  ;;  %2287 = vmatprep.subr.bf16.mxu1 %v2286_v54 }
  0xaa   :  { %2159 = vmatprep.subr.bf16.mxu0 %v2158_v51  ;;  %v447_v51 = vld [vmem:[#allocation7 + $0x4a8] sm:$0xff] }
  0xab   :  { %v2174_v63 = vpack.c.bf16 %v447_v51, %v443_v47  ;;  %v475_v47 = vld [vmem:[#allocation7 + $0x588] sm:$0xff]  ;;  %v481_v51 = vld [vmem:[#allocation7 + $0x5b8] sm:$0xff] }
  0xac   :  { %2289 = vmatpush1.bf16.msra.mxu1 %v2288_v58  ;;  %v2172_v58 = vpack.c.bf16 %v438_v40, %v434_v39  ;;  %v2184_v39 = vpack.c.bf16 %v462_v28, %v458_v27  ;;  %v2312_v40 = vpack.c.bf16 %v464_v33, %v460_v32  ;;  %v503_v27 = vld [vmem:[#allocation7 + $0x668] sm:$0xff]  ;;  %v501_v28 = vld [vmem:[#allocation7 + $0x658] sm:$0xff]  ;;  %v498_v33 = vld [vmem:[#allocation7 + $0x640] sm:$0xff] }
  0xad   :  { %2161 = vmatpush1.bf16.msra.mxu0 %v2160_v57  ;;  %2291 = vmatprep.subr.bf16.mxu1 %v2290_v2  ;;  %v448_v2 = vld [vmem:[#allocation7 + $0x4b0] sm:$0xff] }
  0xae   :  { %2163 = vmatprep.subr.bf16.mxu0 %v2162_v62  ;;  %v2304_v9 = vpack.c.bf16 %v448_v2, %v444_v1 }
  0xb0   :  { %2293 = vmatpush1.bf16.msra.mxu1 %v2292_v6  ;;  %v457_v6 = vld [vmem:[#allocation7 + $0x4f8] sm:$0xff] }
  0xb1   :  { %2165 = vmatpush1.bf16.msra.mxu0 %v2164_v3  ;;  %2295 = vmatprep.subr.bf16.mxu1 %v2294_v12  ;;  %v451_v3 = vld [vmem:[#allocation7 + $0x4c8] sm:$0xff]  ;;  %v2306_v13 = vpack.c.bf16 %v457_v6, %v453_v5 }
  0xb2   :  { %2167 = vmatprep.subr.bf16.mxu0 %v2166_v10  ;;  %v450_v10 = vld [vmem:[#allocation7 + $0x4c0] sm:$0xff]  ;;  %v2178_v12 = vpack.c.bf16 %v455_v4, %v451_v3 }
  0xb3   :  { %v482_v3 = vld [vmem:[#allocation7 + $0x5c0] sm:$0xff] }
  0xb4   :  { %v486_v4 = vld [vmem:[#allocation7 + $0x5e0] sm:$0xff] }
 0x144   :  { %v202_v21 = vpop.f32.mrb[0].mxu0  ;;  %v3255_v29 = vpop.f32.mrb[0].mxu1 }
 0x145   :  { %v203_v24 = vadd.f32 %v202_v21, %v112_v18  ;;  %v204_v25 = vpop.f32.mrb[1].mxu0  ;;  %v281_v35 = vpop.f32.mrb[1].mxu1  ;;  %v459_v21 = vld [vmem:[#allocation7 + $0x508] sm:$0xff] }
 0x146   :  { %v205_v30 = vadd.f32 %v204_v25, %v116_v19  ;;  %v282_v55 = vadd.f32 %v281_v35, %v3259_v34  ;;  %v2180_v25 = vpack.c.bf16 %v454_v11, %v450_v10  ;;  %v467_v35 = vld [vmem:[#allocation7 + $0x548] sm:$0xff]  ;;  %v493_v11 = vld [vmem:[#allocation7 + $0x618] sm:$0xff] }
 0x147   :  { %v290_v42 = vmax.f32 %v203_v24, 0.0  ;;  %v465_v24 = vld [vmem:[#allocation7 + $0x538] sm:$0xff]  ;;  %v495_v10 = vld [vmem:[#allocation7 + $0x628] sm:$0xff] }
 0x148   :  { %v291_v36 = vmax.f32 %v205_v30, 0.0  ;;  %v3261_v50 = vpop.f32.mrb[2].mxu1  ;;  %v293_v7 = vmax.f32 %v282_v55, 0.0  ;;  %v2182_v30 = vpack.c.bf16 %v463_v22, %v459_v21  ;;  %v2310_v31 = vpack.c.bf16 %v465_v24, %v461_v23  ;;  %v478_v55 = vld [vmem:[#allocation7 + $0x5a0] sm:$0xff]  ;;  %v492_v24 = vld [vmem:[#allocation7 + $0x610] sm:$0xff] }
 0x149   :  { %v208_v41 = vpop.f32.mrb[2].mxu0  ;;  %v3264_v56 = vpop.f32.mrb[3].mxu1  ;;  %v494_v21 = vld [vmem:[#allocation7 + $0x620] sm:$0xff] }
 0x14a   :  { %v209_v48 = vadd.f32 %v208_v41, %v112_v18  ;;  %v210_v49 = vpop.f32.mrb[3].mxu0  ;;  %640 = vmatprep.mubr.f32.mxu0 %v291_v36  ;;  %794 = vmatprep.mubr.f32.mxu1 %v291_v36  ;;  %v452_v18 = vld [vmem:[#allocation7 + $0x4d0] sm:$0xff]  ;;  %v471_v36 = vld [vmem:[#allocation7 + $0x568] sm:$0xff]  ;;  %v466_v41 = vld [vmem:[#allocation7 + $0x540] sm:$0xff] }
 0x14b   :  { %v211_v54 = vadd.f32 %v210_v49, %v116_v19  ;;  %641 = vmatmul.mubr.f32.vlgmr.msra.gmra.mrb[4].mxu0 %v290_v42  ;;  %795 = vmatmul.mubr.f32.vlgmr.msra.gmra.mrb[4].mxu1 %v290_v42  ;;  %v456_v19 = vld [vmem:[#allocation7 + $0x4f0] sm:$0xff]  ;;  %v470_v42 = vld [vmem:[#allocation7 + $0x560] sm:$0xff]  ;;  %v477_v49 = vld [vmem:[#allocation7 + $0x598] sm:$0xff] }
 0x14c   :  { %v294_v57 = vmax.f32 %v209_v48, 0.0  ;;  %2169 = vmatpush1.bf16.msra.mxu0 %v2168_v37  ;;  %2297 = vmatpush1.bf16.msra.mxu1 %v2296_v38  ;;  %v2308_v26 = vpack.c.bf16 %v456_v19, %v452_v18  ;;  %v469_v37 = vld [vmem:[#allocation7 + $0x558] sm:$0xff]  ;;  %v479_v48 = vld [vmem:[#allocation7 + $0x5a8] sm:$0xff]  ;;  %v2188_v52 = vpack.c.bf16 %v470_v42, %v466_v41  ;;  %v490_v19 = vld [vmem:[#allocation7 + $0x600] sm:$0xff] }
 0x14d   :  { %v295_v62 = vmax.f32 %v211_v54, 0.0  ;;  %2171 = vmatprep.subr.bf16.mxu0 %v2170_v43  ;;  %2299 = vmatprep.subr.bf16.mxu1 %v2298_v44  ;;  %v473_v38 = vld [vmem:[#allocation7 + $0x578] sm:$0xff]  ;;  %v2186_v43 = vpack.c.bf16 %v471_v36, %v467_v35  ;;  %v474_v54 = vld [vmem:[#allocation7 + $0x580] sm:$0xff]  ;;  %v511_v41 = vld [vmem:[#allocation7 + $0x6a8] sm:$0xff] }
 0x14e   :  { %v2314_v44 = vpack.c.bf16 %v473_v38, %v469_v37  ;;  %v2192_v1 = vpack.c.bf16 %v478_v55, %v474_v54  ;;  %v502_v35 = vld [vmem:[#allocation7 + $0x660] sm:$0xff]  ;;  %v500_v38 = vld [vmem:[#allocation7 + $0x650] sm:$0xff]  ;;  %v509_v42 = vld [vmem:[#allocation7 + $0x698] sm:$0xff] }
 0x14f   :  { %646 = vmatprep.mubr.f32.mxu0 %v295_v62  ;;  %800 = vmatprep.mubr.f32.mxu1 %v295_v62  ;;  %v487_v62 = vld [vmem:[#allocation7 + $0x5e8] sm:$0xff]  ;;  %v517_v55 = vld [vmem:[#allocation7 + $0x6d8] sm:$0xff] }
 0x150   :  { %647 = vmatmul.mubr.f32.gmra.mrb[6].mxu0 %v294_v57  ;;  %801 = vmatmul.mubr.f32.gmra.mrb[6].mxu1 %v294_v57  ;;  %v2190_v57 = vpack.c.bf16 %v479_v48, %v475_v47  ;;  %v2194_v5 = vpack.c.bf16 %v487_v62, %v483_v61  ;;  %v510_v47 = vld [vmem:[#allocation7 + $0x6a0] sm:$0xff]  ;;  %v519_v54 = vld [vmem:[#allocation7 + $0x6e8] sm:$0xff] }
 0x151   :  { %2173 = vmatpush1.bf16.msra.mxu0 %v2172_v58  ;;  %2301 = vmatpush1.bf16.msra.mxu1 %v2300_v59  ;;  %v2318_v58 = vpack.c.bf16 %v481_v51, %v477_v49  ;;  %v476_v59 = vld [vmem:[#allocation7 + $0x590] sm:$0xff]  ;;  %v518_v61 = vld [vmem:[#allocation7 + $0x6e0] sm:$0xff] }
 0x152   :  { %2175 = vmatprep.subr.bf16.mxu0 %v2174_v63  ;;  %2303 = vmatprep.subr.bf16.mxu1 %v2302_v0  ;;  %v485_v63 = vld [vmem:[#allocation7 + $0x5d8] sm:$0xff]  ;;  %v2320_v2 = vpack.c.bf16 %v480_v60, %v476_v59  ;;  %v508_v51 = vld [vmem:[#allocation7 + $0x690] sm:$0xff]  ;;  %v514_v60 = vld [vmem:[#allocation7 + $0x6c0] sm:$0xff] }
 0x153   :  { %717 = vmatprep.mubr.f32.mxu0 %v293_v7  ;;  %871 = vmatprep.mubr.f32.mxu1 %v293_v7  ;;  %v489_v0 = vld [vmem:[#allocation7 + $0x5f8] sm:$0xff]  ;;  %v484_v7 = vld [vmem:[#allocation7 + $0x5d0] sm:$0xff] }
 0x154   :  { %v2322_v6 = vpack.c.bf16 %v489_v0, %v485_v63  ;;  %v516_v0 = vld [vmem:[#allocation7 + $0x6d0] sm:$0xff] }
 0x155   :  { %2177 = vmatpush1.bf16.msra.mxu0 %v2176_v8  ;;  %2305 = vmatpush1.bf16.msra.mxu1 %v2304_v9  ;;  %v488_v8 = vld [vmem:[#allocation7 + $0x5f0] sm:$0xff]  ;;  %v491_v9 = vld [vmem:[#allocation7 + $0x608] sm:$0xff] }
 0x156   :  { %2179 = vmatprep.subr.bf16.mxu0 %v2178_v12  ;;  %2307 = vmatprep.subr.bf16.mxu1 %v2306_v13  ;;  %v497_v12 = vld [vmem:[#allocation7 + $0x638] sm:$0xff]  ;;  %v2196_v13 = vpack.c.bf16 %v486_v4, %v482_v3  ;;  %v2324_v18 = vpack.c.bf16 %v488_v8, %v484_v7  ;;  %v2198_v22 = vpack.c.bf16 %v495_v10, %v491_v9  ;;  %v527_v3 = vld [vmem:[#allocation7 + $0x728] sm:$0xff]  ;;  %v522_v8 = vld [vmem:[#allocation7 + $0x700] sm:$0xff] }
 0x157   :  { %v2326_v23 = vpack.c.bf16 %v497_v12, %v493_v11  ;;  %v525_v4 = vld [vmem:[#allocation7 + $0x718] sm:$0xff]  ;;  %v526_v9 = vld [vmem:[#allocation7 + $0x720] sm:$0xff]  ;;  %v524_v12 = vld [vmem:[#allocation7 + $0x710] sm:$0xff] }
 0x159   :  { %2181 = vmatpush1.bf16.msra.mxu0 %v2180_v25  ;;  %2309 = vmatpush1.bf16.msra.mxu1 %v2308_v26  ;;  %v496_v25 = vld [vmem:[#allocation7 + $0x630] sm:$0xff]  ;;  %v499_v26 = vld [vmem:[#allocation7 + $0x648] sm:$0xff] }
 0x15a   :  { %2183 = vmatprep.subr.bf16.mxu0 %v2182_v30  ;;  %2311 = vmatprep.subr.bf16.mxu1 %v2310_v31  ;;  %v505_v30 = vld [vmem:[#allocation7 + $0x678] sm:$0xff]  ;;  %v2200_v31 = vpack.c.bf16 %v494_v21, %v490_v19  ;;  %v2328_v32 = vpack.c.bf16 %v496_v25, %v492_v24  ;;  %v2202_v36 = vpack.c.bf16 %v503_v27, %v499_v26  ;;  %v535_v19 = vld [vmem:[#allocation7 + $0x768] sm:$0xff]  ;;  %v530_v25 = vld [vmem:[#allocation7 + $0x740] sm:$0xff] }
 0x15b   :  { %v2330_v37 = vpack.c.bf16 %v505_v30, %v501_v28  ;;  %v533_v21 = vld [vmem:[#allocation7 + $0x758] sm:$0xff]  ;;  %v534_v26 = vld [vmem:[#allocation7 + $0x760] sm:$0xff]  ;;  %v532_v30 = vld [vmem:[#allocation7 + $0x750] sm:$0xff] }
 0x15d   :  { %2185 = vmatpush1.bf16.msra.mxu0 %v2184_v39  ;;  %2313 = vmatpush1.bf16.msra.mxu1 %v2312_v40  ;;  %v504_v39 = vld [vmem:[#allocation7 + $0x670] sm:$0xff]  ;;  %v507_v40 = vld [vmem:[#allocation7 + $0x688] sm:$0xff] }
 0x15e   :  { %2187 = vmatprep.subr.bf16.mxu0 %v2186_v43  ;;  %2315 = vmatprep.subr.bf16.mxu1 %v2314_v44  ;;  %v513_v43 = vld [vmem:[#allocation7 + $0x6b8] sm:$0xff]  ;;  %v2204_v44 = vpack.c.bf16 %v502_v35, %v498_v33  ;;  %v2332_v45 = vpack.c.bf16 %v504_v39, %v500_v38  ;;  %v2206_v48 = vpack.c.bf16 %v511_v41, %v507_v40  ;;  %v543_v33 = vld [vmem:[#allocation7 + $0x7a8] sm:$0xff]  ;;  %v538_v39 = vld [vmem:[#allocation7 + $0x780] sm:$0xff]  ;;  %v3267_v41 = vsub.s32 2, %v3238_v14 }
 0x15f   :  { %v2334_v49 = vpack.c.bf16 %v513_v43, %v509_v42  ;;  %v541_v35 = vld [vmem:[#allocation7 + $0x798] sm:$0xff]  ;;  %v542_v40 = vld [vmem:[#allocation7 + $0x7a0] sm:$0xff] }
 0x161   :  { %2189 = vmatpush1.bf16.msra.mxu0 %v2188_v52  ;;  %2317 = vmatpush1.bf16.msra.mxu1 %v2316_v53  ;;  %v512_v52 = vld [vmem:[#allocation7 + $0x6b0] sm:$0xff]  ;;  %v515_v53 = vld [vmem:[#allocation7 + $0x6c8] sm:$0xff] }
 0x162   :  { %2191 = vmatprep.subr.bf16.mxu0 %v2190_v57  ;;  %2319 = vmatprep.subr.bf16.mxu1 %v2318_v58  ;;  %v521_v57 = vld [vmem:[#allocation7 + $0x6f8] sm:$0xff]  ;;  %v2208_v58 = vpack.c.bf16 %v510_v47, %v506_v46  ;;  %v2336_v59 = vpack.c.bf16 %v512_v52, %v508_v51  ;;  %v2210_v62 = vpack.c.bf16 %v519_v54, %v515_v53  ;;  %v547_v46 = vld [vmem:[#allocation7 + $0x7c8] sm:$0xff]  ;;  %v546_v53 = vld [vmem:[#allocation7 + $0x7c0] sm:$0xff] }
 0x163   :  { %v2338_v63 = vpack.c.bf16 %v521_v57, %v517_v55  ;;  %v551_v47 = vld [vmem:[#allocation7 + $0x7e8] sm:$0xff]  ;;  %v2224_v51 = vpack.c.bf16 %v542_v40, %v538_v39  ;;  %v550_v54 = vld [vmem:[#allocation7 + $0x7e0] sm:$0xff]  ;;  %v120_v55 = vrot.slane %v3243_v16, %v3267_v41  ;;  %v926_v39 = vld [vmem:[#allocation10 + $0x110] sm:$0xff] }
 0x164   :  { %v2226_v57 = vpack.c.bf16 %v551_v47, %v547_v46  ;;  %v934_v40 = vld [vmem:[#allocation10 + $0x150] sm:$0xff] }
 0x165   :  { %2193 = vmatpush1.bf16.msra.mxu0 %v2192_v1  ;;  %2321 = vmatpush1.bf16.msra.mxu1 %v2320_v2  ;;  %v520_v1 = vld [vmem:[#allocation7 + $0x6f0] sm:$0xff]  ;;  %v523_v2 = vld [vmem:[#allocation7 + $0x708] sm:$0xff]  ;;  %v2496_v47 = vpack.c.bf16 %v934_v40, %v926_v39 }
 0x166   :  { %2195 = vmatprep.subr.bf16.mxu0 %v2194_v5  ;;  %2323 = vmatprep.subr.bf16.mxu1 %v2322_v6  ;;  %v529_v5 = vld [vmem:[#allocation7 + $0x738] sm:$0xff]  ;;  %v2212_v6 = vpack.c.bf16 %v518_v61, %v514_v60  ;;  %v2340_v7 = vpack.c.bf16 %v520_v1, %v516_v0  ;;  %v2214_v10 = vpack.c.bf16 %v527_v3, %v523_v2  ;;  %v552_v60 = vld [vmem:[#allocation7 + $0x7f0] sm:$0xff] }
 0x167   :  { %v2342_v11 = vpack.c.bf16 %v529_v5, %v525_v4  ;;  %v893_v61 = vld [vmem:[#allocation10 + $0x8] sm:$0xff]  ;;  %v903_v0 = vld [vmem:[#allocation10 + $0x58] sm:$0xff]  ;;  %v2228_v1 = vpack.c.bf16 %v550_v54, %v546_v53  ;;  %v288_v3 = vadd.f32 %v3264_v56, %v3259_v34  ;;  %v280_v4 = vadd.f32 %v3255_v29, %v120_v55  ;;  %v942_v53 = vld [vmem:[#allocation10 + $0x190] sm:$0xff] }
 0x168   :  { %v950_v54 = vld [vmem:[#allocation10 + $0x1d0] sm:$0xff] }
 0x169   :  { %2197 = vmatpush1.bf16.msra.mxu0 %v2196_v13  ;;  %2325 = vmatpush1.bf16.msra.mxu1 %v2324_v18  ;;  %v528_v13 = vld [vmem:[#allocation7 + $0x730] sm:$0xff]  ;;  %v531_v18 = vld [vmem:[#allocation7 + $0x748] sm:$0xff]  ;;  %v292_v34 = vmax.f32 %v280_v4, 0.0 }
 0x16a   :  { %2199 = vmatprep.subr.bf16.mxu0 %v2198_v22  ;;  %2327 = vmatprep.subr.bf16.mxu1 %v2326_v23  ;;  %v537_v22 = vld [vmem:[#allocation7 + $0x778] sm:$0xff]  ;;  %v2216_v23 = vpack.c.bf16 %v526_v9, %v522_v8  ;;  %v2344_v24 = vpack.c.bf16 %v528_v13, %v524_v12  ;;  %v2218_v27 = vpack.c.bf16 %v535_v19, %v531_v18  ;;  %v917_v12 = vld [vmem:[#allocation10 + $0xc8] sm:$0xff]  ;;  %v297_v19 = vmax.f32 %v288_v3, 0.0 }
 0x16b   :  { %v2346_v28 = vpack.c.bf16 %v537_v22, %v533_v21  ;;  %v894_v8 = vld [vmem:[#allocation10 + $0x10] sm:$0xff]  ;;  %v911_v13 = vld [vmem:[#allocation10 + $0x98] sm:$0xff]  ;;  %v908_v21 = vld [vmem:[#allocation10 + $0x80] sm:$0xff] }
 0x16c   :  { %v902_v9 = vld [vmem:[#allocation10 + $0x50] sm:$0xff]  ;;  %v919_v18 = vld [vmem:[#allocation10 + $0xd8] sm:$0xff]  ;;  %v916_v22 = vld [vmem:[#allocation10 + $0xc0] sm:$0xff] }
 0x16d   :  { %2201 = vmatpush1.bf16.msra.mxu0 %v2200_v31  ;;  %2329 = vmatpush1.bf16.msra.mxu1 %v2328_v32  ;;  %v536_v31 = vld [vmem:[#allocation7 + $0x770] sm:$0xff]  ;;  %v539_v32 = vld [vmem:[#allocation7 + $0x788] sm:$0xff]  ;;  %v2488_v56 = vpack.c.bf16 %v902_v9, %v894_v8 }
 0x16e   :  { %2203 = vmatprep.subr.bf16.mxu0 %v2202_v36  ;;  %2331 = vmatprep.subr.bf16.mxu1 %v2330_v37  ;;  %v545_v36 = vld [vmem:[#allocation7 + $0x7b8] sm:$0xff]  ;;  %v2220_v37 = vpack.c.bf16 %v534_v26, %v530_v25  ;;  %v2348_v38 = vpack.c.bf16 %v536_v31, %v532_v30  ;;  %v2222_v42 = vpack.c.bf16 %v543_v33, %v539_v32  ;;  %v973_v4 = vld [vmem:[#allocation10 + $0x288] sm:$0xff]  ;;  %v972_v9 = vld [vmem:[#allocation10 + $0x280] sm:$0xff] }
 0x16f   :  { %v2350_v43 = vpack.c.bf16 %v545_v36, %v541_v35  ;;  %v910_v25 = vld [vmem:[#allocation10 + $0x90] sm:$0xff]  ;;  %v927_v30 = vld [vmem:[#allocation10 + $0x118] sm:$0xff]  ;;  %v2364_v32 = vpack.c.bf16 %v916_v22, %v908_v21  ;;  %v924_v35 = vld [vmem:[#allocation10 + $0x100] sm:$0xff] }
 0x170   :  { %v918_v26 = vld [vmem:[#allocation10 + $0xd0] sm:$0xff]  ;;  %v935_v31 = vld [vmem:[#allocation10 + $0x158] sm:$0xff]  ;;  %v932_v36 = vld [vmem:[#allocation10 + $0x140] sm:$0xff] }
 0x171   :  { %2205 = vmatpush1.bf16.msra.mxu0 %v2204_v44  ;;  %2333 = vmatpush1.bf16.msra.mxu1 %v2332_v45  ;;  %v540_v44 = vld [vmem:[#allocation7 + $0x790] sm:$0xff]  ;;  %v2492_v33 = vpack.c.bf16 %v918_v26, %v910_v25  ;;  %v2368_v46 = vpack.c.bf16 %v932_v36, %v924_v35  ;;  %v1004_v36 = vld [vmem:[#allocation10 + $0x380] sm:$0xff] }
 0x172   :  { %2207 = vmatprep.subr.bf16.mxu0 %v2206_v48  ;;  %2335 = vmatprep.subr.bf16.mxu1 %v2334_v49  ;;  %v544_v45 = vld [vmem:[#allocation7 + $0x7b0] sm:$0xff]  ;;  %v549_v48 = vld [vmem:[#allocation7 + $0x7d8] sm:$0xff] }
 0x173   :  { %v553_v49 = vld [vmem:[#allocation7 + $0x7f8] sm:$0xff]  ;;  %v2352_v52 = vpack.c.bf16 %v544_v45, %v540_v44 }
 0x174   :  { %v943_v44 = vld [vmem:[#allocation10 + $0x198] sm:$0xff]  ;;  %v966_v3 = vld [vmem:[#allocation10 + $0x250] sm:$0xff] }
 0x175   :  { %2209 = vmatpush1.bf16.msra.mxu0 %v2208_v58  ;;  %2337 = vmatpush1.bf16.msra.mxu1 %v2336_v59  ;;  %v2354_v58 = vpack.c.bf16 %v553_v49, %v549_v48  ;;  %v548_v59 = vld [vmem:[#allocation7 + $0x7d0] sm:$0xff]  ;;  %v951_v45 = vld [vmem:[#allocation10 + $0x1d8] sm:$0xff]  ;;  %v940_v48 = vld [vmem:[#allocation10 + $0x180] sm:$0xff] }
 0x176   :  { %2211 = vmatprep.subr.bf16.mxu0 %v2210_v62  ;;  %2339 = vmatprep.subr.bf16.mxu1 %v2338_v63  ;;  %v901_v62 = vld [vmem:[#allocation10 + $0x48] sm:$0xff]  ;;  %v895_v63 = vld [vmem:[#allocation10 + $0x18] sm:$0xff]  ;;  %v2356_v2 = vpack.c.bf16 %v552_v60, %v548_v59  ;;  %v948_v49 = vld [vmem:[#allocation10 + $0x1c0] sm:$0xff] }
 0x177   :  { %v2358_v16 = vpack.c.bf16 %v901_v62, %v893_v61  ;;  %v2486_v5 = vpack.c.bf16 %v903_v0, %v895_v63  ;;  %v967_v59 = vld [vmem:[#allocation10 + $0x258] sm:$0xff]  ;;  %v2372_v60 = vpack.c.bf16 %v948_v49, %v940_v48  ;;  %v2500_v61 = vpack.c.bf16 %v950_v54, %v942_v53  ;;  %v956_v62 = vld [vmem:[#allocation10 + $0x200] sm:$0xff]  ;;  %v1006_v40 = vld [vmem:[#allocation10 + $0x390] sm:$0xff] }
 0x178   :  { %v964_v63 = vld [vmem:[#allocation10 + $0x240] sm:$0xff]  ;;  %v1022_v54 = vld [vmem:[#allocation10 + $0x410] sm:$0xff] }
 0x179   :  { %2213 = vmatpush1.bf16.msra.mxu0 %v2212_v6  ;;  %2341 = vmatpush1.bf16.msra.mxu1 %v2340_v7  ;;  %v892_v6 = vld [vmem:[#allocation10] sm:$0xff] }
 0x17a   :  { %2215 = vmatprep.subr.bf16.mxu0 %v2214_v10  ;;  %2343 = vmatprep.subr.bf16.mxu1 %v2342_v11  ;;  %v900_v7 = vld [vmem:[#allocation10 + $0x40] sm:$0xff]  ;;  %v909_v10 = vld [vmem:[#allocation10 + $0x88] sm:$0xff]  ;;  %v286_v11 = vadd.f32 %v3261_v50, %v120_v55 }
 0x17b   :  { %v2360_v29 = vpack.c.bf16 %v900_v7, %v892_v6  ;;  %v933_v50 = vld [vmem:[#allocation10 + $0x148] sm:$0xff]  ;;  %v983_v6 = vld [vmem:[#allocation10 + $0x2d8] sm:$0xff]  ;;  %v2376_v7 = vpack.c.bf16 %v964_v63, %v956_v62  ;;  %v1020_v49 = vld [vmem:[#allocation10 + $0x400] sm:$0xff] }
 0x17c   :  { %v957_v55 = vld [vmem:[#allocation10 + $0x208] sm:$0xff]  ;;  %v1036_v63 = vld [vmem:[#allocation10 + $0x480] sm:$0xff] }
 0x17d   :  { %2217 = vmatpush1.bf16.msra.mxu0 %v2216_v23  ;;  %2345 = vmatpush1.bf16.msra.mxu1 %v2344_v24  ;;  %v2362_v23 = vpack.c.bf16 %v917_v12, %v909_v10  ;;  %v2490_v24 = vpack.c.bf16 %v919_v18, %v911_v13  ;;  %v980_v10 = vld [vmem:[#allocation10 + $0x2c0] sm:$0xff]  ;;  %v974_v13 = vld [vmem:[#allocation10 + $0x290] sm:$0xff] }
 0x17e   :  { %2219 = vmatprep.subr.bf16.mxu0 %v2218_v27  ;;  %2347 = vmatprep.subr.bf16.mxu1 %v2346_v28  ;;  %v925_v27 = vld [vmem:[#allocation10 + $0x108] sm:$0xff]  ;;  %v296_v28 = vmax.f32 %v286_v11, 0.0  ;;  %v982_v18 = vld [vmem:[#allocation10 + $0x2d0] sm:$0xff]  ;;  %v2380_v21 = vpack.c.bf16 %v980_v10, %v972_v9  ;;  %v1052_v10 = vld [vmem:[#allocation10 + $0x500] sm:$0xff] }
 0x17f   :  { %v2508_v22 = vpack.c.bf16 %v982_v18, %v974_v13  ;;  %v1054_v18 = vld [vmem:[#allocation10 + $0x510] sm:$0xff] }
 0x181   :  { %2221 = vmatpush1.bf16.msra.mxu0 %v2220_v37  ;;  %2349 = vmatpush1.bf16.msra.mxu1 %v2348_v38  ;;  %v2366_v37 = vpack.c.bf16 %v933_v50, %v925_v27  ;;  %v2494_v38 = vpack.c.bf16 %v935_v31, %v927_v30  ;;  %v990_v27 = vld [vmem:[#allocation10 + $0x310] sm:$0xff]  ;;  %v1005_v50 = vld [vmem:[#allocation10 + $0x388] sm:$0xff]  ;;  %v1007_v31 = vld [vmem:[#allocation10 + $0x398] sm:$0xff] }
 0x182   :  { %2223 = vmatprep.subr.bf16.mxu0 %v2222_v42  ;;  %2351 = vmatprep.subr.bf16.mxu1 %v2350_v43  ;;  %v941_v42 = vld [vmem:[#allocation10 + $0x188] sm:$0xff] }
 0x183   :  { %v949_v43 = vld [vmem:[#allocation10 + $0x1c8] sm:$0xff] }
 0x184   :  { %v1013_v30 = vld [vmem:[#allocation10 + $0x3c8] sm:$0xff] }
 0x185   :  { %2225 = vmatpush1.bf16.msra.mxu0 %v2224_v51  ;;  %2353 = vmatpush1.bf16.msra.mxu1 %v2352_v52  ;;  %v2370_v51 = vpack.c.bf16 %v949_v43, %v941_v42  ;;  %v2498_v52 = vpack.c.bf16 %v951_v45, %v943_v44  ;;  %v1014_v42 = vld [vmem:[#allocation10 + $0x3d0] sm:$0xff]  ;;  %v1021_v43 = vld [vmem:[#allocation10 + $0x408] sm:$0xff]  ;;  %v1023_v45 = vld [vmem:[#allocation10 + $0x418] sm:$0xff] }
 0x186   :  { %2227 = vmatprep.subr.bf16.mxu0 %v2226_v57  ;;  %2355 = vmatprep.subr.bf16.mxu1 %v2354_v58  ;;  %v965_v57 = vld [vmem:[#allocation10 + $0x248] sm:$0xff]  ;;  %v959_v58 = vld [vmem:[#allocation10 + $0x218] sm:$0xff]  ;;  %v2516_v48 = vpack.c.bf16 %v1014_v42, %v1006_v40  ;;  %v1086_v42 = vld [vmem:[#allocation10 + $0x610] sm:$0xff] }
 0x187   :  { %v2374_v0 = vpack.c.bf16 %v965_v57, %v957_v55  ;;  %v1029_v44 = vld [vmem:[#allocation10 + $0x448] sm:$0xff]  ;;  %v1030_v55 = vld [vmem:[#allocation10 + $0x450] sm:$0xff] }
 0x188   :  { %v1037_v57 = vld [vmem:[#allocation10 + $0x488] sm:$0xff]  ;;  %v2520_v62 = vpack.c.bf16 %v1030_v55, %v1022_v54  ;;  %v1102_v55 = vld [vmem:[#allocation10 + $0x690] sm:$0xff] }
 0x189   :  { %2229 = vmatpush1.bf16.msra.mxu0 %v2228_v1  ;;  %2357 = vmatpush1.bf16.msra.mxu1 %v2356_v2  ;;  %v2502_v1 = vpack.c.bf16 %v967_v59, %v959_v58  ;;  %v958_v2 = vld [vmem:[#allocation10 + $0x210] sm:$0xff]  ;;  %v1045_v58 = vld [vmem:[#allocation10 + $0x4c8] sm:$0xff]  ;;  %v1039_v59 = vld [vmem:[#allocation10 + $0x498] sm:$0xff] }
 0x18a   :  { %2359 = vmatprep.subr.bf16.mxu0 %v2358_v16  ;;  %2487 = vmatprep.subr.bf16.mxu1 %v2486_v5  ;;  %v981_v16 = vld [vmem:[#allocation10 + $0x2c8] sm:$0xff]  ;;  %v975_v5 = vld [vmem:[#allocation10 + $0x298] sm:$0xff]  ;;  %v2504_v8 = vpack.c.bf16 %v966_v3, %v958_v2  ;;  %v1038_v3 = vld [vmem:[#allocation10 + $0x490] sm:$0xff] }
 0x18b   :  { %v2378_v11 = vpack.c.bf16 %v981_v16, %v973_v4  ;;  %v2506_v12 = vpack.c.bf16 %v983_v6, %v975_v5  ;;  %v1046_v4 = vld [vmem:[#allocation10 + $0x4d0] sm:$0xff]  ;;  %v1053_v16 = vld [vmem:[#allocation10 + $0x508] sm:$0xff]  ;;  %v1055_v6 = vld [vmem:[#allocation10 + $0x518] sm:$0xff] }
 0x18c   :  { %718 = vmatmul.mubr.f32.vlgmr.msra.gmra.mrb[4].mxu0 %v292_v34  ;;  %872 = vmatmul.mubr.f32.vlgmr.msra.gmra.mrb[4].mxu1 %v292_v34  ;;  %v997_v34 = vld [vmem:[#allocation10 + $0x348] sm:$0xff]  ;;  %v2524_v9 = vpack.c.bf16 %v1046_v4, %v1038_v3  ;;  %v1124_v3 = vld [vmem:[#allocation10 + $0x740] sm:$0xff]  ;;  %v1118_v4 = vld [vmem:[#allocation10 + $0x710] sm:$0xff] }
 0x18d   :  { %723 = vmatprep.mubr.f32.mxu0 %v297_v19  ;;  %877 = vmatprep.mubr.f32.mxu1 %v297_v19  ;;  %v989_v19 = vld [vmem:[#allocation10 + $0x308] sm:$0xff] }
 0x18e   :  { %2361 = vmatpush1.bf16.msra.mxu0 %v2360_v29  ;;  %2489 = vmatpush1.bf16.msra.mxu1 %v2488_v56  ;;  %v991_v29 = vld [vmem:[#allocation10 + $0x318] sm:$0xff]  ;;  %v2382_v25 = vpack.c.bf16 %v997_v34, %v989_v19  ;;  %v1061_v5 = vld [vmem:[#allocation10 + $0x548] sm:$0xff]  ;;  %v1062_v19 = vld [vmem:[#allocation10 + $0x550] sm:$0xff] }
 0x18f   :  { %2363 = vmatprep.subr.bf16.mxu0 %v2362_v23  ;;  %2491 = vmatprep.subr.bf16.mxu1 %v2490_v24  ;;  %v999_v56 = vld [vmem:[#allocation10 + $0x358] sm:$0xff]  ;;  %v988_v23 = vld [vmem:[#allocation10 + $0x300] sm:$0xff]  ;;  %v1069_v34 = vld [vmem:[#allocation10 + $0x588] sm:$0xff] }
 0x190   :  { %724 = vmatmul.mubr.f32.gmra.mrb[6].mxu0 %v296_v28  ;;  %878 = vmatmul.mubr.f32.gmra.mrb[6].mxu1 %v296_v28  ;;  %v996_v24 = vld [vmem:[#allocation10 + $0x340] sm:$0xff]  ;;  %v2510_v26 = vpack.c.bf16 %v999_v56, %v991_v29  ;;  %v998_v28 = vld [vmem:[#allocation10 + $0x350] sm:$0xff]  ;;  %v1077_v29 = vld [vmem:[#allocation10 + $0x5c8] sm:$0xff] }
 0x191   :  { %v2512_v35 = vpack.c.bf16 %v998_v28, %v990_v27  ;;  %v1071_v56 = vld [vmem:[#allocation10 + $0x598] sm:$0xff]  ;;  %v1070_v28 = vld [vmem:[#allocation10 + $0x590] sm:$0xff] }
 0x192   :  { %2365 = vmatpush1.bf16.msra.mxu0 %v2364_v32  ;;  %2493 = vmatpush1.bf16.msra.mxu1 %v2492_v33  ;;  %v1015_v32 = vld [vmem:[#allocation10 + $0x3d8] sm:$0xff]  ;;  %v2384_v33 = vpack.c.bf16 %v996_v24, %v988_v23  ;;  %v2528_v23 = vpack.c.bf16 %v1062_v19, %v1054_v18  ;;  %v1068_v24 = vld [vmem:[#allocation10 + $0x580] sm:$0xff] }
 0x193   :  { %2367 = vmatprep.subr.bf16.mxu0 %v2366_v37  ;;  %2495 = vmatprep.subr.bf16.mxu1 %v2494_v38  ;;  %v1012_v37 = vld [vmem:[#allocation10 + $0x3c0] sm:$0xff]  ;;  %v2386_v38 = vpack.c.bf16 %v1013_v30, %v1005_v50  ;;  %v2514_v39 = vpack.c.bf16 %v1015_v32, %v1007_v31  ;;  %v1078_v50 = vld [vmem:[#allocation10 + $0x5d0] sm:$0xff]  ;;  %v1085_v30 = vld [vmem:[#allocation10 + $0x608] sm:$0xff] }
 0x194   :  { %v1093_v31 = vld [vmem:[#allocation10 + $0x648] sm:$0xff]  ;;  %v1087_v32 = vld [vmem:[#allocation10 + $0x618] sm:$0xff] }
 0x196   :  { %2369 = vmatpush1.bf16.msra.mxu0 %v2368_v46  ;;  %2497 = vmatpush1.bf16.msra.mxu1 %v2496_v47  ;;  %v1031_v46 = vld [vmem:[#allocation10 + $0x458] sm:$0xff]  ;;  %v2388_v47 = vpack.c.bf16 %v1012_v37, %v1004_v36  ;;  %v2532_v36 = vpack.c.bf16 %v1078_v50, %v1070_v28  ;;  %v1084_v37 = vld [vmem:[#allocation10 + $0x600] sm:$0xff] }
 0x197   :  { %2371 = vmatprep.subr.bf16.mxu0 %v2370_v51  ;;  %2499 = vmatprep.subr.bf16.mxu1 %v2498_v52  ;;  %v1028_v51 = vld [vmem:[#allocation10 + $0x440] sm:$0xff]  ;;  %v2390_v52 = vpack.c.bf16 %v1029_v44, %v1021_v43  ;;  %v2518_v53 = vpack.c.bf16 %v1031_v46, %v1023_v45  ;;  %v1094_v43 = vld [vmem:[#allocation10 + $0x650] sm:$0xff]  ;;  %v1101_v44 = vld [vmem:[#allocation10 + $0x688] sm:$0xff] }
 0x198   :  { %v1109_v45 = vld [vmem:[#allocation10 + $0x6c8] sm:$0xff]  ;;  %v1103_v46 = vld [vmem:[#allocation10 + $0x698] sm:$0xff] }
 0x19a   :  { %2373 = vmatpush1.bf16.msra.mxu0 %v2372_v60  ;;  %2501 = vmatpush1.bf16.msra.mxu1 %v2500_v61  ;;  %v1047_v60 = vld [vmem:[#allocation10 + $0x4d8] sm:$0xff]  ;;  %v2392_v61 = vpack.c.bf16 %v1028_v51, %v1020_v49  ;;  %v2536_v49 = vpack.c.bf16 %v1094_v43, %v1086_v42  ;;  %v1100_v51 = vld [vmem:[#allocation10 + $0x680] sm:$0xff]  ;;  %v1173_v43 = vld [vmem:[#allocation10 + $0x8c8] sm:$0xff] }
 0x19b   :  { %2375 = vmatprep.subr.bf16.mxu0 %v2374_v0  ;;  %2503 = vmatprep.subr.bf16.mxu1 %v2502_v1  ;;  %v1044_v0 = vld [vmem:[#allocation10 + $0x4c0] sm:$0xff]  ;;  %v2394_v1 = vpack.c.bf16 %v1045_v58, %v1037_v57  ;;  %v2522_v2 = vpack.c.bf16 %v1047_v60, %v1039_v59  ;;  %v1110_v57 = vld [vmem:[#allocation10 + $0x6d0] sm:$0xff]  ;;  %v1117_v58 = vld [vmem:[#allocation10 + $0x708] sm:$0xff] }
 0x19c   :  { %v1125_v59 = vld [vmem:[#allocation10 + $0x748] sm:$0xff]  ;;  %v1119_v60 = vld [vmem:[#allocation10 + $0x718] sm:$0xff] }
 0x19e   :  { %2377 = vmatpush1.bf16.msra.mxu0 %v2376_v7  ;;  %2505 = vmatpush1.bf16.msra.mxu1 %v2504_v8  ;;  %v1063_v7 = vld [vmem:[#allocation10 + $0x558] sm:$0xff]  ;;  %v2396_v8 = vpack.c.bf16 %v1044_v0, %v1036_v63  ;;  %v2540_v63 = vpack.c.bf16 %v1110_v57, %v1102_v55  ;;  %v1116_v0 = vld [vmem:[#allocation10 + $0x700] sm:$0xff] }
 0x19f   :  { %2379 = vmatprep.subr.bf16.mxu0 %v2378_v11  ;;  %2507 = vmatprep.subr.bf16.mxu1 %v2506_v12  ;;  %v1060_v11 = vld [vmem:[#allocation10 + $0x540] sm:$0xff]  ;;  %v2398_v12 = vpack.c.bf16 %v1061_v5, %v1053_v16  ;;  %v2526_v13 = vpack.c.bf16 %v1063_v7, %v1055_v6  ;;  %v1126_v16 = vld [vmem:[#allocation10 + $0x750] sm:$0xff]  ;;  %v2416_v5 = vpack.c.bf16 %v1124_v3, %v1116_v0  ;;  %v1133_v7 = vld [vmem:[#allocation10 + $0x788] sm:$0xff] }
 0x1a0   :  { %v2544_v6 = vpack.c.bf16 %v1126_v16, %v1118_v4  ;;  %v1189_v3 = vld [vmem:[#allocation10 + $0x948] sm:$0xff]  ;;  %v1183_v4 = vld [vmem:[#allocation10 + $0x918] sm:$0xff] }
 0x1a1   :  { %v1191_v16 = vld [vmem:[#allocation10 + $0x958] sm:$0xff] }
 0x1a2   :  { %2381 = vmatpush1.bf16.msra.mxu0 %v2380_v21  ;;  %2509 = vmatpush1.bf16.msra.mxu1 %v2508_v22  ;;  %v1079_v21 = vld [vmem:[#allocation10 + $0x5d8] sm:$0xff]  ;;  %v2400_v22 = vpack.c.bf16 %v1060_v11, %v1052_v10 }
 0x1a3   :  { %2383 = vmatprep.subr.bf16.mxu0 %v2382_v25  ;;  %2511 = vmatprep.subr.bf16.mxu1 %v2510_v26  ;;  %v1076_v25 = vld [vmem:[#allocation10 + $0x5c0] sm:$0xff]  ;;  %v2402_v26 = vpack.c.bf16 %v1077_v29, %v1069_v34  ;;  %v2530_v27 = vpack.c.bf16 %v1079_v21, %v1071_v56  ;;  %v1143_v11 = vld [vmem:[#allocation10 + $0x7d8] sm:$0xff]  ;;  %v1134_v34 = vld [vmem:[#allocation10 + $0x790] sm:$0xff] }
 0x1a4   :  { %v1142_v29 = vld [vmem:[#allocation10 + $0x7d0] sm:$0xff]  ;;  %v1149_v21 = vld [vmem:[#allocation10 + $0x808] sm:$0xff] }
 0x1a5   :  { %v2548_v56 = vpack.c.bf16 %v1142_v29, %v1134_v34  ;;  %v1205_v34 = vld [vmem:[#allocation10 + $0x9c8] sm:$0xff]  ;;  %v1199_v29 = vld [vmem:[#allocation10 + $0x998] sm:$0xff] }
 0x1a6   :  { %2385 = vmatpush1.bf16.msra.mxu0 %v2384_v33  ;;  %2513 = vmatpush1.bf16.msra.mxu1 %v2512_v35  ;;  %v1095_v33 = vld [vmem:[#allocation10 + $0x658] sm:$0xff]  ;;  %v2404_v35 = vpack.c.bf16 %v1076_v25, %v1068_v24 }
 0x1a7   :  { %2387 = vmatprep.subr.bf16.mxu0 %v2386_v38  ;;  %2515 = vmatprep.subr.bf16.mxu1 %v2514_v39  ;;  %v1092_v38 = vld [vmem:[#allocation10 + $0x640] sm:$0xff]  ;;  %v2406_v39 = vpack.c.bf16 %v1093_v31, %v1085_v30  ;;  %v2534_v40 = vpack.c.bf16 %v1095_v33, %v1087_v32  ;;  %v1159_v25 = vld [vmem:[#allocation10 + $0x858] sm:$0xff] }
 0x1a8   :  { %v1148_v32 = vld [vmem:[#allocation10 + $0x800] sm:$0xff] }
 0x1a9   :  { %v1156_v33 = vld [vmem:[#allocation10 + $0x840] sm:$0xff] }
 0x1aa   :  { %2389 = vmatpush1.bf16.msra.mxu0 %v2388_v47  ;;  %2517 = vmatpush1.bf16.msra.mxu1 %v2516_v48  ;;  %v1111_v47 = vld [vmem:[#allocation10 + $0x6d8] sm:$0xff]  ;;  %v2408_v48 = vpack.c.bf16 %v1092_v38, %v1084_v37  ;;  %v1150_v38 = vld [vmem:[#allocation10 + $0x810] sm:$0xff] }
 0x1ab   :  { %2391 = vmatprep.subr.bf16.mxu0 %v2390_v52  ;;  %2519 = vmatprep.subr.bf16.mxu1 %v2518_v53  ;;  %v1108_v52 = vld [vmem:[#allocation10 + $0x6c0] sm:$0xff]  ;;  %v2410_v53 = vpack.c.bf16 %v1109_v45, %v1101_v44  ;;  %v2538_v54 = vpack.c.bf16 %v1111_v47, %v1103_v46  ;;  %v1167_v44 = vld [vmem:[#allocation10 + $0x898] sm:$0xff] }
 0x1ac   :  { %v1175_v45 = vld [vmem:[#allocation10 + $0x8d8] sm:$0xff] }
 0x1ae   :  { %2393 = vmatpush1.bf16.msra.mxu0 %v2392_v61  ;;  %2521 = vmatpush1.bf16.msra.mxu1 %v2520_v62  ;;  %v1127_v61 = vld [vmem:[#allocation10 + $0x758] sm:$0xff]  ;;  %v2412_v62 = vpack.c.bf16 %v1108_v52, %v1100_v51  ;;  %v2424_v51 = vpack.c.bf16 %v1156_v33, %v1148_v32  ;;  %v1213_v32 = vld [vmem:[#allocation10 + $0xa08] sm:$0xff] }
 0x1af   :  { %2395 = vmatprep.subr.bf16.mxu0 %v2394_v1  ;;  %2523 = vmatprep.subr.bf16.mxu1 %v2522_v2  ;;  %v2414_v1 = vpack.c.bf16 %v1125_v59, %v1117_v58  ;;  %v2542_v2 = vpack.c.bf16 %v1127_v61, %v1119_v60  ;;  %v2554_v60 = vpack.c.bf16 %v1175_v45, %v1167_v44  ;;  %v1172_v61 = vld [vmem:[#allocation10 + $0x8c0] sm:$0xff]  ;;  %v1221_v33 = vld [vmem:[#allocation10 + $0xa48] sm:$0xff]  ;;  %v1214_v44 = vld [vmem:[#allocation10 + $0xa10] sm:$0xff] }
 0x1b0   :  { %v1222_v45 = vld [vmem:[#allocation10 + $0xa50] sm:$0xff] }
 0x1b2   :  { %2397 = vmatpush1.bf16.msra.mxu0 %v2396_v8  ;;  %2525 = vmatpush1.bf16.msra.mxu1 %v2524_v9  ;;  %v1141_v8 = vld [vmem:[#allocation10 + $0x7c8] sm:$0xff]  ;;  %v1135_v9 = vld [vmem:[#allocation10 + $0x798] sm:$0xff] }
 0x1b3   :  { %2399 = vmatprep.subr.bf16.mxu0 %v2398_v12  ;;  %2527 = vmatprep.subr.bf16.mxu1 %v2526_v13  ;;  %v2418_v10 = vpack.c.bf16 %v1141_v8, %v1133_v7  ;;  %v1132_v12 = vld [vmem:[#allocation10 + $0x780] sm:$0xff]  ;;  %v2546_v18 = vpack.c.bf16 %v1143_v11, %v1135_v9  ;;  %v1182_v11 = vld [vmem:[#allocation10 + $0x910] sm:$0xff] }
 0x1b4   :  { %v1140_v13 = vld [vmem:[#allocation10 + $0x7c0] sm:$0xff] }
 0x1b5   :  { %v2420_v19 = vpack.c.bf16 %v1140_v13, %v1132_v12  ;;  %v1180_v8 = vld [vmem:[#allocation10 + $0x900] sm:$0xff]  ;;  %v1190_v12 = vld [vmem:[#allocation10 + $0x950] sm:$0xff]  ;;  %v1197_v13 = vld [vmem:[#allocation10 + $0x988] sm:$0xff] }
 0x1b6   :  { %2401 = vmatpush1.bf16.msra.mxu0 %v2400_v22  ;;  %2529 = vmatpush1.bf16.msra.mxu1 %v2528_v23  ;;  %v1157_v22 = vld [vmem:[#allocation10 + $0x848] sm:$0xff]  ;;  %v1151_v23 = vld [vmem:[#allocation10 + $0x818] sm:$0xff]  ;;  %v1188_v9 = vld [vmem:[#allocation10 + $0x940] sm:$0xff] }
 0x1b7   :  { %2403 = vmatprep.subr.bf16.mxu0 %v2402_v26  ;;  %2531 = vmatprep.subr.bf16.mxu1 %v2530_v27  ;;  %v2422_v24 = vpack.c.bf16 %v1157_v22, %v1149_v21  ;;  %v2550_v26 = vpack.c.bf16 %v1159_v25, %v1151_v23  ;;  %v3275_v27 = vld [vmem:[#allocation8] sm:$0xf]  ;;  %v2432_v22 = vpack.c.bf16 %v1188_v9, %v1180_v8  ;;  %v1204_v25 = vld [vmem:[#allocation10 + $0x9c0] sm:$0xff] }
 0x1b8   :  { %v559_v28 = vrot.slane %v3275_v27, %v3241_v15  ;;  %v563_v50 = vrot.slane %v3275_v27, %v3246_v17  ;;  %v3285_v46 = vrot.slane %v3275_v27, %v3253_v20  ;;  %v2560_v23 = vpack.c.bf16 %v1190_v12, %v1182_v11  ;;  %v1252_v8 = vld [vmem:[#allocation10 + $0xb40] sm:$0xff]  ;;  %v1246_v12 = vld [vmem:[#allocation10 + $0xb10] sm:$0xff] }
 0x1ba   :  { %2405 = vmatpush1.bf16.msra.mxu0 %v2404_v35  ;;  %2533 = vmatpush1.bf16.msra.mxu1 %v2532_v36 }
 0x1bb   :  { %2407 = vmatprep.subr.bf16.mxu0 %v2406_v39  ;;  %2535 = vmatprep.subr.bf16.mxu1 %v2534_v40  ;;  %v1158_v39 = vld [vmem:[#allocation10 + $0x850] sm:$0xff]  ;;  %v1165_v40 = vld [vmem:[#allocation10 + $0x888] sm:$0xff] }
 0x1bc   :  { %v2552_v52 = vpack.c.bf16 %v1158_v39, %v1150_v38  ;;  %v2426_v59 = vpack.c.bf16 %v1173_v43, %v1165_v40  ;;  %v1212_v39 = vld [vmem:[#allocation10 + $0xa00] sm:$0xff] }
 0x1bd   :  { %v1220_v40 = vld [vmem:[#allocation10 + $0xa40] sm:$0xff] }
 0x1be   :  { %2409 = vmatpush1.bf16.msra.mxu0 %v2408_v48  ;;  %2537 = vmatpush1.bf16.msra.mxu1 %v2536_v49 }
 0x1bf   :  { %2411 = vmatprep.subr.bf16.mxu0 %v2410_v53  ;;  %2539 = vmatprep.subr.bf16.mxu1 %v2538_v54  ;;  %v1164_v53 = vld [vmem:[#allocation10 + $0x880] sm:$0xff] }
 0x1c2   :  { %2413 = vmatpush1.bf16.msra.mxu0 %v2412_v62  ;;  %2541 = vmatpush1.bf16.msra.mxu1 %v2540_v63  ;;  %v1166_v62 = vld [vmem:[#allocation10 + $0x890] sm:$0xff] }
 0x1c3   :  { %2415 = vmatprep.subr.bf16.mxu0 %v2414_v1  ;;  %2543 = vmatprep.subr.bf16.mxu1 %v2542_v2  ;;  %v1174_v63 = vld [vmem:[#allocation10 + $0x8d0] sm:$0xff]  ;;  %v1181_v1 = vld [vmem:[#allocation10 + $0x908] sm:$0xff] }
 0x1c4   :  { %v2556_v7 = vpack.c.bf16 %v1174_v63, %v1166_v62  ;;  %v1230_v63 = vld [vmem:[#allocation10 + $0xa90] sm:$0xff] }
 0x1c6   :  { %2417 = vmatpush1.bf16.msra.mxu0 %v2416_v5  ;;  %2545 = vmatpush1.bf16.msra.mxu1 %v2544_v6  ;;  %v2428_v6 = vpack.c.bf16 %v1172_v61, %v1164_v53  ;;  %v1239_v53 = vld [vmem:[#allocation10 + $0xad8] sm:$0xff] }
 0x1c7   :  { %2419 = vmatprep.subr.bf16.mxu0 %v2418_v10  ;;  %2547 = vmatprep.subr.bf16.mxu1 %v2546_v18  ;;  %v2430_v18 = vpack.c.bf16 %v1189_v3, %v1181_v1  ;;  %v1245_v1 = vld [vmem:[#allocation10 + $0xb08] sm:$0xff]  ;;  %v1247_v3 = vld [vmem:[#allocation10 + $0xb18] sm:$0xff] }
 0x1ca   :  { %2421 = vmatpush1.bf16.msra.mxu0 %v2420_v19  ;;  %2549 = vmatpush1.bf16.msra.mxu1 %v2548_v56  ;;  %v2558_v19 = vpack.c.bf16 %v1191_v16, %v1183_v4  ;;  %v1207_v56 = vld [vmem:[#allocation10 + $0x9d8] sm:$0xff] }
 0x1cb   :  { %2423 = vmatprep.subr.bf16.mxu0 %v2422_v24  ;;  %2551 = vmatprep.subr.bf16.mxu1 %v2550_v26  ;;  %v1196_v24 = vld [vmem:[#allocation10 + $0x980] sm:$0xff]  ;;  %v2434_v26 = vpack.c.bf16 %v1205_v34, %v1197_v13  ;;  %v1255_v4 = vld [vmem:[#allocation10 + $0xb58] sm:$0xff]  ;;  %v1254_v13 = vld [vmem:[#allocation10 + $0xb50] sm:$0xff] }
 0x1cc   :  { %v2574_v11 = vpack.c.bf16 %v1255_v4, %v1247_v3  ;;  %v1263_v34 = vld [vmem:[#allocation10 + $0xb98] sm:$0xff] }
 0x1cd   :  { %v1319_v3 = vld [vmem:[#allocation10 + $0xd58] sm:$0xff] }
 0x25f   :  { %v719_v30 = vpop.f32.mrb[4].mxu0  ;;  %v3281_v31 = vpop.f32.mrb[4].mxu1 }
 0x260   :  { %v2870_v35 = vadd.f32 %v719_v30, %v559_v28  ;;  %v721_v36 = vpop.f32.mrb[5].mxu0  ;;  %v875_v37 = vpop.f32.mrb[5].mxu1  ;;  %v1206_v30 = vld [vmem:[#allocation10 + $0x9d0] sm:$0xff] }
 0x261   :  { %v2871_v42 = vadd.f32 %v721_v36, %v563_v50  ;;  %v2875_v2 = vadd.f32 %v875_v37, %v3285_v46  ;;  %v1223_v36 = vld [vmem:[#allocation10 + $0xa58] sm:$0xff]  ;;  %v2436_v37 = vpack.c.bf16 %v1204_v25, %v1196_v24  ;;  %v1268_v24 = vld [vmem:[#allocation10 + $0xbc0] sm:$0xff] }
 0x262   :  { %v3291_v54 = vmax.f32 %v2870_v35, 0.0  ;;  %v1215_v35 = vld [vmem:[#allocation10 + $0xa18] sm:$0xff] }
 0x263   :  { %v3287_v47 = vmax.f32 %v2871_v42, 0.0  ;;  %v725_v48 = vpop.f32.mrb[6].mxu0  ;;  %v3289_v49 = vpop.f32.mrb[6].mxu1  ;;  %v3306_v21 = vmax.f32 %v2875_v2, 0.0  ;;  %v2438_v42 = vpack.c.bf16 %v1221_v33, %v1213_v32  ;;  %v2566_v43 = vpack.c.bf16 %v1223_v36, %v1215_v35  ;;  %v1253_v2 = vld [vmem:[#allocation10 + $0xb48] sm:$0xff]  ;;  %v1279_v33 = vld [vmem:[#allocation10 + $0xc18] sm:$0xff] }
 0x264   :  { %v2872_v55 = vadd.f32 %v725_v48, %v559_v28  ;;  %v727_v57 = vpop.f32.mrb[7].mxu0  ;;  %v3293_v58 = vpop.f32.mrb[7].mxu1  ;;  %v2562_v28 = vpack.c.bf16 %v1207_v56, %v1199_v29  ;;  %v1229_v48 = vld [vmem:[#allocation10 + $0xa88] sm:$0xff]  ;;  %v2446_v9 = vpack.c.bf16 %v1253_v2, %v1245_v1  ;;  %v1271_v29 = vld [vmem:[#allocation10 + $0xbd8] sm:$0xff] }
 0x265   :  { %v2873_v0 = vadd.f32 %v727_v57, %v563_v50  ;;  %1510 = vmatprep.mubr.f32.mxu0 %v3287_v47  ;;  %1664 = vmatprep.mubr.f32.mxu1 %v3287_v47  ;;  %v1198_v50 = vld [vmem:[#allocation10 + $0x990] sm:$0xff]  ;;  %v2568_v57 = vpack.c.bf16 %v1222_v45, %v1214_v44  ;;  %v1285_v32 = vld [vmem:[#allocation10 + $0xc48] sm:$0xff]  ;;  %v1287_v35 = vld [vmem:[#allocation10 + $0xc58] sm:$0xff] }
 0x266   :  { %1511 = vmatmul.mubr.f32.vlgmr.msra.gmra.mrb[8].mxu0 %v3291_v54  ;;  %1665 = vmatmul.mubr.f32.vlgmr.msra.gmra.mrb[8].mxu1 %v3291_v54  ;;  %v3302_v10 = vmax.f32 %v2872_v55, 0.0  ;;  %v2564_v38 = vpack.c.bf16 %v1206_v30, %v1198_v50  ;;  %v2440_v55 = vpack.c.bf16 %v1220_v40, %v1212_v39  ;;  %v1270_v50 = vld [vmem:[#allocation10 + $0xbd0] sm:$0xff]  ;;  %v1277_v30 = vld [vmem:[#allocation10 + $0xc08] sm:$0xff]  ;;  %v1284_v39 = vld [vmem:[#allocation10 + $0xc40] sm:$0xff] }
 0x267   :  { %v3300_v5 = vmax.f32 %v2873_v0, 0.0  ;;  %2425 = vmatpush1.bf16.msra.mxu0 %v2424_v51  ;;  %2553 = vmatpush1.bf16.msra.mxu1 %v2552_v52  ;;  %v1237_v51 = vld [vmem:[#allocation10 + $0xac8] sm:$0xff]  ;;  %v1231_v52 = vld [vmem:[#allocation10 + $0xa98] sm:$0xff]  ;;  %v1238_v0 = vld [vmem:[#allocation10 + $0xad0] sm:$0xff]  ;;  %v2454_v40 = vpack.c.bf16 %v1285_v32, %v1277_v30 }
 0x268   :  { %2427 = vmatprep.subr.bf16.mxu0 %v2426_v59  ;;  %2555 = vmatprep.subr.bf16.mxu1 %v2554_v60  ;;  %v1228_v59 = vld [vmem:[#allocation10 + $0xa80] sm:$0xff]  ;;  %v2442_v61 = vpack.c.bf16 %v1237_v51, %v1229_v48  ;;  %v2570_v62 = vpack.c.bf16 %v1239_v53, %v1231_v52  ;;  %v1286_v44 = vld [vmem:[#allocation10 + $0xc50] sm:$0xff]  ;;  %v1293_v45 = vld [vmem:[#allocation10 + $0xc88] sm:$0xff] }
 0x269   :  { %1516 = vmatprep.mubr.f32.mxu0 %v3300_v5  ;;  %1670 = vmatprep.mubr.f32.mxu1 %v3300_v5  ;;  %v1236_v60 = vld [vmem:[#allocation10 + $0xac0] sm:$0xff]  ;;  %v1301_v48 = vld [vmem:[#allocation10 + $0xcc8] sm:$0xff]  ;;  %v1295_v51 = vld [vmem:[#allocation10 + $0xc98] sm:$0xff] }
 0x26a   :  { %1517 = vmatmul.mubr.f32.gmra.mrb[10].mxu0 %v3302_v10  ;;  %1671 = vmatmul.mubr.f32.gmra.mrb[10].mxu1 %v3302_v10  ;;  %v2444_v16 = vpack.c.bf16 %v1236_v60, %v1228_v59  ;;  %v1303_v52 = vld [vmem:[#allocation10 + $0xcd8] sm:$0xff]  ;;  %v1300_v59 = vld [vmem:[#allocation10 + $0xcc0] sm:$0xff]  ;;  %v2458_v60 = vpack.c.bf16 %v1301_v48, %v1293_v45  ;;  %v1317_v1 = vld [vmem:[#allocation10 + $0xd48] sm:$0xff] }
 0x26b   :  { %2429 = vmatpush1.bf16.msra.mxu0 %v2428_v6  ;;  %2557 = vmatpush1.bf16.msra.mxu1 %v2556_v7  ;;  %v2572_v6 = vpack.c.bf16 %v1238_v0, %v1230_v63  ;;  %v1244_v7 = vld [vmem:[#allocation10 + $0xb00] sm:$0xff]  ;;  %v1302_v63 = vld [vmem:[#allocation10 + $0xcd0] sm:$0xff]  ;;  %v1309_v0 = vld [vmem:[#allocation10 + $0xd08] sm:$0xff] }
 0x26c   :  { %1587 = vmatprep.mubr.f32.mxu0 %v3306_v21  ;;  %1741 = vmatprep.mubr.f32.mxu1 %v3306_v21  ;;  %v2448_v56 = vpack.c.bf16 %v1252_v8, %v1244_v7  ;;  %v1311_v2 = vld [vmem:[#allocation10 + $0xd18] sm:$0xff]  ;;  %v1316_v7 = vld [vmem:[#allocation10 + $0xd40] sm:$0xff]  ;;  %v2462_v8 = vpack.c.bf16 %v1317_v1, %v1309_v0  ;;  %v1349_v30 = vld [vmem:[#allocation10 + $0xe48] sm:$0xff] }
 0x26d   :  { %2431 = vmatprep.subr.bf16.mxu0 %v2430_v18  ;;  %2559 = vmatprep.subr.bf16.mxu1 %v2558_v19  ;;  %v1261_v18 = vld [vmem:[#allocation10 + $0xb88] sm:$0xff]  ;;  %v1343_v32 = vld [vmem:[#allocation10 + $0xe18] sm:$0xff] }
 0x26e   :  { %v1269_v19 = vld [vmem:[#allocation10 + $0xbc8] sm:$0xff]  ;;  %v1359_v48 = vld [vmem:[#allocation10 + $0xe98] sm:$0xff] }
 0x26f   :  { %2433 = vmatpush1.bf16.msra.mxu0 %v2432_v22  ;;  %2561 = vmatpush1.bf16.msra.mxu1 %v2560_v23  ;;  %v2576_v22 = vpack.c.bf16 %v1254_v13, %v1246_v12  ;;  %v1260_v23 = vld [vmem:[#allocation10 + $0xb80] sm:$0xff]  ;;  %v2450_v25 = vpack.c.bf16 %v1269_v19, %v1261_v18  ;;  %v1318_v12 = vld [vmem:[#allocation10 + $0xd50] sm:$0xff]  ;;  %v1325_v13 = vld [vmem:[#allocation10 + $0xd88] sm:$0xff] }
 0x270   :  { %2435 = vmatprep.subr.bf16.mxu0 %v2434_v26  ;;  %2563 = vmatprep.subr.bf16.mxu1 %v2562_v28  ;;  %v2578_v26 = vpack.c.bf16 %v1271_v29, %v1263_v34  ;;  %v1262_v28 = vld [vmem:[#allocation10 + $0xb90] sm:$0xff]  ;;  %v2452_v36 = vpack.c.bf16 %v1268_v24, %v1260_v23  ;;  %v1333_v18 = vld [vmem:[#allocation10 + $0xdc8] sm:$0xff]  ;;  %v1327_v19 = vld [vmem:[#allocation10 + $0xd98] sm:$0xff] }
 0x271   :  { %v1335_v34 = vld [vmem:[#allocation10 + $0xdd8] sm:$0xff]  ;;  %v1332_v23 = vld [vmem:[#allocation10 + $0xdc0] sm:$0xff]  ;;  %v2466_v24 = vpack.c.bf16 %v1333_v18, %v1325_v13  ;;  %v1365_v45 = vld [vmem:[#allocation10 + $0xec8] sm:$0xff] }
 0x272   :  { %v1381_v0 = vld [vmem:[#allocation10 + $0xf48] sm:$0xff]  ;;  %v1375_v1 = vld [vmem:[#allocation10 + $0xf18] sm:$0xff] }
 0x273   :  { %2437 = vmatpush1.bf16.msra.mxu0 %v2436_v37  ;;  %2565 = vmatpush1.bf16.msra.mxu1 %v2564_v38  ;;  %v2580_v37 = vpack.c.bf16 %v1270_v50, %v1262_v28  ;;  %v1276_v38 = vld [vmem:[#allocation10 + $0xc00] sm:$0xff]  ;;  %v1334_v28 = vld [vmem:[#allocation10 + $0xdd0] sm:$0xff]  ;;  %v1341_v50 = vld [vmem:[#allocation10 + $0xe08] sm:$0xff] }
 0x274   :  { %2439 = vmatprep.subr.bf16.mxu0 %v2438_v42  ;;  %2567 = vmatprep.subr.bf16.mxu1 %v2566_v43  ;;  %v2582_v42 = vpack.c.bf16 %v1287_v35, %v1279_v33  ;;  %v1278_v43 = vld [vmem:[#allocation10 + $0xc10] sm:$0xff]  ;;  %v2456_v53 = vpack.c.bf16 %v1284_v39, %v1276_v38  ;;  %v1351_v33 = vld [vmem:[#allocation10 + $0xe58] sm:$0xff]  ;;  %v1348_v38 = vld [vmem:[#allocation10 + $0xe40] sm:$0xff]  ;;  %v2470_v39 = vpack.c.bf16 %v1349_v30, %v1341_v50 }
 0x275   :  { %v1397_v13 = vld [vmem:[#allocation10 + $0xfc8] sm:$0xff]  ;;  %v1391_v18 = vld [vmem:[#allocation10 + $0xf98] sm:$0xff] }
 0x276   :  { %v897_v50 = vld [vmem:[#allocation10 + $0x28] sm:$0xff] }
 0x277   :  { %2441 = vmatpush1.bf16.msra.mxu0 %v2440_v55  ;;  %2569 = vmatpush1.bf16.msra.mxu1 %v2568_v57  ;;  %v2584_v55 = vpack.c.bf16 %v1286_v44, %v1278_v43  ;;  %v1292_v57 = vld [vmem:[#allocation10 + $0xc80] sm:$0xff]  ;;  %v1350_v43 = vld [vmem:[#allocation10 + $0xe50] sm:$0xff]  ;;  %v1357_v44 = vld [vmem:[#allocation10 + $0xe88] sm:$0xff] }
 0x278   :  { %2443 = vmatprep.subr.bf16.mxu0 %v2442_v61  ;;  %2571 = vmatprep.subr.bf16.mxu1 %v2570_v62  ;;  %v2586_v61 = vpack.c.bf16 %v1303_v52, %v1295_v51  ;;  %v1294_v62 = vld [vmem:[#allocation10 + $0xc90] sm:$0xff]  ;;  %v2460_v4 = vpack.c.bf16 %v1300_v59, %v1292_v57  ;;  %v1367_v51 = vld [vmem:[#allocation10 + $0xed8] sm:$0xff]  ;;  %v1364_v57 = vld [vmem:[#allocation10 + $0xec0] sm:$0xff]  ;;  %v2474_v59 = vpack.c.bf16 %v1365_v45, %v1357_v44 }
 0x279   :  { %v905_v30 = vld [vmem:[#allocation10 + $0x68] sm:$0xff]  ;;  %v906_v44 = vld [vmem:[#allocation10 + $0x70] sm:$0xff] }
 0x27a   :  { %v913_v45 = vld [vmem:[#allocation10 + $0xa8] sm:$0xff] }
 0x27b   :  { %2445 = vmatpush1.bf16.msra.mxu0 %v2444_v16  ;;  %2573 = vmatpush1.bf16.msra.mxu1 %v2572_v6  ;;  %v2588_v16 = vpack.c.bf16 %v1302_v63, %v1294_v62  ;;  %v1308_v6 = vld [vmem:[#allocation10 + $0xd00] sm:$0xff]  ;;  %v1366_v62 = vld [vmem:[#allocation10 + $0xed0] sm:$0xff]  ;;  %v1373_v63 = vld [vmem:[#allocation10 + $0xf08] sm:$0xff] }
 0x27c   :  { %2447 = vmatprep.subr.bf16.mxu0 %v2446_v9  ;;  %2575 = vmatprep.subr.bf16.mxu1 %v2574_v11  ;;  %v2590_v9 = vpack.c.bf16 %v1319_v3, %v1311_v2  ;;  %v1310_v11 = vld [vmem:[#allocation10 + $0xd10] sm:$0xff]  ;;  %v2464_v29 = vpack.c.bf16 %v1316_v7, %v1308_v6  ;;  %v1383_v2 = vld [vmem:[#allocation10 + $0xf58] sm:$0xff]  ;;  %v1380_v6 = vld [vmem:[#allocation10 + $0xf40] sm:$0xff]  ;;  %v2478_v7 = vpack.c.bf16 %v1381_v0, %v1373_v63 }
 0x27d   :  { %v922_v63 = vld [vmem:[#allocation10 + $0xf0] sm:$0xff]  ;;  %v929_v0 = vld [vmem:[#allocation10 + $0x128] sm:$0xff] }
 0x27f   :  { %2449 = vmatpush1.bf16.msra.mxu0 %v2448_v56  ;;  %2577 = vmatpush1.bf16.msra.mxu1 %v2576_v22  ;;  %v2592_v56 = vpack.c.bf16 %v1318_v12, %v1310_v11  ;;  %v1324_v22 = vld [vmem:[#allocation10 + $0xd80] sm:$0xff]  ;;  %v1382_v11 = vld [vmem:[#allocation10 + $0xf50] sm:$0xff]  ;;  %v1389_v12 = vld [vmem:[#allocation10 + $0xf88] sm:$0xff] }
 0x280   :  { %2451 = vmatprep.subr.bf16.mxu0 %v2450_v25  ;;  %2579 = vmatprep.subr.bf16.mxu1 %v2578_v26  ;;  %v2594_v25 = vpack.c.bf16 %v1335_v34, %v1327_v19  ;;  %v1326_v26 = vld [vmem:[#allocation10 + $0xd90] sm:$0xff]  ;;  %v2468_v35 = vpack.c.bf16 %v1332_v23, %v1324_v22  ;;  %v1399_v19 = vld [vmem:[#allocation10 + $0xfd8] sm:$0xff]  ;;  %v1396_v22 = vld [vmem:[#allocation10 + $0xfc0] sm:$0xff]  ;;  %v567_v23 = vrot.slane %v3275_v27, %v3267_v41 }
 0x283   :  { %2453 = vmatpush1.bf16.msra.mxu0 %v2452_v36  ;;  %2581 = vmatpush1.bf16.msra.mxu1 %v2580_v37  ;;  %v2596_v36 = vpack.c.bf16 %v1334_v28, %v1326_v26  ;;  %v1340_v37 = vld [vmem:[#allocation10 + $0xe00] sm:$0xff]  ;;  %v1390_v26 = vld [vmem:[#allocation10 + $0xf90] sm:$0xff] }
 0x284   :  { %2455 = vmatprep.subr.bf16.mxu0 %v2454_v40  ;;  %2583 = vmatprep.subr.bf16.mxu1 %v2582_v42  ;;  %v2598_v40 = vpack.c.bf16 %v1351_v33, %v1343_v32  ;;  %v1342_v42 = vld [vmem:[#allocation10 + $0xe10] sm:$0xff]  ;;  %v2472_v52 = vpack.c.bf16 %v1348_v38, %v1340_v37  ;;  %v899_v32 = vld [vmem:[#allocation10 + $0x38] sm:$0xff]  ;;  %v2874_v37 = vadd.f32 %v3281_v31, %v567_v23 }
 0x285   :  { %v1398_v28 = vld [vmem:[#allocation10 + $0xfd0] sm:$0xff]  ;;  %v907_v33 = vld [vmem:[#allocation10 + $0x78] sm:$0xff]  ;;  %v2614_v38 = vpack.c.bf16 %v905_v30, %v897_v50  ;;  %v2876_v31 = vadd.f32 %v3289_v49, %v567_v23  ;;  %v952_v23 = vld [vmem:[#allocation10 + $0x1e0] sm:$0xff] }
 0x286   :  { %v2742_v27 = vpack.c.bf16 %v907_v33, %v899_v32  ;;  %v939_v49 = vld [vmem:[#allocation10 + $0x178] sm:$0xff]  ;;  %v961_v50 = vld [vmem:[#allocation10 + $0x228] sm:$0xff] }
 0x287   :  { %2457 = vmatpush1.bf16.msra.mxu0 %v2456_v53  ;;  %2585 = vmatpush1.bf16.msra.mxu1 %v2584_v55  ;;  %v2600_v53 = vpack.c.bf16 %v1350_v43, %v1342_v42  ;;  %v1356_v55 = vld [vmem:[#allocation10 + $0xe80] sm:$0xff]  ;;  %v2877_v42 = vadd.f32 %v3293_v58, %v3285_v46  ;;  %v898_v43 = vld [vmem:[#allocation10 + $0x30] sm:$0xff]  ;;  %v969_v30 = vld [vmem:[#allocation10 + $0x268] sm:$0xff] }
 0x288   :  { %2459 = vmatprep.subr.bf16.mxu0 %v2458_v60  ;;  %2587 = vmatprep.subr.bf16.mxu1 %v2586_v61  ;;  %v2602_v60 = vpack.c.bf16 %v1367_v51, %v1359_v48  ;;  %v1358_v61 = vld [vmem:[#allocation10 + $0xe90] sm:$0xff]  ;;  %v2476_v3 = vpack.c.bf16 %v1364_v57, %v1356_v55  ;;  %v921_v48 = vld [vmem:[#allocation10 + $0xe8] sm:$0xff]  ;;  %v915_v51 = vld [vmem:[#allocation10 + $0xb8] sm:$0xff]  ;;  %v2744_v57 = vpack.c.bf16 %v906_v44, %v898_v43 }
 0x289   :  { %v2618_v46 = vpack.c.bf16 %v921_v48, %v913_v45  ;;  %v963_v32 = vld [vmem:[#allocation10 + $0x238] sm:$0xff]  ;;  %v985_v43 = vld [vmem:[#allocation10 + $0x2e8] sm:$0xff] }
 0x28a   :  { %v971_v33 = vld [vmem:[#allocation10 + $0x278] sm:$0xff] }
 0x28b   :  { %2461 = vmatpush1.bf16.msra.mxu0 %v2460_v4  ;;  %2589 = vmatpush1.bf16.msra.mxu1 %v2588_v16  ;;  %v2604_v4 = vpack.c.bf16 %v1366_v62, %v1358_v61  ;;  %v1372_v16 = vld [vmem:[#allocation10 + $0xf00] sm:$0xff]  ;;  %v3320_v61 = vmax.f32 %v2877_v42, 0.0  ;;  %v914_v62 = vld [vmem:[#allocation10 + $0xb0] sm:$0xff]  ;;  %v977_v42 = vld [vmem:[#allocation10 + $0x2a8] sm:$0xff] }
 0x28c   :  { %2463 = vmatprep.subr.bf16.mxu0 %v2462_v8  ;;  %2591 = vmatprep.subr.bf16.mxu1 %v2590_v9  ;;  %v2606_v8 = vpack.c.bf16 %v1383_v2, %v1375_v1  ;;  %v1374_v9 = vld [vmem:[#allocation10 + $0xf10] sm:$0xff]  ;;  %v2480_v34 = vpack.c.bf16 %v1380_v6, %v1372_v16  ;;  %v937_v1 = vld [vmem:[#allocation10 + $0x168] sm:$0xff]  ;;  %v931_v2 = vld [vmem:[#allocation10 + $0x138] sm:$0xff]  ;;  %v2748_v16 = vpack.c.bf16 %v922_v63, %v914_v62 }
 0x28d   :  { %v928_v6 = vld [vmem:[#allocation10 + $0x120] sm:$0xff]  ;;  %v979_v44 = vld [vmem:[#allocation10 + $0x2b8] sm:$0xff] }
 0x28e   :  { %v987_v45 = vld [vmem:[#allocation10 + $0x2f8] sm:$0xff] }
 0x28f   :  { %2465 = vmatpush1.bf16.msra.mxu0 %v2464_v29  ;;  %2593 = vmatpush1.bf16.msra.mxu1 %v2592_v56  ;;  %v2608_v29 = vpack.c.bf16 %v1382_v11, %v1374_v9  ;;  %v1388_v56 = vld [vmem:[#allocation10 + $0xf80] sm:$0xff]  ;;  %v2750_v9 = vpack.c.bf16 %v939_v49, %v931_v2  ;;  %v930_v11 = vld [vmem:[#allocation10 + $0x130] sm:$0xff]  ;;  %v995_v62 = vld [vmem:[#allocation10 + $0x338] sm:$0xff] }
 0x290   :  { %2467 = vmatprep.subr.bf16.mxu0 %v2466_v24  ;;  %2595 = vmatprep.subr.bf16.mxu1 %v2594_v25  ;;  %v2482_v24 = vpack.c.bf16 %v1397_v13, %v1389_v12  ;;  %v2610_v25 = vpack.c.bf16 %v1399_v19, %v1391_v18  ;;  %v938_v12 = vld [vmem:[#allocation10 + $0x170] sm:$0xff]  ;;  %v945_v13 = vld [vmem:[#allocation10 + $0x1a8] sm:$0xff]  ;;  %v947_v19 = vld [vmem:[#allocation10 + $0x1b8] sm:$0xff] }
 0x291   :  { %v953_v18 = vld [vmem:[#allocation10 + $0x1e8] sm:$0xff]  ;;  %v1003_v63 = vld [vmem:[#allocation10 + $0x378] sm:$0xff]  ;;  %v992_v2 = vld [vmem:[#allocation10 + $0x320] sm:$0xff] }
 0x292   :  { %v1000_v49 = vld [vmem:[#allocation10 + $0x360] sm:$0xff] }
 0x293   :  { %2469 = vmatpush1.bf16.msra.mxu0 %v2468_v35  ;;  %2597 = vmatpush1.bf16.msra.mxu1 %v2596_v36  ;;  %v2484_v35 = vpack.c.bf16 %v1396_v22, %v1388_v56  ;;  %v2612_v36 = vpack.c.bf16 %v1398_v28, %v1390_v26  ;;  %v2752_v56 = vpack.c.bf16 %v938_v12, %v930_v11  ;;  %v944_v22 = vld [vmem:[#allocation10 + $0x1a0] sm:$0xff]  ;;  %v946_v26 = vld [vmem:[#allocation10 + $0x1b0] sm:$0xff]  ;;  %v1011_v11 = vld [vmem:[#allocation10 + $0x3b8] sm:$0xff] }
 0x294   :  { %2471 = vmatprep.subr.bf16.mxu0 %v2470_v39  ;;  %2599 = vmatprep.subr.bf16.mxu1 %v2598_v40  ;;  %v896_v39 = vld [vmem:[#allocation10 + $0x20] sm:$0xff]  ;;  %v954_v28 = vld [vmem:[#allocation10 + $0x1f0] sm:$0xff]  ;;  %v1019_v12 = vld [vmem:[#allocation10 + $0x3f8] sm:$0xff] }
 0x295   :  { %v904_v40 = vld [vmem:[#allocation10 + $0x60] sm:$0xff] }
 0x296   :  { %v2616_v55 = vpack.c.bf16 %v904_v40, %v896_v39  ;;  %v962_v39 = vld [vmem:[#allocation10 + $0x230] sm:$0xff] }
 0x297   :  { %2473 = vmatpush1.bf16.msra.mxu0 %v2472_v52  ;;  %2601 = vmatpush1.bf16.msra.mxu1 %v2600_v53  ;;  %v923_v52 = vld [vmem:[#allocation10 + $0xf8] sm:$0xff]  ;;  %v3317_v53 = vmax.f32 %v2874_v37, 0.0  ;;  %v968_v37 = vld [vmem:[#allocation10 + $0x260] sm:$0xff]  ;;  %v970_v40 = vld [vmem:[#allocation10 + $0x270] sm:$0xff] }
 0x298   :  { %2475 = vmatprep.subr.bf16.mxu0 %v2474_v59  ;;  %2603 = vmatprep.subr.bf16.mxu1 %v2602_v60  ;;  %v912_v59 = vld [vmem:[#allocation10 + $0xa0] sm:$0xff]  ;;  %v2746_v58 = vpack.c.bf16 %v923_v52, %v915_v51  ;;  %v2760_v51 = vpack.c.bf16 %v970_v40, %v962_v39  ;;  %v1043_v39 = vld [vmem:[#allocation10 + $0x4b8] sm:$0xff] }
 0x299   :  { %v920_v60 = vld [vmem:[#allocation10 + $0xe0] sm:$0xff]  ;;  %v1051_v40 = vld [vmem:[#allocation10 + $0x4f8] sm:$0xff] }
 0x29a   :  { %v976_v52 = vld [vmem:[#allocation10 + $0x2a0] sm:$0xff] }
 0x29b   :  { %2477 = vmatpush1.bf16.msra.mxu0 %v2476_v3  ;;  %2605 = vmatpush1.bf16.msra.mxu1 %v2604_v4  ;;  %v3326_v3 = vmax.f32 %v2876_v31, 0.0  ;;  %v2620_v4 = vpack.c.bf16 %v920_v60, %v912_v59  ;;  %v984_v31 = vld [vmem:[#allocation10 + $0x2e0] sm:$0xff]  ;;  %v978_v59 = vld [vmem:[#allocation10 + $0x2b0] sm:$0xff] }
 0x29c   :  { %2479 = vmatprep.subr.bf16.mxu0 %v2478_v7  ;;  %2607 = vmatprep.subr.bf16.mxu1 %v2606_v8  ;;  %v936_v7 = vld [vmem:[#allocation10 + $0x160] sm:$0xff]  ;;  %v2622_v8 = vpack.c.bf16 %v937_v1, %v929_v0  ;;  %v986_v60 = vld [vmem:[#allocation10 + $0x2f0] sm:$0xff]  ;;  %v2636_v0 = vpack.c.bf16 %v984_v31, %v976_v52 }
 0x29d   :  { %v2764_v1 = vpack.c.bf16 %v986_v60, %v978_v59  ;;  %v1042_v52 = vld [vmem:[#allocation10 + $0x4b0] sm:$0xff]  ;;  %v1059_v59 = vld [vmem:[#allocation10 + $0x538] sm:$0xff] }
 0x29e   :  { %v1050_v31 = vld [vmem:[#allocation10 + $0x4f0] sm:$0xff]  ;;  %v1067_v60 = vld [vmem:[#allocation10 + $0x578] sm:$0xff] }
 0x29f   :  { %2481 = vmatpush1.bf16.msra.mxu0 %v2480_v34  ;;  %2609 = vmatpush1.bf16.msra.mxu1 %v2608_v29  ;;  %v955_v34 = vld [vmem:[#allocation10 + $0x1f8] sm:$0xff]  ;;  %v2624_v29 = vpack.c.bf16 %v936_v7, %v928_v6  ;;  %v994_v6 = vld [vmem:[#allocation10 + $0x330] sm:$0xff] }
 0x2a0   :  { %2483 = vmatprep.subr.bf16.mxu0 %v2482_v24  ;;  %2611 = vmatprep.subr.bf16.mxu1 %v2610_v25  ;;  %v2626_v24 = vpack.c.bf16 %v953_v18, %v945_v13  ;;  %v2754_v25 = vpack.c.bf16 %v955_v34, %v947_v19  ;;  %v1002_v7 = vld [vmem:[#allocation10 + $0x370] sm:$0xff]  ;;  %v2640_v13 = vpack.c.bf16 %v1000_v49, %v992_v2  ;;  %v1008_v19 = vld [vmem:[#allocation10 + $0x3a0] sm:$0xff] }
 0x2a1   :  { %v2768_v18 = vpack.c.bf16 %v1002_v7, %v994_v6  ;;  %v1016_v34 = vld [vmem:[#allocation10 + $0x3e0] sm:$0xff]  ;;  %v1058_v2 = vld [vmem:[#allocation10 + $0x530] sm:$0xff]  ;;  %v1075_v6 = vld [vmem:[#allocation10 + $0x5b8] sm:$0xff] }
 0x2a2   :  { %v1066_v49 = vld [vmem:[#allocation10 + $0x570] sm:$0xff]  ;;  %v1083_v7 = vld [vmem:[#allocation10 + $0x5f8] sm:$0xff] }
 0x2a3   :  { %2485 = vmatpush1.bf16.msra.mxu0 %v2484_v35  ;;  %2613 = vmatpush1.bf16.msra.mxu1 %v2612_v36  ;;  %v2628_v35 = vpack.c.bf16 %v952_v23, %v944_v22  ;;  %v960_v36 = vld [vmem:[#allocation10 + $0x220] sm:$0xff]  ;;  %v1010_v22 = vld [vmem:[#allocation10 + $0x3b0] sm:$0xff] }
 0x2a4   :  { %2615 = vmatprep.subr.bf16.mxu0 %v2614_v38  ;;  %2743 = vmatprep.subr.bf16.mxu1 %v2742_v27  ;;  %v2630_v38 = vpack.c.bf16 %v969_v30, %v961_v50  ;;  %v2758_v27 = vpack.c.bf16 %v971_v33, %v963_v32  ;;  %v2632_v48 = vpack.c.bf16 %v968_v37, %v960_v36  ;;  %v1018_v23 = vld [vmem:[#allocation10 + $0x3f0] sm:$0xff]  ;;  %v1024_v32 = vld [vmem:[#allocation10 + $0x420] sm:$0xff] }
 0x2a5   :  { %v2644_v50 = vpack.c.bf16 %v1016_v34, %v1008_v19  ;;  %v2772_v30 = vpack.c.bf16 %v1018_v23, %v1010_v22  ;;  %v1032_v33 = vld [vmem:[#allocation10 + $0x460] sm:$0xff]  ;;  %v1026_v36 = vld [vmem:[#allocation10 + $0x430] sm:$0xff]  ;;  %v1091_v22 = vld [vmem:[#allocation10 + $0x638] sm:$0xff] }
 0x2a6   :  { %1588 = vmatmul.mubr.f32.vlgmr.msra.gmra.mrb[8].mxu0 %v3317_v53  ;;  %1742 = vmatmul.mubr.f32.vlgmr.msra.gmra.mrb[8].mxu1 %v3317_v53  ;;  %v1034_v37 = vld [vmem:[#allocation10 + $0x470] sm:$0xff]  ;;  %v1099_v23 = vld [vmem:[#allocation10 + $0x678] sm:$0xff] }
 0x2a7   :  { %1593 = vmatprep.mubr.f32.mxu0 %v3320_v61  ;;  %1747 = vmatprep.mubr.f32.mxu1 %v3320_v61  ;;  %v1074_v19 = vld [vmem:[#allocation10 + $0x5b0] sm:$0xff] }
 0x2a8   :  { %2617 = vmatpush1.bf16.msra.mxu0 %v2616_v55  ;;  %2745 = vmatpush1.bf16.msra.mxu1 %v2744_v57  ;;  %v2634_v55 = vpack.c.bf16 %v985_v43, %v977_v42  ;;  %v2762_v57 = vpack.c.bf16 %v987_v45, %v979_v44  ;;  %v2648_v42 = vpack.c.bf16 %v1032_v33, %v1024_v32  ;;  %v1040_v44 = vld [vmem:[#allocation10 + $0x4a0] sm:$0xff]  ;;  %v1082_v34 = vld [vmem:[#allocation10 + $0x5f0] sm:$0xff] }
 0x2a9   :  { %2619 = vmatprep.subr.bf16.mxu0 %v2618_v46  ;;  %2747 = vmatprep.subr.bf16.mxu1 %v2746_v58  ;;  %v993_v46 = vld [vmem:[#allocation10 + $0x328] sm:$0xff]  ;;  %v2776_v43 = vpack.c.bf16 %v1034_v37, %v1026_v36  ;;  %v1048_v45 = vld [vmem:[#allocation10 + $0x4e0] sm:$0xff]  ;;  %v1090_v32 = vld [vmem:[#allocation10 + $0x630] sm:$0xff] }
 0x2aa   :  { %1594 = vmatmul.mubr.f32.gmra.mrb[10].mxu0 %v3326_v3  ;;  %1748 = vmatmul.mubr.f32.gmra.mrb[10].mxu1 %v3326_v3  ;;  %v1001_v58 = vld [vmem:[#allocation10 + $0x368] sm:$0xff]  ;;  %v1098_v33 = vld [vmem:[#allocation10 + $0x670] sm:$0xff]  ;;  %v1107_v36 = vld [vmem:[#allocation10 + $0x6b8] sm:$0xff] }
 0x2ab   :  { %1818 = vmatprep.mubr.f32.mxu0 %v3287_v47  ;;  %1972 = vmatprep.mubr.f32.mxu1 %v3287_v47  ;;  %v2756_v47 = vpack.c.bf16 %v954_v28, %v946_v26  ;;  %v1027_v26 = vld [vmem:[#allocation10 + $0x438] sm:$0xff] }
 0x2ac   :  { %2621 = vmatpush1.bf16.msra.mxu0 %v2620_v4  ;;  %2749 = vmatpush1.bf16.msra.mxu1 %v2748_v16  ;;  %v2638_v4 = vpack.c.bf16 %v1001_v58, %v993_v46  ;;  %v2766_v16 = vpack.c.bf16 %v1003_v63, %v995_v62  ;;  %v1035_v28 = vld [vmem:[#allocation10 + $0x478] sm:$0xff]  ;;  %v2652_v46 = vpack.c.bf16 %v1048_v45, %v1040_v44  ;;  %v1056_v62 = vld [vmem:[#allocation10 + $0x520] sm:$0xff]  ;;  %v1106_v44 = vld [vmem:[#allocation10 + $0x6b0] sm:$0xff] }
 0x2ad   :  { %2623 = vmatprep.subr.bf16.mxu0 %v2622_v8  ;;  %2751 = vmatprep.subr.bf16.mxu1 %v2750_v9  ;;  %v1009_v8 = vld [vmem:[#allocation10 + $0x3a8] sm:$0xff]  ;;  %v2780_v58 = vpack.c.bf16 %v1050_v31, %v1042_v52  ;;  %v1064_v63 = vld [vmem:[#allocation10 + $0x560] sm:$0xff]  ;;  %v1115_v37 = vld [vmem:[#allocation10 + $0x6f8] sm:$0xff] }
 0x2ae   :  { %v1017_v9 = vld [vmem:[#allocation10 + $0x3e8] sm:$0xff]  ;;  %v1114_v45 = vld [vmem:[#allocation10 + $0x6f0] sm:$0xff]  ;;  %v1123_v52 = vld [vmem:[#allocation10 + $0x738] sm:$0xff] }
 0x2af   :  { %v1131_v31 = vld [vmem:[#allocation10 + $0x778] sm:$0xff] }
 0x2b0   :  { %2625 = vmatpush1.bf16.msra.mxu0 %v2624_v29  ;;  %2753 = vmatpush1.bf16.msra.mxu1 %v2752_v56  ;;  %v2642_v29 = vpack.c.bf16 %v1017_v9, %v1009_v8  ;;  %v2770_v56 = vpack.c.bf16 %v1019_v12, %v1011_v11  ;;  %v2656_v8 = vpack.c.bf16 %v1064_v63, %v1056_v62  ;;  %v1072_v11 = vld [vmem:[#allocation10 + $0x5a0] sm:$0xff]  ;;  %v1122_v62 = vld [vmem:[#allocation10 + $0x730] sm:$0xff] }
 0x2b1   :  { %2627 = vmatprep.subr.bf16.mxu0 %v2626_v24  ;;  %2755 = vmatprep.subr.bf16.mxu1 %v2754_v25  ;;  %v1025_v24 = vld [vmem:[#allocation10 + $0x428] sm:$0xff]  ;;  %v2784_v9 = vpack.c.bf16 %v1066_v49, %v1058_v2  ;;  %v1080_v12 = vld [vmem:[#allocation10 + $0x5e0] sm:$0xff]  ;;  %v1130_v63 = vld [vmem:[#allocation10 + $0x770] sm:$0xff] }
 0x2b2   :  { %v1033_v25 = vld [vmem:[#allocation10 + $0x468] sm:$0xff]  ;;  %v1139_v2 = vld [vmem:[#allocation10 + $0x7b8] sm:$0xff] }
 0x2b3   :  { %v1147_v49 = vld [vmem:[#allocation10 + $0x7f8] sm:$0xff] }
 0x2b4   :  { %2629 = vmatpush1.bf16.msra.mxu0 %v2628_v35  ;;  %2757 = vmatpush1.bf16.msra.mxu1 %v2756_v47  ;;  %v2646_v35 = vpack.c.bf16 %v1033_v25, %v1025_v24  ;;  %v2774_v47 = vpack.c.bf16 %v1035_v28, %v1027_v26  ;;  %v2660_v24 = vpack.c.bf16 %v1080_v12, %v1072_v11  ;;  %v1088_v26 = vld [vmem:[#allocation10 + $0x620] sm:$0xff]  ;;  %v1138_v11 = vld [vmem:[#allocation10 + $0x7b0] sm:$0xff] }
 0x2b5   :  { %2631 = vmatprep.subr.bf16.mxu0 %v2630_v38  ;;  %2759 = vmatprep.subr.bf16.mxu1 %v2758_v27  ;;  %v1041_v38 = vld [vmem:[#allocation10 + $0x4a8] sm:$0xff]  ;;  %v2788_v25 = vpack.c.bf16 %v1082_v34, %v1074_v19  ;;  %v1096_v28 = vld [vmem:[#allocation10 + $0x660] sm:$0xff]  ;;  %v1146_v12 = vld [vmem:[#allocation10 + $0x7f0] sm:$0xff] }
 0x2b6   :  { %v1049_v27 = vld [vmem:[#allocation10 + $0x4e8] sm:$0xff]  ;;  %v1155_v19 = vld [vmem:[#allocation10 + $0x838] sm:$0xff] }
 0x2b7   :  { %v1163_v34 = vld [vmem:[#allocation10 + $0x878] sm:$0xff] }
 0x2b8   :  { %2633 = vmatpush1.bf16.msra.mxu0 %v2632_v48  ;;  %2761 = vmatpush1.bf16.msra.mxu1 %v2760_v51  ;;  %v2650_v48 = vpack.c.bf16 %v1049_v27, %v1041_v38  ;;  %v2778_v51 = vpack.c.bf16 %v1051_v40, %v1043_v39  ;;  %v2664_v38 = vpack.c.bf16 %v1096_v28, %v1088_v26  ;;  %v1104_v39 = vld [vmem:[#allocation10 + $0x6a0] sm:$0xff]  ;;  %v1154_v26 = vld [vmem:[#allocation10 + $0x830] sm:$0xff] }
 0x2b9   :  { %2635 = vmatprep.subr.bf16.mxu0 %v2634_v55  ;;  %2763 = vmatprep.subr.bf16.mxu1 %v2762_v57  ;;  %v1057_v55 = vld [vmem:[#allocation10 + $0x528] sm:$0xff]  ;;  %v2792_v27 = vpack.c.bf16 %v1098_v33, %v1090_v32  ;;  %v1112_v40 = vld [vmem:[#allocation10 + $0x6e0] sm:$0xff]  ;;  %v1162_v28 = vld [vmem:[#allocation10 + $0x870] sm:$0xff] }
 0x2ba   :  { %v1065_v57 = vld [vmem:[#allocation10 + $0x568] sm:$0xff]  ;;  %v1171_v32 = vld [vmem:[#allocation10 + $0x8b8] sm:$0xff] }
 0x2bb   :  { %v1179_v33 = vld [vmem:[#allocation10 + $0x8f8] sm:$0xff] }
 0x2bc   :  { %2637 = vmatpush1.bf16.msra.mxu0 %v2636_v0  ;;  %2765 = vmatpush1.bf16.msra.mxu1 %v2764_v1  ;;  %v2654_v0 = vpack.c.bf16 %v1065_v57, %v1057_v55  ;;  %v2782_v1 = vpack.c.bf16 %v1067_v60, %v1059_v59  ;;  %v2668_v55 = vpack.c.bf16 %v1112_v40, %v1104_v39  ;;  %v1120_v59 = vld [vmem:[#allocation10 + $0x720] sm:$0xff]  ;;  %v1170_v39 = vld [vmem:[#allocation10 + $0x8b0] sm:$0xff] }
 0x2bd   :  { %2639 = vmatprep.subr.bf16.mxu0 %v2638_v4  ;;  %2767 = vmatprep.subr.bf16.mxu1 %v2766_v16  ;;  %v1073_v4 = vld [vmem:[#allocation10 + $0x5a8] sm:$0xff]  ;;  %v2796_v57 = vpack.c.bf16 %v1114_v45, %v1106_v44  ;;  %v1128_v60 = vld [vmem:[#allocation10 + $0x760] sm:$0xff]  ;;  %v1178_v40 = vld [vmem:[#allocation10 + $0x8f0] sm:$0xff] }
 0x2be   :  { %v1081_v16 = vld [vmem:[#allocation10 + $0x5e8] sm:$0xff]  ;;  %v1187_v44 = vld [vmem:[#allocation10 + $0x938] sm:$0xff] }
 0x2bf   :  { %v1195_v45 = vld [vmem:[#allocation10 + $0x978] sm:$0xff] }
 0x2c0   :  { %2641 = vmatpush1.bf16.msra.mxu0 %v2640_v13  ;;  %2769 = vmatpush1.bf16.msra.mxu1 %v2768_v18  ;;  %v2658_v13 = vpack.c.bf16 %v1081_v16, %v1073_v4  ;;  %v2786_v18 = vpack.c.bf16 %v1083_v7, %v1075_v6  ;;  %v2672_v4 = vpack.c.bf16 %v1128_v60, %v1120_v59  ;;  %v1136_v6 = vld [vmem:[#allocation10 + $0x7a0] sm:$0xff]  ;;  %v1194_v60 = vld [vmem:[#allocation10 + $0x970] sm:$0xff] }
 0x2c1   :  { %2643 = vmatprep.subr.bf16.mxu0 %v2642_v29  ;;  %2771 = vmatprep.subr.bf16.mxu1 %v2770_v56  ;;  %v1089_v29 = vld [vmem:[#allocation10 + $0x628] sm:$0xff]  ;;  %v2800_v16 = vpack.c.bf16 %v1130_v63, %v1122_v62  ;;  %v1144_v7 = vld [vmem:[#allocation10 + $0x7e0] sm:$0xff]  ;;  %v2814_v59 = vpack.c.bf16 %v1195_v45, %v1187_v44  ;;  %v1211_v62 = vld [vmem:[#allocation10 + $0x9f8] sm:$0xff] }
 0x2c2   :  { %v1097_v56 = vld [vmem:[#allocation10 + $0x668] sm:$0xff]  ;;  %v1258_v45 = vld [vmem:[#allocation10 + $0xb70] sm:$0xff] }
 0x2c4   :  { %2645 = vmatpush1.bf16.msra.mxu0 %v2644_v50  ;;  %2773 = vmatpush1.bf16.msra.mxu1 %v2772_v30  ;;  %v2662_v50 = vpack.c.bf16 %v1097_v56, %v1089_v29  ;;  %v2790_v30 = vpack.c.bf16 %v1099_v23, %v1091_v22  ;;  %v2676_v29 = vpack.c.bf16 %v1144_v7, %v1136_v6  ;;  %v1217_v6 = vld [vmem:[#allocation10 + $0xa28] sm:$0xff]  ;;  %v1219_v7 = vld [vmem:[#allocation10 + $0xa38] sm:$0xff] }
 0x2c5   :  { %2647 = vmatprep.subr.bf16.mxu0 %v2646_v35  ;;  %2775 = vmatprep.subr.bf16.mxu1 %v2774_v47  ;;  %v1105_v35 = vld [vmem:[#allocation10 + $0x6a8] sm:$0xff]  ;;  %v2804_v56 = vpack.c.bf16 %v1146_v12, %v1138_v11  ;;  %v2806_v23 = vpack.c.bf16 %v1163_v34, %v1155_v19  ;;  %v1226_v34 = vld [vmem:[#allocation10 + $0xa70] sm:$0xff] }
 0x2c6   :  { %v1113_v47 = vld [vmem:[#allocation10 + $0x6e8] sm:$0xff] }
 0x2c8   :  { %2649 = vmatpush1.bf16.msra.mxu0 %v2648_v42  ;;  %2777 = vmatpush1.bf16.msra.mxu1 %v2776_v43  ;;  %v2666_v42 = vpack.c.bf16 %v1113_v47, %v1105_v35  ;;  %v2794_v43 = vpack.c.bf16 %v1115_v37, %v1107_v36  ;;  %v2808_v47 = vpack.c.bf16 %v1162_v28, %v1154_v26  ;;  %v1168_v36 = vld [vmem:[#allocation10 + $0x8a0] sm:$0xff] }
 0x2c9   :  { %2651 = vmatprep.subr.bf16.mxu0 %v2650_v48  ;;  %2779 = vmatprep.subr.bf16.mxu1 %v2778_v51  ;;  %v1121_v48 = vld [vmem:[#allocation10 + $0x728] sm:$0xff]  ;;  %v1176_v37 = vld [vmem:[#allocation10 + $0x8e0] sm:$0xff] }
 0x2ca   :  { %v1129_v51 = vld [vmem:[#allocation10 + $0x768] sm:$0xff]  ;;  %v1232_v28 = vld [vmem:[#allocation10 + $0xaa0] sm:$0xff] }
 0x2cc   :  { %2653 = vmatpush1.bf16.msra.mxu0 %v2652_v46  ;;  %2781 = vmatpush1.bf16.msra.mxu1 %v2780_v58  ;;  %v2670_v46 = vpack.c.bf16 %v1129_v51, %v1121_v48  ;;  %v2798_v58 = vpack.c.bf16 %v1131_v31, %v1123_v52  ;;  %v2684_v48 = vpack.c.bf16 %v1176_v37, %v1168_v36  ;;  %v1184_v52 = vld [vmem:[#allocation10 + $0x920] sm:$0xff]  ;;  %v1251_v36 = vld [vmem:[#allocation10 + $0xb38] sm:$0xff] }
 0x2cd   :  { %2655 = vmatprep.subr.bf16.mxu0 %v2654_v0  ;;  %2783 = vmatprep.subr.bf16.mxu1 %v2782_v1  ;;  %v1137_v0 = vld [vmem:[#allocation10 + $0x7a8] sm:$0xff]  ;;  %v2812_v51 = vpack.c.bf16 %v1178_v40, %v1170_v39  ;;  %v1192_v31 = vld [vmem:[#allocation10 + $0x960] sm:$0xff]  ;;  %v1259_v37 = vld [vmem:[#allocation10 + $0xb78] sm:$0xff] }
 0x2ce   :  { %v1145_v1 = vld [vmem:[#allocation10 + $0x7e8] sm:$0xff]  ;;  %v1248_v40 = vld [vmem:[#allocation10 + $0xb20] sm:$0xff]  ;;  %v2830_v44 = vpack.c.bf16 %v1259_v37, %v1251_v36  ;;  %v1322_v37 = vld [vmem:[#allocation10 + $0xd70] sm:$0xff] }
 0x2d0   :  { %2657 = vmatpush1.bf16.msra.mxu0 %v2656_v8  ;;  %2785 = vmatpush1.bf16.msra.mxu1 %v2784_v9  ;;  %v2674_v8 = vpack.c.bf16 %v1145_v1, %v1137_v0  ;;  %v2802_v9 = vpack.c.bf16 %v1147_v49, %v1139_v2  ;;  %v1200_v1 = vld [vmem:[#allocation10 + $0x9a0] sm:$0xff]  ;;  %v1202_v49 = vld [vmem:[#allocation10 + $0x9b0] sm:$0xff] }
 0x2d1   :  { %2659 = vmatprep.subr.bf16.mxu0 %v2658_v13  ;;  %2787 = vmatprep.subr.bf16.mxu1 %v2786_v18  ;;  %v1153_v13 = vld [vmem:[#allocation10 + $0x828] sm:$0xff]  ;;  %v1208_v2 = vld [vmem:[#allocation10 + $0x9e0] sm:$0xff] }
 0x2d2   :  { %v1161_v18 = vld [vmem:[#allocation10 + $0x868] sm:$0xff] }
 0x2d3   :  { %v2678_v22 = vpack.c.bf16 %v1161_v18, %v1153_v13  ;;  %v1224_v13 = vld [vmem:[#allocation10 + $0xa60] sm:$0xff]  ;;  %v1218_v18 = vld [vmem:[#allocation10 + $0xa30] sm:$0xff] }
 0x2d4   :  { %2661 = vmatpush1.bf16.msra.mxu0 %v2660_v24  ;;  %2789 = vmatpush1.bf16.msra.mxu1 %v2788_v25  ;;  %v1152_v24 = vld [vmem:[#allocation10 + $0x820] sm:$0xff] }
 0x2d5   :  { %2663 = vmatprep.subr.bf16.mxu0 %v2662_v50  ;;  %2791 = vmatprep.subr.bf16.mxu1 %v2790_v30  ;;  %v1160_v25 = vld [vmem:[#allocation10 + $0x860] sm:$0xff]  ;;  %v1169_v50 = vld [vmem:[#allocation10 + $0x8a8] sm:$0xff] }
 0x2d6   :  { %v1177_v30 = vld [vmem:[#allocation10 + $0x8e8] sm:$0xff]  ;;  %v2680_v35 = vpack.c.bf16 %v1160_v25, %v1152_v24  ;;  %v2824_v25 = vpack.c.bf16 %v1226_v34, %v1218_v18  ;;  %v1296_v34 = vld [vmem:[#allocation10 + $0xca0] sm:$0xff] }
 0x2d8   :  { %2665 = vmatpush1.bf16.msra.mxu0 %v2664_v38  ;;  %2793 = vmatpush1.bf16.msra.mxu1 %v2792_v27  ;;  %v2682_v38 = vpack.c.bf16 %v1177_v30, %v1169_v50  ;;  %v2810_v27 = vpack.c.bf16 %v1179_v33, %v1171_v32  ;;  %v1240_v50 = vld [vmem:[#allocation10 + $0xae0] sm:$0xff]  ;;  %v1234_v30 = vld [vmem:[#allocation10 + $0xab0] sm:$0xff] }
 0x2d9   :  { %2667 = vmatprep.subr.bf16.mxu0 %v2666_v42  ;;  %2795 = vmatprep.subr.bf16.mxu1 %v2794_v43  ;;  %v1185_v42 = vld [vmem:[#allocation10 + $0x928] sm:$0xff]  ;;  %v1242_v33 = vld [vmem:[#allocation10 + $0xaf0] sm:$0xff] }
 0x2da   :  { %v1193_v43 = vld [vmem:[#allocation10 + $0x968] sm:$0xff] }
 0x2dc   :  { %2669 = vmatpush1.bf16.msra.mxu0 %v2668_v55  ;;  %2797 = vmatpush1.bf16.msra.mxu1 %v2796_v57  ;;  %v1186_v55 = vld [vmem:[#allocation10 + $0x930] sm:$0xff]  ;;  %v2686_v57 = vpack.c.bf16 %v1193_v43, %v1185_v42  ;;  %v1256_v42 = vld [vmem:[#allocation10 + $0xb60] sm:$0xff] }
 0x2dd   :  { %2671 = vmatprep.subr.bf16.mxu0 %v2670_v46  ;;  %2799 = vmatprep.subr.bf16.mxu1 %v2798_v58  ;;  %v1209_v46 = vld [vmem:[#allocation10 + $0x9e8] sm:$0xff]  ;;  %v1203_v58 = vld [vmem:[#allocation10 + $0x9b8] sm:$0xff]  ;;  %v2816_v63 = vpack.c.bf16 %v1194_v60, %v1186_v55  ;;  %v1250_v43 = vld [vmem:[#allocation10 + $0xb30] sm:$0xff]  ;;  %v2704_v55 = vpack.c.bf16 %v1256_v42, %v1248_v40 }
 0x2de   :  { %v1264_v60 = vld [vmem:[#allocation10 + $0xba0] sm:$0xff]  ;;  %v1339_v40 = vld [vmem:[#allocation10 + $0xdf8] sm:$0xff] }
 0x2e0   :  { %2673 = vmatpush1.bf16.msra.mxu0 %v2672_v4  ;;  %2801 = vmatpush1.bf16.msra.mxu1 %v2800_v16  ;;  %v2818_v4 = vpack.c.bf16 %v1211_v62, %v1203_v58  ;;  %v1210_v16 = vld [vmem:[#allocation10 + $0x9f0] sm:$0xff] }
 0x2e1   :  { %2675 = vmatprep.subr.bf16.mxu0 %v2674_v8  ;;  %2803 = vmatprep.subr.bf16.mxu1 %v2802_v9  ;;  %v1227_v8 = vld [vmem:[#allocation10 + $0xa78] sm:$0xff]  ;;  %v2692_v9 = vpack.c.bf16 %v1208_v2, %v1200_v1  ;;  %v2820_v11 = vpack.c.bf16 %v1210_v16, %v1202_v49  ;;  %v1274_v62 = vld [vmem:[#allocation10 + $0xbf0] sm:$0xff]  ;;  %v1280_v16 = vld [vmem:[#allocation10 + $0xc20] sm:$0xff] }
 0x2e2   :  { %v2822_v19 = vpack.c.bf16 %v1227_v8, %v1219_v7  ;;  %v1291_v1 = vld [vmem:[#allocation10 + $0xc78] sm:$0xff]  ;;  %v1290_v8 = vld [vmem:[#allocation10 + $0xc70] sm:$0xff] }
 0x2e4   :  { %2677 = vmatpush1.bf16.msra.mxu0 %v2676_v29  ;;  %2805 = vmatpush1.bf16.msra.mxu1 %v2804_v56  ;;  %v1233_v29 = vld [vmem:[#allocation10 + $0xaa8] sm:$0xff] }
 0x2e5   :  { %2679 = vmatprep.subr.bf16.mxu0 %v2678_v22  ;;  %2807 = vmatprep.subr.bf16.mxu1 %v2806_v23  ;;  %v1241_v56 = vld [vmem:[#allocation10 + $0xae8] sm:$0xff]  ;;  %v1235_v22 = vld [vmem:[#allocation10 + $0xab8] sm:$0xff] }
 0x2e6   :  { %v1243_v23 = vld [vmem:[#allocation10 + $0xaf8] sm:$0xff]  ;;  %v2698_v26 = vpack.c.bf16 %v1241_v56, %v1233_v29  ;;  %v1304_v29 = vld [vmem:[#allocation10 + $0xce0] sm:$0xff]  ;;  %v1298_v56 = vld [vmem:[#allocation10 + $0xcb0] sm:$0xff] }
 0x2e7   :  { %1819 = vmatmul.mubr.f32.vlgmr.msra.gmra.mrb[12].mxu0 %v3291_v54  ;;  %1973 = vmatmul.mubr.f32.vlgmr.msra.gmra.mrb[12].mxu1 %v3291_v54  ;;  %v1201_v54 = vld [vmem:[#allocation10 + $0x9a8] sm:$0xff]  ;;  %v2826_v32 = vpack.c.bf16 %v1243_v23, %v1235_v22  ;;  %v1306_v23 = vld [vmem:[#allocation10 + $0xcf0] sm:$0xff] }
 0x2e8   :  { %1824 = vmatprep.mubr.f32.mxu0 %v3300_v5  ;;  %2681 = vmatpush1.bf16.msra.mxu0 %v2680_v35  ;;  %v2690_v0 = vpack.c.bf16 %v1209_v46, %v1201_v54  ;;  %v1249_v35 = vld [vmem:[#allocation10 + $0xb28] sm:$0xff]  ;;  %v1272_v54 = vld [vmem:[#allocation10 + $0xbe0] sm:$0xff]  ;;  %v1266_v46 = vld [vmem:[#allocation10 + $0xbb0] sm:$0xff] }
 0x2e9   :  { %1978 = vmatprep.mubr.f32.mxu1 %v3300_v5  ;;  %2809 = vmatpush1.bf16.msra.mxu1 %v2808_v47  ;;  %v2688_v5 = vpack.c.bf16 %v1192_v31, %v1184_v52  ;;  %v1257_v47 = vld [vmem:[#allocation10 + $0xb68] sm:$0xff]  ;;  %v1267_v52 = vld [vmem:[#allocation10 + $0xbb8] sm:$0xff]  ;;  %v2708_v2 = vpack.c.bf16 %v1272_v54, %v1264_v60  ;;  %v2836_v49 = vpack.c.bf16 %v1274_v62, %v1266_v46  ;;  %v1344_v62 = vld [vmem:[#allocation10 + $0xe20] sm:$0xff] }
 0x2ea   :  { %2683 = vmatprep.subr.bf16.mxu0 %v2682_v38  ;;  %2811 = vmatprep.subr.bf16.mxu1 %v2810_v27  ;;  %v2700_v38 = vpack.c.bf16 %v1240_v50, %v1232_v28  ;;  %v2828_v27 = vpack.c.bf16 %v1242_v33, %v1234_v30  ;;  %v2702_v39 = vpack.c.bf16 %v1257_v47, %v1249_v35  ;;  %v1275_v31 = vld [vmem:[#allocation10 + $0xbf8] sm:$0xff]  ;;  %v1312_v33 = vld [vmem:[#allocation10 + $0xd20] sm:$0xff]  ;;  %v1314_v47 = vld [vmem:[#allocation10 + $0xd30] sm:$0xff] }
 0x2eb   :  { %1825 = vmatmul.mubr.f32.gmra.mrb[14].mxu0 %v3302_v10  ;;  %1979 = vmatmul.mubr.f32.gmra.mrb[14].mxu1 %v3302_v10  ;;  %v1225_v10 = vld [vmem:[#allocation10 + $0xa68] sm:$0xff]  ;;  %v2834_v58 = vpack.c.bf16 %v1275_v31, %v1267_v52  ;;  %v1323_v28 = vld [vmem:[#allocation10 + $0xd78] sm:$0xff]  ;;  %v2716_v50 = vpack.c.bf16 %v1304_v29, %v1296_v34  ;;  %v2844_v30 = vpack.c.bf16 %v1306_v23, %v1298_v56  ;;  %v1320_v35 = vld [vmem:[#allocation10 + $0xd60] sm:$0xff] }
 0x2ec   :  { %2685 = vmatpush1.bf16.msra.mxu0 %v2684_v48  ;;  %1895 = vmatprep.mubr.f32.mxu0 %v3306_v21  ;;  %v2694_v12 = vpack.c.bf16 %v1225_v10, %v1217_v6  ;;  %v1265_v48 = vld [vmem:[#allocation10 + $0xba8] sm:$0xff]  ;;  %v1288_v6 = vld [vmem:[#allocation10 + $0xc60] sm:$0xff]  ;;  %v1282_v10 = vld [vmem:[#allocation10 + $0xc30] sm:$0xff]  ;;  %v2720_v42 = vpack.c.bf16 %v1320_v35, %v1312_v33 }
 0x2ed   :  { %2813 = vmatpush1.bf16.msra.mxu1 %v2812_v51  ;;  %2049 = vmatprep.mubr.f32.mxu1 %v3306_v21  ;;  %v1216_v21 = vld [vmem:[#allocation10 + $0xa20] sm:$0xff]  ;;  %v1273_v51 = vld [vmem:[#allocation10 + $0xbe8] sm:$0xff]  ;;  %v2840_v18 = vpack.c.bf16 %v1290_v8, %v1282_v10  ;;  %v1338_v31 = vld [vmem:[#allocation10 + $0xdf0] sm:$0xff] }
 0x2ee   :  { %2687 = vmatprep.subr.bf16.mxu0 %v2686_v57  ;;  %2815 = vmatprep.subr.bf16.mxu1 %v2814_v59  ;;  %v2696_v24 = vpack.c.bf16 %v1224_v13, %v1216_v21  ;;  %v2832_v57 = vpack.c.bf16 %v1258_v45, %v1250_v43  ;;  %v2706_v59 = vpack.c.bf16 %v1273_v51, %v1265_v48  ;;  %v1307_v21 = vld [vmem:[#allocation10 + $0xcf8] sm:$0xff]  ;;  %v1328_v45 = vld [vmem:[#allocation10 + $0xda0] sm:$0xff]  ;;  %v1330_v51 = vld [vmem:[#allocation10 + $0xdb0] sm:$0xff] }
 0x2ef   :  { %v2712_v13 = vpack.c.bf16 %v1288_v6, %v1280_v16  ;;  %v2848_v43 = vpack.c.bf16 %v1322_v37, %v1314_v47  ;;  %v1336_v48 = vld [vmem:[#allocation10 + $0xde0] sm:$0xff]  ;;  %v1355_v60 = vld [vmem:[#allocation10 + $0xe78] sm:$0xff]  ;;  %v2852_v46 = vpack.c.bf16 %v1338_v31, %v1330_v51 }
 0x2f0   :  { %2689 = vmatpush1.bf16.msra.mxu0 %v2688_v5  ;;  %v1281_v5 = vld [vmem:[#allocation10 + $0xc28] sm:$0xff]  ;;  %v2724_v54 = vpack.c.bf16 %v1336_v48, %v1328_v45  ;;  %v1371_v16 = vld [vmem:[#allocation10 + $0xef8] sm:$0xff]  ;;  %v1360_v8 = vld [vmem:[#allocation10 + $0xea0] sm:$0xff] }
 0x2f1   :  { %2817 = vmatpush1.bf16.msra.mxu1 %v2816_v63  ;;  %2691 = vmatprep.subr.bf16.mxu0 %v2690_v0  ;;  %v1289_v63 = vld [vmem:[#allocation10 + $0xc68] sm:$0xff]  ;;  %v1283_v0 = vld [vmem:[#allocation10 + $0xc38] sm:$0xff]  ;;  %v1376_v23 = vld [vmem:[#allocation10 + $0xf20] sm:$0xff] }
 0x2f2   :  { %2819 = vmatprep.subr.bf16.mxu1 %v2818_v4  ;;  %v2710_v4 = vpack.c.bf16 %v1289_v63, %v1281_v5  ;;  %v2838_v7 = vpack.c.bf16 %v1291_v1, %v1283_v0  ;;  %v1352_v5 = vld [vmem:[#allocation10 + $0xe60] sm:$0xff]  ;;  %v1346_v63 = vld [vmem:[#allocation10 + $0xe30] sm:$0xff]  ;;  %v1387_v34 = vld [vmem:[#allocation10 + $0xf78] sm:$0xff] }
 0x2f3   :  { %v1354_v1 = vld [vmem:[#allocation10 + $0xe70] sm:$0xff]  ;;  %v2728_v6 = vpack.c.bf16 %v1352_v5, %v1344_v62  ;;  %v1403_v33 = vld [vmem:[#allocation10 + $0xff8] sm:$0xff]  ;;  %v1392_v37 = vld [vmem:[#allocation10 + $0xfa0] sm:$0xff]  ;;  %v1424_v5 = vsub.s32 4, %v3238_v14 }
 0x2f4   :  { %2693 = vmatpush1.bf16.msra.mxu0 %v2692_v9  ;;  %v1297_v9 = vld [vmem:[#allocation10 + $0xca8] sm:$0xff]  ;;  %v2856_v10 = vpack.c.bf16 %v1354_v1, %v1346_v63  ;;  %v1432_v63 = vsub.s32 6, %v3238_v14  ;;  %v1436_v1 = vsub.s32 7, %v3238_v14 }
 0x2f5   :  { %2821 = vmatpush1.bf16.msra.mxu1 %v2820_v11  ;;  %2695 = vmatprep.subr.bf16.mxu0 %v2694_v12  ;;  %v1305_v11 = vld [vmem:[#allocation10 + $0xce8] sm:$0xff]  ;;  %v1299_v12 = vld [vmem:[#allocation10 + $0xcb8] sm:$0xff] }
 0x2f6   :  { %2823 = vmatprep.subr.bf16.mxu1 %v2822_v19  ;;  %v2714_v19 = vpack.c.bf16 %v1305_v11, %v1297_v9  ;;  %v2842_v22 = vpack.c.bf16 %v1307_v21, %v1299_v12  ;;  %v1368_v9 = vld [vmem:[#allocation10 + $0xee0] sm:$0xff]  ;;  %v1362_v11 = vld [vmem:[#allocation10 + $0xeb0] sm:$0xff] }
 0x2f7   :  { %v1370_v21 = vld [vmem:[#allocation10 + $0xef0] sm:$0xff]  ;;  %v2732_v29 = vpack.c.bf16 %v1368_v9, %v1360_v8 }
 0x2f8   :  { %2697 = vmatpush1.bf16.msra.mxu0 %v2696_v24  ;;  %v1313_v24 = vld [vmem:[#allocation10 + $0xd28] sm:$0xff]  ;;  %v2860_v56 = vpack.c.bf16 %v1370_v21, %v1362_v11 }
 0x2f9   :  { %2825 = vmatpush1.bf16.msra.mxu1 %v2824_v25  ;;  %2699 = vmatprep.subr.bf16.mxu0 %v2698_v26  ;;  %v1321_v25 = vld [vmem:[#allocation10 + $0xd68] sm:$0xff]  ;;  %v1315_v26 = vld [vmem:[#allocation10 + $0xd38] sm:$0xff] }
 0x2fa   :  { %2827 = vmatprep.subr.bf16.mxu1 %v2826_v32  ;;  %v2718_v32 = vpack.c.bf16 %v1321_v25, %v1313_v24  ;;  %v2846_v36 = vpack.c.bf16 %v1323_v28, %v1315_v26  ;;  %v1384_v24 = vld [vmem:[#allocation10 + $0xf60] sm:$0xff]  ;;  %v1378_v25 = vld [vmem:[#allocation10 + $0xf30] sm:$0xff] }
 0x2fb   :  { %v1386_v28 = vld [vmem:[#allocation10 + $0xf70] sm:$0xff]  ;;  %v2736_v35 = vpack.c.bf16 %v1384_v24, %v1376_v23 }
 0x2fc   :  { %2701 = vmatpush1.bf16.msra.mxu0 %v2700_v38  ;;  %v1329_v38 = vld [vmem:[#allocation10 + $0xda8] sm:$0xff]  ;;  %v2864_v47 = vpack.c.bf16 %v1386_v28, %v1378_v25 }
 0x2fd   :  { %2829 = vmatpush1.bf16.msra.mxu1 %v2828_v27  ;;  %2703 = vmatprep.subr.bf16.mxu0 %v2702_v39  ;;  %v1337_v27 = vld [vmem:[#allocation10 + $0xde8] sm:$0xff]  ;;  %v1331_v39 = vld [vmem:[#allocation10 + $0xdb8] sm:$0xff] }
 0x2fe   :  { %2831 = vmatprep.subr.bf16.mxu1 %v2830_v44  ;;  %v2722_v44 = vpack.c.bf16 %v1337_v27, %v1329_v38  ;;  %v2850_v52 = vpack.c.bf16 %v1339_v40, %v1331_v39  ;;  %v1400_v38 = vld [vmem:[#allocation10 + $0xfe0] sm:$0xff]  ;;  %v1394_v39 = vld [vmem:[#allocation10 + $0xfb0] sm:$0xff] }
 0x2ff   :  { %v1402_v40 = vld [vmem:[#allocation10 + $0xff0] sm:$0xff] }
 0x300   :  { %2705 = vmatpush1.bf16.msra.mxu0 %v2704_v55  ;;  %v1345_v55 = vld [vmem:[#allocation10 + $0xe28] sm:$0xff] }
 0x301   :  { %2833 = vmatpush1.bf16.msra.mxu1 %v2832_v57  ;;  %2707 = vmatprep.subr.bf16.mxu0 %v2706_v59  ;;  %v1353_v57 = vld [vmem:[#allocation10 + $0xe68] sm:$0xff]  ;;  %v1347_v59 = vld [vmem:[#allocation10 + $0xe38] sm:$0xff] }
 0x302   :  { %2835 = vmatprep.subr.bf16.mxu1 %v2834_v58  ;;  %v2726_v58 = vpack.c.bf16 %v1353_v57, %v1345_v55  ;;  %v2854_v0 = vpack.c.bf16 %v1355_v60, %v1347_v59 }
 0x304   :  { %2709 = vmatpush1.bf16.msra.mxu0 %v2708_v2  ;;  %v1361_v2 = vld [vmem:[#allocation10 + $0xea8] sm:$0xff] }
 0x305   :  { %2837 = vmatpush1.bf16.msra.mxu1 %v2836_v49  ;;  %2711 = vmatprep.subr.bf16.mxu0 %v2710_v4  ;;  %v1369_v49 = vld [vmem:[#allocation10 + $0xee8] sm:$0xff]  ;;  %v1363_v4 = vld [vmem:[#allocation10 + $0xeb8] sm:$0xff] }
 0x306   :  { %2839 = vmatprep.subr.bf16.mxu1 %v2838_v7  ;;  %v2730_v7 = vpack.c.bf16 %v1369_v49, %v1361_v2  ;;  %v2858_v12 = vpack.c.bf16 %v1371_v16, %v1363_v4 }
 0x308   :  { %2713 = vmatpush1.bf16.msra.mxu0 %v2712_v13  ;;  %v1377_v13 = vld [vmem:[#allocation10 + $0xf28] sm:$0xff] }
 0x309   :  { %2841 = vmatpush1.bf16.msra.mxu1 %v2840_v18  ;;  %2715 = vmatprep.subr.bf16.mxu0 %v2714_v19  ;;  %v1385_v18 = vld [vmem:[#allocation10 + $0xf68] sm:$0xff]  ;;  %v1379_v19 = vld [vmem:[#allocation10 + $0xf38] sm:$0xff] }
 0x30a   :  { %2843 = vmatprep.subr.bf16.mxu1 %v2842_v22  ;;  %v2734_v22 = vpack.c.bf16 %v1385_v18, %v1377_v13  ;;  %v2862_v26 = vpack.c.bf16 %v1387_v34, %v1379_v19 }
 0x30c   :  { %2717 = vmatpush1.bf16.msra.mxu0 %v2716_v50  ;;  %v1393_v50 = vld [vmem:[#allocation10 + $0xfa8] sm:$0xff] }
 0x30d   :  { %2845 = vmatpush1.bf16.msra.mxu1 %v2844_v30  ;;  %2719 = vmatprep.subr.bf16.mxu0 %v2718_v32  ;;  %v1401_v30 = vld [vmem:[#allocation10 + $0xfe8] sm:$0xff]  ;;  %v1395_v32 = vld [vmem:[#allocation10 + $0xfb8] sm:$0xff] }
 0x30e   :  { %2847 = vmatprep.subr.bf16.mxu1 %v2846_v36  ;;  %v2738_v36 = vpack.c.bf16 %v1401_v30, %v1393_v50  ;;  %v2866_v27 = vpack.c.bf16 %v1403_v33, %v1395_v32 }
 0x310   :  { %2721 = vmatpush1.bf16.msra.mxu0 %v2720_v42  ;;  %v2740_v42 = vpack.c.bf16 %v1400_v38, %v1392_v37 }
 0x311   :  { %2849 = vmatpush1.bf16.msra.mxu1 %v2848_v43  ;;  %2723 = vmatprep.subr.bf16.mxu0 %v2722_v44  ;;  %v2868_v43 = vpack.c.bf16 %v1402_v40, %v1394_v39  ;;  %v1404_v44 = vld [vmem:[#allocation11] sm:$0xff] }
 0x312   :  { %2851 = vmatprep.subr.bf16.mxu1 %v2850_v52  ;;  %v1409_v45 = vrot.slane %v1404_v44, %v3241_v15  ;;  %v1417_v48 = vrot.slane %v1404_v44, %v3267_v41  ;;  %v1413_v51 = vrot.slane %v1404_v44, %v3246_v17  ;;  %v1421_v52 = vrot.slane %v1404_v44, %v3253_v20 }
 0x313   :  { %v1425_v2 = vrot.slane %v1404_v44, %v1424_v5  ;;  %v1433_v49 = vrot.slane %v1404_v44, %v1432_v63  ;;  %v1437_v16 = vrot.slane %v1404_v44, %v1436_v1 }
 0x314   :  { %2725 = vmatpush1.bf16.msra.mxu0 %v2724_v54 }
 0x315   :  { %2853 = vmatpush1.bf16.msra.mxu1 %v2852_v46  ;;  %2727 = vmatprep.subr.bf16.mxu0 %v2726_v58 }
 0x316   :  { %2855 = vmatprep.subr.bf16.mxu1 %v2854_v0  ;;  %v1428_v0 = vsub.s32 5, %v3238_v14 }
 0x318   :  { %2729 = vmatpush1.bf16.msra.mxu0 %v2728_v6  ;;  %v1429_v4 = vrot.slane %v1404_v44, %v1428_v0 }
 0x319   :  { %2857 = vmatpush1.bf16.msra.mxu1 %v2856_v10  ;;  %2731 = vmatprep.subr.bf16.mxu0 %v2730_v7 }
 0x31a   :  { %2859 = vmatprep.subr.bf16.mxu1 %v2858_v12 }
 0x31c   :  { %2733 = vmatpush1.bf16.msra.mxu0 %v2732_v29 }
 0x31d   :  { %2861 = vmatpush1.bf16.msra.mxu1 %v2860_v56  ;;  %2735 = vmatprep.subr.bf16.mxu0 %v2734_v22 }
 0x31e   :  { %2863 = vmatprep.subr.bf16.mxu1 %v2862_v26 }
 0x320   :  { %2737 = vmatpush1.bf16.msra.mxu0 %v2736_v35 }
 0x321   :  { %2865 = vmatpush1.bf16.msra.mxu1 %v2864_v47  ;;  %2739 = vmatprep.subr.bf16.mxu0 %v2738_v36 }
 0x322   :  { %2867 = vmatprep.subr.bf16.mxu1 %v2866_v27 }
 0x324   :  { %2741 = vmatpush1.bf16.msra.mxu0 %v2740_v42 }
 0x325   :  { %2869 = vmatpush1.bf16.msra.mxu1 %v2868_v43 }
 0x327   :  { %1896 = vmatmul.mubr.f32.vlgmr.msra.gmra.mrb[12].mxu0 %v3317_v53 }
 0x328   :  { %2050 = vmatmul.mubr.f32.vlgmr.msra.gmra.mrb[12].mxu1 %v3317_v53  ;;  %1901 = vmatprep.mubr.f32.mxu0 %v3320_v61 }
 0x329   :  { %2055 = vmatprep.mubr.f32.mxu1 %v3320_v61 }
 0x32b   :  { %1902 = vmatmul.mubr.f32.gmra.mrb[14].mxu0 %v3326_v3 }
 0x32c   :  { %2056 = vmatmul.mubr.f32.gmra.mrb[14].mxu1 %v3326_v3 }
 0x379   :  { %v1589_v31 = vpop.f32.mrb[8].mxu0  ;;  %v1743_v55 = vpop.f32.mrb[8].mxu1 }
 0x37a   :  { %v2878_v53 = vadd.f32 %v1589_v31, %v1409_v45  ;;  %v2882_v57 = vadd.f32 %v1743_v55, %v1417_v48  ;;  %v1591_v59 = vpop.f32.mrb[9].mxu0  ;;  %v1745_v60 = vpop.f32.mrb[9].mxu1 }
 0x37b   :  { %v2879_v61 = vadd.f32 %v1591_v59, %v1413_v51  ;;  %v2883_v54 = vadd.f32 %v1745_v60, %v1421_v52 }
 0x37c   :  { %2062 = vst [vmem:[#allocation13] sm:$0xff] %v2878_v53  ;;  %2064 = vst [vmem:[#allocation13 + $0x10] sm:$0xff] %v2882_v57 }
 0x37d   :  { %2063 = vst [vmem:[#allocation13 + $0x8] sm:$0xff] %v2879_v61  ;;  %2065 = vst [vmem:[#allocation13 + $0x18] sm:$0xff] %v2883_v54  ;;  %v1595_v3 = vpop.f32.mrb[10].mxu0  ;;  %v1749_v15 = vpop.f32.mrb[10].mxu1 }
 0x37e   :  { %v2880_v46 = vadd.f32 %v1595_v3, %v1409_v45  ;;  %v2884_v41 = vadd.f32 %v1749_v15, %v1417_v48  ;;  %v1597_v58 = vpop.f32.mrb[11].mxu0  ;;  %v1751_v17 = vpop.f32.mrb[11].mxu1 }
 0x37f   :  { %v2881_v62 = vadd.f32 %v1597_v58, %v1413_v51  ;;  %v2885_v20 = vadd.f32 %v1751_v17, %v1421_v52 }
 0x380   :  { %2070 = vst [vmem:[#allocation13 + $0x40] sm:$0xff] %v2880_v46  ;;  %2072 = vst [vmem:[#allocation13 + $0x50] sm:$0xff] %v2884_v41 }
 0x381   :  { %2071 = vst [vmem:[#allocation13 + $0x48] sm:$0xff] %v2881_v62  ;;  %2073 = vst [vmem:[#allocation13 + $0x58] sm:$0xff] %v2885_v20 }
 0x3fa   :  { %v1897_v6 = vpop.f32.mrb[12].mxu0 }
 0x3fb   :  { %v2886_v10 = vadd.f32 %v1897_v6, %v1425_v2  ;;  %v2051_v7 = vpop.f32.mrb[12].mxu1  ;;  %v1899_v8 = vpop.f32.mrb[13].mxu0 }
 0x3fc   :  { %v2890_v9 = vadd.f32 %v2051_v7, %v1433_v49  ;;  %v2887_v11 = vadd.f32 %v1899_v8, %v1429_v4  ;;  %v2053_v12 = vpop.f32.mrb[13].mxu1 }
 0x3fd   :  { %2066 = vst [vmem:[#allocation13 + $0x20] sm:$0xff] %v2886_v10  ;;  %v2891_v21 = vadd.f32 %v2053_v12, %v1437_v16 }
 0x3fe   :  { %2068 = vst [vmem:[#allocation13 + $0x30] sm:$0xff] %v2890_v9  ;;  %2067 = vst [vmem:[#allocation13 + $0x28] sm:$0xff] %v2887_v11  ;;  %v1903_v13 = vpop.f32.mrb[14].mxu0 }
 0x3ff   :  { %2069 = vst [vmem:[#allocation13 + $0x38] sm:$0xff] %v2891_v21  ;;  %v2888_v14 = vadd.f32 %v1903_v13, %v1425_v2  ;;  %v2057_v18 = vpop.f32.mrb[14].mxu1  ;;  %v1905_v19 = vpop.f32.mrb[15].mxu0 }
 0x400   :  { %v2892_v34 = vadd.f32 %v2057_v18, %v1433_v49  ;;  %v2889_v29 = vadd.f32 %v1905_v19, %v1429_v4  ;;  %v2059_v56 = vpop.f32.mrb[15].mxu1 }
 0x401   :  { %2074 = vst [vmem:[#allocation13 + $0x60] sm:$0xff] %v2888_v14  ;;  %v2893_v22 = vadd.f32 %v2059_v56, %v1437_v16 }
 0x402   :  { %2076 = vst [vmem:[#allocation13 + $0x70] sm:$0xff] %v2892_v34  ;;  %2075 = vst [vmem:[#allocation13 + $0x68] sm:$0xff] %v2889_v29 }
 0x403   :  { %2077 = vst [vmem:[#allocation13 + $0x78] sm:$0xff] %v2893_v22 }
 0x404   :  { %3073 = shalt.err (!%p3070_p10)
}
 0x405   :  { %s3074_s8 = scalar_lea.hbm %s3376_s7, 2048 }
 0x406   :  { %p3075_p11 = scmp.ne.s32.totalorder %s3376_s7, %s3074_s8  ;;  %p3078_p12 = scmp.lt.u32.totalorder %s3074_s8, %s3376_s7 }
 0x408   :  { %p3080_p13 = pnand %p3078_p12, %p3075_p11 }
 0x40a   :  { %3083 = shalt.err (!%p3080_p13)
}
 0x40b   :  { %2089 = dma.vmem_to_hbm [thread:$0]  %s2084_s25, 2048, %s3376_s7, [#allocation4], %s3101_s3, %s3101_s3, %s3102_s28  }
 0x40c   :  { %3092 = dma.done.wait [#allocation4], 2048  }
 0x40d   :  { %3093 = vsyncadd [#allocation4], 4294965248 }
 0x40e   :  { %2093 = vsyncpa [#allocation3], 1 }
 0x40f   :  { %2094 = vsyncpa [#allocation6], 1 }
 0x410   :  { %2095 = vsyncpa [#allocation9], 1 }
 0x411   :  { %2096 = vsyncpa [#allocation12], 1 }
 0x412   :  { %2097 = vsyncpa [#allocation4], 1 }

</bundles_post_ra>
